<compile_context>
chip_gen: v7x
topology: tpu7x:2x2x1
jax: 0.10.0
libtpu: 0.0.40
codegen_flags: <defaults>
</compile_context>

<pallas_src>
import numpy as np
import jax
import jax.numpy as jnp
from jax.experimental import pallas as pl
from jax.experimental.pallas import tpu as pltpu

EMB = 64
CONS_NFEATS = 5
EDGE_NFEATS = 1
VAR_NFEATS = 19
LN_EPS = 1e-5  # torch.nn.LayerNorm default


# ----------------------------- in-kernel helpers -----------------------------

def _layernorm(x, w, b):
    x = x.astype(jnp.float32)
    mean = jnp.mean(x, axis=-1, keepdims=True)
    var = jnp.mean(jnp.square(x - mean), axis=-1, keepdims=True)
    return (x - mean) * jax.lax.rsqrt(var + LN_EPS) * w + b


def _mm(a, b):
    """MXU matmul: bf16 operands, f32 accumulation."""
    return jnp.dot(a.astype(jnp.bfloat16), b.astype(jnp.bfloat16),
                   preferred_element_type=jnp.float32)


def _embed(x, ln_w, ln_b, w1, b1, w2, b2):
    """cons_/var_embedding: LayerNorm -> Linear -> ReLU -> Linear -> ReLU."""
    h = _layernorm(x, ln_w, ln_b)
    # NOTE: first Linear has a tiny K (5/19); on v5e it could be done on the
    # VPU as K broadcast-multiply-adds.  Kept on the MXU (bf16) for simplicity.
    h = jnp.maximum(_mm(h, w1) + b1, 0.0)
    return jnp.maximum(_mm(h, w2) + b2, 0.0)


def _bipartite_conv(left, right, src_idx_ref, tgt_idx_ref, params, scratch):
    """One BipartiteGraphConvolution (message passing, aggr='add').

    left/right are f32 values (source / target node embeddings).
    src_idx_ref / tgt_idx_ref are scalar-prefetched SMEM index vectors (nE,).
    Returns the new target-node features (nR, EMB) f32.
    """
    (wl, bl, wr, eb, lnm_w, lnm_b, wf, bff,
     lnp_w, lnp_b, w1a, w1b, b1, w2, b2) = params
    li_s, rj_s, msg_s, agg_s = scratch
    n_edges = msg_s.shape[0]

    # Per-node linear pieces (commute with the per-edge gather).
    li_s[...] = _mm(right, wl) + bl            # feature_module_left(target)  (nR, EMB)
    rj_s[...] = _mm(left, wr)                  # feature_module_right(source) (nL, EMB)

    # Per-edge gather by index:  msg[e] = li[tgt[e]] + rj[src[e]] + edge_const
    def gather_body(e, carry):
        t = tgt_idx_ref[e]
        s = src_idx_ref[e]
        msg_s[pl.ds(e, 1), :] = (li_s[pl.ds(t, 1), :] + rj_s[pl.ds(s, 1), :] + eb)
        return carry
    jax.lax.fori_loop(0, n_edges, gather_body, 0)

    # feature_module_final on all edges at once: LayerNorm -> ReLU -> Linear.
    m = _layernorm(msg_s[...], lnm_w, lnm_b)
    m = jnp.maximum(m, 0.0)
    msg_s[...] = _mm(m, wf) + bff

    # scatter-add (aggr='add') into an accumulator scratch (index-based, no
    # one-hot matmul).
    agg_s[...] = jnp.zeros_like(agg_s)
    def scatter_body(e, carry):
        t = tgt_idx_ref[e]
        agg_s[pl.ds(t, 1), :] = agg_s[pl.ds(t, 1), :] + msg_s[pl.ds(e, 1), :]
        return carry
    jax.lax.fori_loop(0, n_edges, scatter_body, 0)

    # post_conv_module LayerNorm, then output_module over concat([agg, right])
    # expressed with a split W1 (avoids an unaligned lane concat).
    agg = _layernorm(agg_s[...], lnp_w, lnp_b)
    h = _mm(agg, w1a) + _mm(right, w1b) + b1
    h = jnp.maximum(h, 0.0)
    return jnp.maximum(_mm(h, w2) + b2, 0.0)


# --------------------------------- kernels -----------------------------------

def embed_and_v_to_c_kernel(
    # scalar-prefetch operands (SMEM)
    cons_idx_ref, var_idx_ref,
    # inputs (VMEM)
    cons_x_ref, var_x_ref,
    c_lnw_ref, c_lnb_ref, c_w1_ref, c_b1_ref, c_w2_ref, c_b2_ref,
    v_lnw_ref, v_lnb_ref, v_w1_ref, v_b1_ref, v_w2_ref, v_b2_ref,
    wl_ref, bl_ref, wr_ref, eb_ref, lnm_w_ref, lnm_b_ref, wf_ref, bf_ref,
    lnp_w_ref, lnp_b_ref, w1a_ref, w1b_ref, b1_ref, w2_ref, b2_ref,
    # outputs
    cons1_ref, var0_ref,
    # scratch
    li_s, rj_s, msg_s, agg_s,
):
    """cons/var embedding MLPs fused with conv_v_to_c."""
    cons0 = _embed(cons_x_ref[...], c_lnw_ref[...], c_lnb_ref[...],
                   c_w1_ref[...], c_b1_ref[...], c_w2_ref[...], c_b2_ref[...])
    var0 = _embed(var_x_ref[...], v_lnw_ref[...], v_lnb_ref[...],
                  v_w1_ref[...], v_b1_ref[...], v_w2_ref[...], v_b2_ref[...])
    var0_ref[...] = var0

    conv_params = (wl_ref[...], bl_ref[...], wr_ref[...], eb_ref[...],
                   lnm_w_ref[...], lnm_b_ref[...], wf_ref[...], bf_ref[...],
                   lnp_w_ref[...], lnp_b_ref[...], w1a_ref[...], w1b_ref[...],
                   b1_ref[...], w2_ref[...], b2_ref[...])
    # conv_v_to_c: source/left = variables, target/right = constraints.
    cons1_ref[...] = _bipartite_conv(var0, cons0, var_idx_ref, cons_idx_ref,
                                     conv_params, (li_s, rj_s, msg_s, agg_s))


def c_to_v_and_head_kernel(
    # scalar-prefetch operands (SMEM)
    cons_idx_ref, var_idx_ref,
    # inputs (VMEM)
    cons1_ref, var0_ref,
    wl_ref, bl_ref, wr_ref, eb_ref, lnm_w_ref, lnm_b_ref, wf_ref, bf_ref,
    lnp_w_ref, lnp_b_ref, w1a_ref, w1b_ref, b1_ref, w2_ref, b2_ref,
    hw1_ref, hb1_ref, hw2_ref,
    # outputs
    out_ref,
    # scratch
    li_s, rj_s, msg_s, agg_s,
):
    """conv_c_to_v fused with the final output head."""
    cons1 = cons1_ref[...]
    var0 = var0_ref[...]
    conv_params = (wl_ref[...], bl_ref[...], wr_ref[...], eb_ref[...],
                   lnm_w_ref[...], lnm_b_ref[...], wf_ref[...], bf_ref[...],
                   lnp_w_ref[...], lnp_b_ref[...], w1a_ref[...], w1b_ref[...],
                   b1_ref[...], w2_ref[...], b2_ref[...])
    # conv_c_to_v: source/left = constraints, target/right = variables.
    var1 = _bipartite_conv(cons1, var0, cons_idx_ref, var_idx_ref,
                           conv_params, (li_s, rj_s, msg_s, agg_s))

    # output head: Linear -> ReLU -> Linear(EMB -> 1, no bias).
    g = jnp.maximum(_mm(var1, hw1_ref[...]) + hb1_ref[...], 0.0)
    # EMB -> 1 projection on the VPU (multiply + lane reduce): no N=1 MXU matmul.
    out_ref[...] = jnp.sum(g * hw2_ref[...], axis=-1,
                           keepdims=True).astype(out_ref.dtype)


# ------------------------------- parameters -----------------------------------

def _linear(key, fin, fout, bias=True):
    kw, kb = jax.random.split(key)
    s = 1.0 / np.sqrt(fin)
    w = jax.random.uniform(kw, (fin, fout), jnp.float32, -s, s)
    if bias:
        b = jax.random.uniform(kb, (1, fout), jnp.float32, -s, s)
        return w, b
    return (w,)


def _ln(f):
    return jnp.ones((1, f), jnp.float32), jnp.zeros((1, f), jnp.float32)


def init_embedding(key, fin):
    k1, k2 = jax.random.split(key)
    ln_w, ln_b = _ln(fin)
    w1, b1 = _linear(k1, fin, EMB)
    w2, b2 = _linear(k2, EMB, EMB)
    return (ln_w, ln_b, w1, b1, w2, b2)


def init_conv(key):
    ks = jax.random.split(key, 6)
    wl, bl = _linear(ks[0], EMB, EMB)                      # feature_module_left
    (we,) = _linear(ks[1], EDGE_NFEATS, EMB, bias=False)   # feature_module_edge
    (wr,) = _linear(ks[2], EMB, EMB, bias=False)           # feature_module_right
    lnm_w, lnm_b = _ln(EMB)                                # feature_module_final LN
    wf, bf = _linear(ks[3], EMB, EMB)                      # feature_module_final Linear
    lnp_w, lnp_b = _ln(EMB)                                # post_conv_module LN
    w1, b1 = _linear(ks[4], 2 * EMB, EMB)                  # output_module Linear(128,64)
    w2, b2 = _linear(ks[5], EMB, EMB)                      # output_module Linear(64,64)
    w1a, w1b = w1[:EMB], w1[EMB:]                          # split for concat-free matmul
    return (wl, bl, we, wr, lnm_w, lnm_b, wf, bf, lnp_w, lnp_b,
            w1a, w1b, b1, w2, b2)


def init_gnn_policy(key):
    k = jax.random.split(key, 5)
    return {
        "cons_embedding": init_embedding(k[0], CONS_NFEATS),
        "edge_embedding": _ln(EDGE_NFEATS),
        "var_embedding": init_embedding(k[1], VAR_NFEATS),
        "conv_v_to_c": init_conv(k[2]),
        "conv_c_to_v": init_conv(k[3]),
        "output_module": _linear(k[4], EMB, EMB)
                         + _linear(jax.random.split(k[4])[1], EMB, 1, bias=False),
    }


# ------------------------------ glue / forward ---------------------------------

def _bf16(x):
    return x.astype(jnp.bfloat16)


def _prep_embed(p):
    ln_w, ln_b, w1, b1, w2, b2 = p
    return (ln_w, ln_b, _bf16(w1), b1, _bf16(w2), b2)


def _prep_conv(p, edge_ln_b):
    (wl, bl, we, wr, lnm_w, lnm_b, wf, bf, lnp_w, lnp_b,
     w1a, w1b, b1, w2, b2) = p
    # Edge constant-fold: LayerNorm over a single feature == its bias, so the
    # per-edge edge term is the constant row  edge_ln_b * we  (1, EMB).
    eb = (edge_ln_b * we).astype(jnp.float32)
    return (_bf16(wl), bl, _bf16(wr), eb, lnm_w, lnm_b, _bf16(wf), bf,
            lnp_w, lnp_b, _bf16(w1a), _bf16(w1b), b1, _bf16(w2), b2)


def _prep_head(p):
    w1, b1, w2 = p
    return (_bf16(w1), b1, jnp.transpose(w2))   # w2 -> (1, EMB) row for VPU reduce


def gnn_policy_forward(params, constraint_features, edge_indices, edge_features,
                       variable_features):
    # Edge features numerically never matter: LayerNorm over 1 feature collapses
    # to its bias (matches the torch reference), folded into a constant row.
    del edge_features

    n_cons = constraint_features.shape[0]
    n_vars = variable_features.shape[0]
    n_edges = edge_indices.shape[1]
    cons_idx = edge_indices[0].astype(jnp.int32)   # target of conv_v_to_c
    var_idx = edge_indices[1].astype(jnp.int32)    # target of conv_c_to_v

    edge_ln_b = params["edge_embedding"][1]
    cons_emb = _prep_embed(params["cons_embedding"])
    var_emb = _prep_embed(params["var_embedding"])
    conv_vc = _prep_conv(params["conv_v_to_c"], edge_ln_b)
    conv_cv = _prep_conv(params["conv_c_to_v"], edge_ln_b)
    head = _prep_head(params["output_module"])

    vmem_spec = pl.BlockSpec(memory_space=pltpu.MemorySpace.VMEM)
    cparams = pltpu.CompilerParams(dimension_semantics=("arbitrary",),
                                   vmem_limit_bytes=48 * 1024 * 1024)

    # ---- kernel 1: embeddings + conv_v_to_c ----
    k1_inputs = (constraint_features, variable_features) + cons_emb + var_emb + conv_vc
    cons1, var0 = pl.pallas_call(
        embed_and_v_to_c_kernel,
        out_shape=(jax.ShapeDtypeStruct((n_cons, EMB), jnp.float32),
                   jax.ShapeDtypeStruct((n_vars, EMB), jnp.float32)),
        grid_spec=pltpu.PrefetchScalarGridSpec(
            num_scalar_prefetch=2,
            grid=(1,),
            in_specs=[vmem_spec] * len(k1_inputs),
            out_specs=(vmem_spec, vmem_spec),
            scratch_shapes=[
                pltpu.VMEM((n_cons, EMB), jnp.float32),    # li  (target nodes)
                pltpu.VMEM((n_vars, EMB), jnp.float32),    # rj  (source nodes)
                pltpu.VMEM((n_edges, EMB), jnp.float32),   # per-edge messages
                pltpu.VMEM((n_cons, EMB), jnp.float32),    # scatter accumulator
            ]),
        compiler_params=cparams,
    )(cons_idx, var_idx, *k1_inputs)

    # ---- kernel 2: conv_c_to_v + output head ----
    k2_inputs = (cons1, var0) + conv_cv + head
    out = pl.pallas_call(
        c_to_v_and_head_kernel,
        out_shape=jax.ShapeDtypeStruct((n_vars, 1), jnp.float32),
        grid_spec=pltpu.PrefetchScalarGridSpec(
            num_scalar_prefetch=2,
            grid=(1,),
            in_specs=[vmem_spec] * len(k2_inputs),
            out_specs=vmem_spec,
            scratch_shapes=[
                pltpu.VMEM((n_vars, EMB), jnp.float32),    # li  (target nodes)
                pltpu.VMEM((n_cons, EMB), jnp.float32),    # rj  (source nodes)
                pltpu.VMEM((n_edges, EMB), jnp.float32),   # per-edge messages
                pltpu.VMEM((n_vars, EMB), jnp.float32),    # scatter accumulator
            ]),
        compiler_params=cparams,
    )(cons_idx, var_idx, *k2_inputs)

    return out[:, 0]   # .squeeze(-1)


# ----------------------------------- main --------------------------------------

if __name__ == "__main__":
    key = jax.random.PRNGKey(0)
    kp, k1, k2, k3, k4 = jax.random.split(key, 5)

    n_cons, n_vars, n_edges = 16, 24, 64

    params = init_gnn_policy(kp)
    constraint_features = jax.random.normal(k1, (n_cons, CONS_NFEATS), jnp.float32)
    variable_features = jax.random.normal(k2, (n_vars, VAR_NFEATS), jnp.float32)
    edge_features = jax.random.normal(k3, (n_edges, EDGE_NFEATS), jnp.float32)
    kc, kv = jax.random.split(k4)
    edge_indices = jnp.stack(
        [jax.random.randint(kc, (n_edges,), 0, n_cons, jnp.int32),
         jax.random.randint(kv, (n_edges,), 0, n_vars, jnp.int32)], axis=0)

    fwd = jax.jit(gnn_policy_forward)
    out = fwd(params, constraint_features, edge_indices, edge_features,
              variable_features)
    out = jax.block_until_ready(out)

    assert out.shape == (n_vars,)
    assert bool(jnp.all(jnp.isfinite(out)))
    print("KERNEL_OK")
</pallas_src>

<mosaic_0001>
module attributes {stable_mosaic.version = 11 : i64} {
  func.func @embed_and_v_to_c_kernel(%arg0: i32, %arg1: memref<64xi32, #tpu.memory_space<smem>>, %arg2: memref<64xi32, #tpu.memory_space<smem>>, %arg3: memref<16x5xf32, #tpu.memory_space<vmem>>, %arg4: memref<24x19xf32, #tpu.memory_space<vmem>>, %arg5: memref<1x5xf32, #tpu.memory_space<vmem>>, %arg6: memref<1x5xf32, #tpu.memory_space<vmem>>, %arg7: memref<5x64xbf16, #tpu.memory_space<vmem>>, %arg8: memref<1x64xf32, #tpu.memory_space<vmem>>, %arg9: memref<64x64xbf16, #tpu.memory_space<vmem>>, %arg10: memref<1x64xf32, #tpu.memory_space<vmem>>, %arg11: memref<1x19xf32, #tpu.memory_space<vmem>>, %arg12: memref<1x19xf32, #tpu.memory_space<vmem>>, %arg13: memref<19x64xbf16, #tpu.memory_space<vmem>>, %arg14: memref<1x64xf32, #tpu.memory_space<vmem>>, %arg15: memref<64x64xbf16, #tpu.memory_space<vmem>>, %arg16: memref<1x64xf32, #tpu.memory_space<vmem>>, %arg17: memref<64x64xbf16, #tpu.memory_space<vmem>>, %arg18: memref<1x64xf32, #tpu.memory_space<vmem>>, %arg19: memref<64x64xbf16, #tpu.memory_space<vmem>>, %arg20: memref<1x64xf32, #tpu.memory_space<vmem>>, %arg21: memref<1x64xf32, #tpu.memory_space<vmem>>, %arg22: memref<1x64xf32, #tpu.memory_space<vmem>>, %arg23: memref<64x64xbf16, #tpu.memory_space<vmem>>, %arg24: memref<1x64xf32, #tpu.memory_space<vmem>>, %arg25: memref<1x64xf32, #tpu.memory_space<vmem>>, %arg26: memref<1x64xf32, #tpu.memory_space<vmem>>, %arg27: memref<64x64xbf16, #tpu.memory_space<vmem>>, %arg28: memref<64x64xbf16, #tpu.memory_space<vmem>>, %arg29: memref<1x64xf32, #tpu.memory_space<vmem>>, %arg30: memref<64x64xbf16, #tpu.memory_space<vmem>>, %arg31: memref<1x64xf32, #tpu.memory_space<vmem>>, %arg32: memref<16x64xf32, #tpu.memory_space<vmem>>, %arg33: memref<24x64xf32, #tpu.memory_space<vmem>>, %arg34: memref<16x64xf32, #tpu.memory_space<vmem>>, %arg35: memref<24x64xf32, #tpu.memory_space<vmem>>, %arg36: memref<64x64xf32, #tpu.memory_space<vmem>>, %arg37: memref<16x64xf32, #tpu.memory_space<vmem>>) attributes {dimension_semantics = [#tpu.dimension_semantics<arbitrary>], iteration_bounds = array<i64: 1>, scalar_prefetch = 2 : i64, scratch_operands = 4 : i64, tpu.core_type = #tpu.core_type<tc>, window_params = [{pipeline_mode = #tpu.pipeline_mode<synchronous>, transform_indices = @transform_0, window_bounds = array<i64: 16, 5>}, {pipeline_mode = #tpu.pipeline_mode<synchronous>, transform_indices = @transform_1, window_bounds = array<i64: 24, 19>}, {pipeline_mode = #tpu.pipeline_mode<synchronous>, transform_indices = @transform_2, window_bounds = array<i64: 1, 5>}, {pipeline_mode = #tpu.pipeline_mode<synchronous>, transform_indices = @transform_3, window_bounds = array<i64: 1, 5>}, {pipeline_mode = #tpu.pipeline_mode<synchronous>, transform_indices = @transform_4, window_bounds = array<i64: 5, 64>}, {pipeline_mode = #tpu.pipeline_mode<synchronous>, transform_indices = @transform_5, window_bounds = array<i64: 1, 64>}, {pipeline_mode = #tpu.pipeline_mode<synchronous>, transform_indices = @transform_6, window_bounds = array<i64: 64, 64>}, {pipeline_mode = #tpu.pipeline_mode<synchronous>, transform_indices = @transform_7, window_bounds = array<i64: 1, 64>}, {pipeline_mode = #tpu.pipeline_mode<synchronous>, transform_indices = @transform_8, window_bounds = array<i64: 1, 19>}, {pipeline_mode = #tpu.pipeline_mode<synchronous>, transform_indices = @transform_9, window_bounds = array<i64: 1, 19>}, {pipeline_mode = #tpu.pipeline_mode<synchronous>, transform_indices = @transform_10, window_bounds = array<i64: 19, 64>}, {pipeline_mode = #tpu.pipeline_mode<synchronous>, transform_indices = @transform_11, window_bounds = array<i64: 1, 64>}, {pipeline_mode = #tpu.pipeline_mode<synchronous>, transform_indices = @transform_12, window_bounds = array<i64: 64, 64>}, {pipeline_mode = #tpu.pipeline_mode<synchronous>, transform_indices = @transform_13, window_bounds = array<i64: 1, 64>}, {pipeline_mode = #tpu.pipeline_mode<synchronous>, transform_indices = @transform_14, window_bounds = array<i64: 64, 64>}, {pipeline_mode = #tpu.pipeline_mode<synchronous>, transform_indices = @transform_15, window_bounds = array<i64: 1, 64>}, {pipeline_mode = #tpu.pipeline_mode<synchronous>, transform_indices = @transform_16, window_bounds = array<i64: 64, 64>}, {pipeline_mode = #tpu.pipeline_mode<synchronous>, transform_indices = @transform_17, window_bounds = array<i64: 1, 64>}, {pipeline_mode = #tpu.pipeline_mode<synchronous>, transform_indices = @transform_18, window_bounds = array<i64: 1, 64>}, {pipeline_mode = #tpu.pipeline_mode<synchronous>, transform_indices = @transform_19, window_bounds = array<i64: 1, 64>}, {pipeline_mode = #tpu.pipeline_mode<synchronous>, transform_indices = @transform_20, window_bounds = array<i64: 64, 64>}, {pipeline_mode = #tpu.pipeline_mode<synchronous>, transform_indices = @transform_21, window_bounds = array<i64: 1, 64>}, {pipeline_mode = #tpu.pipeline_mode<synchronous>, transform_indices = @transform_22, window_bounds = array<i64: 1, 64>}, {pipeline_mode = #tpu.pipeline_mode<synchronous>, transform_indices = @transform_23, window_bounds = array<i64: 1, 64>}, {pipeline_mode = #tpu.pipeline_mode<synchronous>, transform_indices = @transform_24, window_bounds = array<i64: 64, 64>}, {pipeline_mode = #tpu.pipeline_mode<synchronous>, transform_indices = @transform_25, window_bounds = array<i64: 64, 64>}, {pipeline_mode = #tpu.pipeline_mode<synchronous>, transform_indices = @transform_26, window_bounds = array<i64: 1, 64>}, {pipeline_mode = #tpu.pipeline_mode<synchronous>, transform_indices = @transform_27, window_bounds = array<i64: 64, 64>}, {pipeline_mode = #tpu.pipeline_mode<synchronous>, transform_indices = @transform_28, window_bounds = array<i64: 1, 64>}, {pipeline_mode = #tpu.pipeline_mode<synchronous>, transform_indices = @transform_29, window_bounds = array<i64: 16, 64>}, {pipeline_mode = #tpu.pipeline_mode<synchronous>, transform_indices = @transform_30, window_bounds = array<i64: 24, 64>}]} {
    %c0 = arith.constant 0 : index
    %c0_0 = arith.constant 0 : index
    %0 = vector.load %arg3[%c0, %c0_0] : memref<16x5xf32, #tpu.memory_space<vmem>>, vector<16x5xf32>
    %c0_1 = arith.constant 0 : index
    %c0_2 = arith.constant 0 : index
    %1 = vector.load %arg5[%c0_1, %c0_2] : memref<1x5xf32, #tpu.memory_space<vmem>>, vector<1x5xf32>
    %c0_3 = arith.constant 0 : index
    %c0_4 = arith.constant 0 : index
    %2 = vector.load %arg6[%c0_3, %c0_4] : memref<1x5xf32, #tpu.memory_space<vmem>>, vector<1x5xf32>
    %c0_5 = arith.constant 0 : index
    %c0_6 = arith.constant 0 : index
    %3 = vector.load %arg7[%c0_5, %c0_6] : memref<5x64xbf16, #tpu.memory_space<vmem>>, vector<5x64xbf16>
    %c0_7 = arith.constant 0 : index
    %c0_8 = arith.constant 0 : index
    %4 = vector.load %arg8[%c0_7, %c0_8] : memref<1x64xf32, #tpu.memory_space<vmem>>, vector<1x64xf32>
    %c0_9 = arith.constant 0 : index
    %c0_10 = arith.constant 0 : index
    %5 = vector.load %arg9[%c0_9, %c0_10] : memref<64x64xbf16, #tpu.memory_space<vmem>>, vector<64x64xbf16>
    %c0_11 = arith.constant 0 : index
    %c0_12 = arith.constant 0 : index
    %6 = vector.load %arg10[%c0_11, %c0_12] : memref<1x64xf32, #tpu.memory_space<vmem>>, vector<1x64xf32>
    %cst = arith.constant dense<0.000000e+00> : vector<16xf32>
    %7 = vector.multi_reduction <add>, %0, %cst [1] : vector<16x5xf32> to vector<16xf32>
    %8 = vector.shape_cast %7 : vector<16xf32> to vector<16x1xf32>
    %cst_13 = arith.constant 5.000000e+00 : f32
    %9 = vector.broadcast %cst_13 : f32 to vector<16x1xf32>
    %10 = arith.divf %8, %9 : vector<16x1xf32>
    %11 = vector.broadcast %10 : vector<16x1xf32> to vector<16x5xf32>
    %12 = arith.subf %0, %11 : vector<16x5xf32>
    %13 = arith.mulf %12, %12 : vector<16x5xf32>
    %cst_14 = arith.constant dense<0.000000e+00> : vector<16xf32>
    %14 = vector.multi_reduction <add>, %13, %cst_14 [1] : vector<16x5xf32> to vector<16xf32>
    %15 = vector.shape_cast %14 : vector<16xf32> to vector<16x1xf32>
    %cst_15 = arith.constant 5.000000e+00 : f32
    %16 = vector.broadcast %cst_15 : f32 to vector<16x1xf32>
    %17 = arith.divf %15, %16 : vector<16x1xf32>
    %18 = vector.broadcast %10 : vector<16x1xf32> to vector<16x5xf32>
    %19 = arith.subf %0, %18 : vector<16x5xf32>
    %cst_16 = arith.constant 9.99999974E-6 : f32
    %20 = vector.broadcast %cst_16 : f32 to vector<16x1xf32>
    %21 = arith.addf %17, %20 : vector<16x1xf32>
    %22 = math.rsqrt %21 : vector<16x1xf32>
    %23 = vector.broadcast %22 : vector<16x1xf32> to vector<16x5xf32>
    %24 = arith.mulf %19, %23 : vector<16x5xf32>
    %25 = vector.broadcast %1 : vector<1x5xf32> to vector<16x5xf32>
    %26 = arith.mulf %24, %25 : vector<16x5xf32>
    %27 = vector.broadcast %2 : vector<1x5xf32> to vector<16x5xf32>
    %28 = arith.addf %26, %27 : vector<16x5xf32>
    %29 = arith.truncf %28 : vector<16x5xf32> to vector<16x5xbf16>
    %cst_17 = arith.constant dense<0.000000e+00> : vector<16x64xf32>
    %30 = tpu.matmul %29, %3, %cst_17 {dimension_numbers = #tpu.dot_dimension_numbers<[1], [0], [0], [1], [0, 0, 1, 1], [], []>} : vector<16x5xbf16>, vector<5x64xbf16>, vector<16x64xf32> -> vector<16x64xf32>
    %31 = vector.broadcast %4 : vector<1x64xf32> to vector<16x64xf32>
    %32 = arith.addf %30, %31 : vector<16x64xf32>
    %cst_18 = arith.constant 0.000000e+00 : f32
    %33 = vector.broadcast %cst_18 : f32 to vector<16x64xf32>
    %34 = arith.maximumf %32, %33 : vector<16x64xf32>
    %35 = arith.truncf %34 : vector<16x64xf32> to vector<16x64xbf16>
    %cst_19 = arith.constant dense<0.000000e+00> : vector<16x64xf32>
    %36 = tpu.matmul %35, %5, %cst_19 {dimension_numbers = #tpu.dot_dimension_numbers<[1], [0], [0], [1], [0, 0, 1, 1], [], []>} : vector<16x64xbf16>, vector<64x64xbf16>, vector<16x64xf32> -> vector<16x64xf32>
    %37 = vector.broadcast %6 : vector<1x64xf32> to vector<16x64xf32>
    %38 = arith.addf %36, %37 : vector<16x64xf32>
    %cst_20 = arith.constant 0.000000e+00 : f32
    %39 = vector.broadcast %cst_20 : f32 to vector<16x64xf32>
    %40 = arith.maximumf %38, %39 : vector<16x64xf32>
    %c0_21 = arith.constant 0 : index
    %c0_22 = arith.constant 0 : index
    %41 = vector.load %arg4[%c0_21, %c0_22] : memref<24x19xf32, #tpu.memory_space<vmem>>, vector<24x19xf32>
    %c0_23 = arith.constant 0 : index
    %c0_24 = arith.constant 0 : index
    %42 = vector.load %arg11[%c0_23, %c0_24] : memref<1x19xf32, #tpu.memory_space<vmem>>, vector<1x19xf32>
    %c0_25 = arith.constant 0 : index
    %c0_26 = arith.constant 0 : index
    %43 = vector.load %arg12[%c0_25, %c0_26] : memref<1x19xf32, #tpu.memory_space<vmem>>, vector<1x19xf32>
    %c0_27 = arith.constant 0 : index
    %c0_28 = arith.constant 0 : index
    %44 = vector.load %arg13[%c0_27, %c0_28] : memref<19x64xbf16, #tpu.memory_space<vmem>>, vector<19x64xbf16>
    %c0_29 = arith.constant 0 : index
    %c0_30 = arith.constant 0 : index
    %45 = vector.load %arg14[%c0_29, %c0_30] : memref<1x64xf32, #tpu.memory_space<vmem>>, vector<1x64xf32>
    %c0_31 = arith.constant 0 : index
    %c0_32 = arith.constant 0 : index
    %46 = vector.load %arg15[%c0_31, %c0_32] : memref<64x64xbf16, #tpu.memory_space<vmem>>, vector<64x64xbf16>
    %c0_33 = arith.constant 0 : index
    %c0_34 = arith.constant 0 : index
    %47 = vector.load %arg16[%c0_33, %c0_34] : memref<1x64xf32, #tpu.memory_space<vmem>>, vector<1x64xf32>
    %cst_35 = arith.constant dense<0.000000e+00> : vector<24xf32>
    %48 = vector.multi_reduction <add>, %41, %cst_35 [1] : vector<24x19xf32> to vector<24xf32>
    %49 = vector.shape_cast %48 : vector<24xf32> to vector<24x1xf32>
    %cst_36 = arith.constant 1.900000e+01 : f32
    %50 = vector.broadcast %cst_36 : f32 to vector<24x1xf32>
    %51 = arith.divf %49, %50 : vector<24x1xf32>
    %52 = vector.broadcast %51 : vector<24x1xf32> to vector<24x19xf32>
    %53 = arith.subf %41, %52 : vector<24x19xf32>
    %54 = arith.mulf %53, %53 : vector<24x19xf32>
    %cst_37 = arith.constant dense<0.000000e+00> : vector<24xf32>
    %55 = vector.multi_reduction <add>, %54, %cst_37 [1] : vector<24x19xf32> to vector<24xf32>
    %56 = vector.shape_cast %55 : vector<24xf32> to vector<24x1xf32>
    %cst_38 = arith.constant 1.900000e+01 : f32
    %57 = vector.broadcast %cst_38 : f32 to vector<24x1xf32>
    %58 = arith.divf %56, %57 : vector<24x1xf32>
    %59 = vector.broadcast %51 : vector<24x1xf32> to vector<24x19xf32>
    %60 = arith.subf %41, %59 : vector<24x19xf32>
    %cst_39 = arith.constant 9.99999974E-6 : f32
    %61 = vector.broadcast %cst_39 : f32 to vector<24x1xf32>
    %62 = arith.addf %58, %61 : vector<24x1xf32>
    %63 = math.rsqrt %62 : vector<24x1xf32>
    %64 = vector.broadcast %63 : vector<24x1xf32> to vector<24x19xf32>
    %65 = arith.mulf %60, %64 : vector<24x19xf32>
    %66 = vector.broadcast %42 : vector<1x19xf32> to vector<24x19xf32>
    %67 = arith.mulf %65, %66 : vector<24x19xf32>
    %68 = vector.broadcast %43 : vector<1x19xf32> to vector<24x19xf32>
    %69 = arith.addf %67, %68 : vector<24x19xf32>
    %70 = arith.truncf %69 : vector<24x19xf32> to vector<24x19xbf16>
    %cst_40 = arith.constant dense<0.000000e+00> : vector<24x64xf32>
    %71 = tpu.matmul %70, %44, %cst_40 {dimension_numbers = #tpu.dot_dimension_numbers<[1], [0], [0], [1], [0, 0, 1, 1], [], []>} : vector<24x19xbf16>, vector<19x64xbf16>, vector<24x64xf32> -> vector<24x64xf32>
    %72 = vector.broadcast %45 : vector<1x64xf32> to vector<24x64xf32>
    %73 = arith.addf %71, %72 : vector<24x64xf32>
    %cst_41 = arith.constant 0.000000e+00 : f32
    %74 = vector.broadcast %cst_41 : f32 to vector<24x64xf32>
    %75 = arith.maximumf %73, %74 : vector<24x64xf32>
    %76 = arith.truncf %75 : vector<24x64xf32> to vector<24x64xbf16>
    %cst_42 = arith.constant dense<0.000000e+00> : vector<24x64xf32>
    %77 = tpu.matmul %76, %46, %cst_42 {dimension_numbers = #tpu.dot_dimension_numbers<[1], [0], [0], [1], [0, 0, 1, 1], [], []>} : vector<24x64xbf16>, vector<64x64xbf16>, vector<24x64xf32> -> vector<24x64xf32>
    %78 = vector.broadcast %47 : vector<1x64xf32> to vector<24x64xf32>
    %79 = arith.addf %77, %78 : vector<24x64xf32>
    %cst_43 = arith.constant 0.000000e+00 : f32
    %80 = vector.broadcast %cst_43 : f32 to vector<24x64xf32>
    %81 = arith.maximumf %79, %80 : vector<24x64xf32>
    %c0_44 = arith.constant 0 : index
    %c0_45 = arith.constant 0 : index
    %82 = vector.load %arg33[%c0_44, %c0_45] : memref<24x64xf32, #tpu.memory_space<vmem>>, vector<24x64xf32>
    tpu.vector_store %arg33[%c0_44, %c0_45], %81 {strides = array<i32>} : memref<24x64xf32, #tpu.memory_space<vmem>>, vector<24x64xf32>,
    %c0_46 = arith.constant 0 : index
    %c0_47 = arith.constant 0 : index
    %83 = vector.load %arg17[%c0_46, %c0_47] : memref<64x64xbf16, #tpu.memory_space<vmem>>, vector<64x64xbf16>
    %c0_48 = arith.constant 0 : index
    %c0_49 = arith.constant 0 : index
    %84 = vector.load %arg18[%c0_48, %c0_49] : memref<1x64xf32, #tpu.memory_space<vmem>>, vector<1x64xf32>
    %c0_50 = arith.constant 0 : index
    %c0_51 = arith.constant 0 : index
    %85 = vector.load %arg19[%c0_50, %c0_51] : memref<64x64xbf16, #tpu.memory_space<vmem>>, vector<64x64xbf16>
    %c0_52 = arith.constant 0 : index
    %c0_53 = arith.constant 0 : index
    %86 = vector.load %arg20[%c0_52, %c0_53] : memref<1x64xf32, #tpu.memory_space<vmem>>, vector<1x64xf32>
    %c0_54 = arith.constant 0 : index
    %c0_55 = arith.constant 0 : index
    %87 = vector.load %arg21[%c0_54, %c0_55] : memref<1x64xf32, #tpu.memory_space<vmem>>, vector<1x64xf32>
    %c0_56 = arith.constant 0 : index
    %c0_57 = arith.constant 0 : index
    %88 = vector.load %arg22[%c0_56, %c0_57] : memref<1x64xf32, #tpu.memory_space<vmem>>, vector<1x64xf32>
    %c0_58 = arith.constant 0 : index
    %c0_59 = arith.constant 0 : index
    %89 = vector.load %arg23[%c0_58, %c0_59] : memref<64x64xbf16, #tpu.memory_space<vmem>>, vector<64x64xbf16>
    %c0_60 = arith.constant 0 : index
    %c0_61 = arith.constant 0 : index
    %90 = vector.load %arg24[%c0_60, %c0_61] : memref<1x64xf32, #tpu.memory_space<vmem>>, vector<1x64xf32>
    %c0_62 = arith.constant 0 : index
    %c0_63 = arith.constant 0 : index
    %91 = vector.load %arg25[%c0_62, %c0_63] : memref<1x64xf32, #tpu.memory_space<vmem>>, vector<1x64xf32>
    %c0_64 = arith.constant 0 : index
    %c0_65 = arith.constant 0 : index
    %92 = vector.load %arg26[%c0_64, %c0_65] : memref<1x64xf32, #tpu.memory_space<vmem>>, vector<1x64xf32>
    %c0_66 = arith.constant 0 : index
    %c0_67 = arith.constant 0 : index
    %93 = vector.load %arg27[%c0_66, %c0_67] : memref<64x64xbf16, #tpu.memory_space<vmem>>, vector<64x64xbf16>
    %c0_68 = arith.constant 0 : index
    %c0_69 = arith.constant 0 : index
    %94 = vector.load %arg28[%c0_68, %c0_69] : memref<64x64xbf16, #tpu.memory_space<vmem>>, vector<64x64xbf16>
    %c0_70 = arith.constant 0 : index
    %c0_71 = arith.constant 0 : index
    %95 = vector.load %arg29[%c0_70, %c0_71] : memref<1x64xf32, #tpu.memory_space<vmem>>, vector<1x64xf32>
    %c0_72 = arith.constant 0 : index
    %c0_73 = arith.constant 0 : index
    %96 = vector.load %arg30[%c0_72, %c0_73] : memref<64x64xbf16, #tpu.memory_space<vmem>>, vector<64x64xbf16>
    %c0_74 = arith.constant 0 : index
    %c0_75 = arith.constant 0 : index
    %97 = vector.load %arg31[%c0_74, %c0_75] : memref<1x64xf32, #tpu.memory_space<vmem>>, vector<1x64xf32>
    %98 = arith.truncf %40 : vector<16x64xf32> to vector<16x64xbf16>
    %cst_76 = arith.constant dense<0.000000e+00> : vector<16x64xf32>
    %99 = tpu.matmul %98, %83, %cst_76 {dimension_numbers = #tpu.dot_dimension_numbers<[1], [0], [0], [1], [0, 0, 1, 1], [], []>} : vector<16x64xbf16>, vector<64x64xbf16>, vector<16x64xf32> -> vector<16x64xf32>
    %100 = vector.broadcast %84 : vector<1x64xf32> to vector<16x64xf32>
    %101 = arith.addf %99, %100 : vector<16x64xf32>
    %c0_77 = arith.constant 0 : index
    %c0_78 = arith.constant 0 : index
    %102 = vector.load %arg34[%c0_77, %c0_78] : memref<16x64xf32, #tpu.memory_space<vmem>>, vector<16x64xf32>
    tpu.vector_store %arg34[%c0_77, %c0_78], %101 {strides = array<i32>} : memref<16x64xf32, #tpu.memory_space<vmem>>, vector<16x64xf32>,
    %103 = arith.truncf %81 : vector<24x64xf32> to vector<24x64xbf16>
    %cst_79 = arith.constant dense<0.000000e+00> : vector<24x64xf32>
    %104 = tpu.matmul %103, %85, %cst_79 {dimension_numbers = #tpu.dot_dimension_numbers<[1], [0], [0], [1], [0, 0, 1, 1], [], []>} : vector<24x64xbf16>, vector<64x64xbf16>, vector<24x64xf32> -> vector<24x64xf32>
    %c0_80 = arith.constant 0 : index
    %c0_81 = arith.constant 0 : index
    %105 = vector.load %arg35[%c0_80, %c0_81] : memref<24x64xf32, #tpu.memory_space<vmem>>, vector<24x64xf32>
    tpu.vector_store %arg35[%c0_80, %c0_81], %104 {strides = array<i32>} : memref<24x64xf32, #tpu.memory_space<vmem>>, vector<24x64xf32>,
    %c0_i32 = arith.constant 0 : i32
    %c64_i32 = arith.constant 64 : i32
    %106 = arith.addi %c0_i32, %c64_i32 : i32
    %c1_i32 = arith.constant 1 : i32
    scf.for %arg38 = %c0_i32 to %106 step %c1_i32  : i32 {
      %179 = arith.index_cast %arg38 : i32 to index
      %180 = memref.load %arg1[%179] : memref<64xi32, #tpu.memory_space<smem>>
      %181 = arith.index_cast %arg38 : i32 to index
      %182 = memref.load %arg2[%181] : memref<64xi32, #tpu.memory_space<smem>>
      %183 = arith.index_cast %180 : i32 to index
      %c0_115 = arith.constant 0 : index
      %184 = vector.load %arg34[%183, %c0_115] : memref<16x64xf32, #tpu.memory_space<vmem>>, vector<1x64xf32>
      %185 = arith.index_cast %182 : i32 to index
      %c0_116 = arith.constant 0 : index
      %186 = vector.load %arg35[%185, %c0_116] : memref<24x64xf32, #tpu.memory_space<vmem>>, vector<1x64xf32>
      %187 = arith.addf %184, %186 : vector<1x64xf32>
      %188 = arith.addf %187, %86 : vector<1x64xf32>
      %189 = arith.index_cast %arg38 : i32 to index
      %c0_117 = arith.constant 0 : index
      %190 = vector.load %arg36[%189, %c0_117] : memref<64x64xf32, #tpu.memory_space<vmem>>, vector<1x64xf32>
      tpu.vector_store %arg36[%189, %c0_117], %188 {strides = array<i32>} : memref<64x64xf32, #tpu.memory_space<vmem>>, vector<1x64xf32>,
    }
    %c64_i32_82 = arith.constant 64 : i32
    %c0_83 = arith.constant 0 : index
    %c0_84 = arith.constant 0 : index
    %107 = vector.load %arg36[%c0_83, %c0_84] : memref<64x64xf32, #tpu.memory_space<vmem>>, vector<64x64xf32>
    %cst_85 = arith.constant dense<0.000000e+00> : vector<64xf32>
    %108 = vector.multi_reduction <add>, %107, %cst_85 [1] : vector<64x64xf32> to vector<64xf32>
    %109 = vector.shape_cast %108 : vector<64xf32> to vector<64x1xf32>
    %cst_86 = arith.constant 6.400000e+01 : f32
    %110 = vector.broadcast %cst_86 : f32 to vector<64x1xf32>
    %111 = arith.divf %109, %110 : vector<64x1xf32>
    %112 = vector.broadcast %111 : vector<64x1xf32> to vector<64x64xf32>
    %113 = arith.subf %107, %112 : vector<64x64xf32>
    %114 = arith.mulf %113, %113 : vector<64x64xf32>
    %cst_87 = arith.constant dense<0.000000e+00> : vector<64xf32>
    %115 = vector.multi_reduction <add>, %114, %cst_87 [1] : vector<64x64xf32> to vector<64xf32>
    %116 = vector.shape_cast %115 : vector<64xf32> to vector<64x1xf32>
    %cst_88 = arith.constant 6.400000e+01 : f32
    %117 = vector.broadcast %cst_88 : f32 to vector<64x1xf32>
    %118 = arith.divf %116, %117 : vector<64x1xf32>
    %119 = vector.broadcast %111 : vector<64x1xf32> to vector<64x64xf32>
    %120 = arith.subf %107, %119 : vector<64x64xf32>
    %cst_89 = arith.constant 9.99999974E-6 : f32
    %121 = vector.broadcast %cst_89 : f32 to vector<64x1xf32>
    %122 = arith.addf %118, %121 : vector<64x1xf32>
    %123 = math.rsqrt %122 : vector<64x1xf32>
    %124 = vector.broadcast %123 : vector<64x1xf32> to vector<64x64xf32>
    %125 = arith.mulf %120, %124 : vector<64x64xf32>
    %126 = vector.broadcast %87 : vector<1x64xf32> to vector<64x64xf32>
    %127 = arith.mulf %125, %126 : vector<64x64xf32>
    %128 = vector.broadcast %88 : vector<1x64xf32> to vector<64x64xf32>
    %129 = arith.addf %127, %128 : vector<64x64xf32>
    %cst_90 = arith.constant 0.000000e+00 : f32
    %130 = vector.broadcast %cst_90 : f32 to vector<64x64xf32>
    %131 = arith.maximumf %129, %130 : vector<64x64xf32>
    %132 = arith.truncf %131 : vector<64x64xf32> to vector<64x64xbf16>
    %cst_91 = arith.constant dense<0.000000e+00> : vector<64x64xf32>
    %133 = tpu.matmul %132, %89, %cst_91 {dimension_numbers = #tpu.dot_dimension_numbers<[1], [0], [0], [1], [0, 0, 1, 1], [], []>} : vector<64x64xbf16>, vector<64x64xbf16>, vector<64x64xf32> -> vector<64x64xf32>
    %134 = vector.broadcast %90 : vector<1x64xf32> to vector<64x64xf32>
    %135 = arith.addf %133, %134 : vector<64x64xf32>
    %c0_92 = arith.constant 0 : index
    %c0_93 = arith.constant 0 : index
    %136 = vector.load %arg36[%c0_92, %c0_93] : memref<64x64xf32, #tpu.memory_space<vmem>>, vector<64x64xf32>
    tpu.vector_store %arg36[%c0_92, %c0_93], %135 {strides = array<i32>} : memref<64x64xf32, #tpu.memory_space<vmem>>, vector<64x64xf32>,
    %cst_94 = arith.constant 0.000000e+00 : f32
    %137 = vector.broadcast %cst_94 : f32 to vector<16x64xf32>
    %c0_95 = arith.constant 0 : index
    %c0_96 = arith.constant 0 : index
    %138 = vector.load %arg37[%c0_95, %c0_96] : memref<16x64xf32, #tpu.memory_space<vmem>>, vector<16x64xf32>
    tpu.vector_store %arg37[%c0_95, %c0_96], %137 {strides = array<i32>} : memref<16x64xf32, #tpu.memory_space<vmem>>, vector<16x64xf32>,
    %c0_i32_97 = arith.constant 0 : i32
    %c64_i32_98 = arith.constant 64 : i32
    %139 = arith.addi %c0_i32_97, %c64_i32_98 : i32
    %c1_i32_99 = arith.constant 1 : i32
    scf.for %arg38 = %c0_i32_97 to %139 step %c1_i32_99  : i32 {
      %179 = arith.index_cast %arg38 : i32 to index
      %180 = memref.load %arg1[%179] : memref<64xi32, #tpu.memory_space<smem>>
      %181 = arith.index_cast %180 : i32 to index
      %c0_115 = arith.constant 0 : index
      %182 = vector.load %arg37[%181, %c0_115] : memref<16x64xf32, #tpu.memory_space<vmem>>, vector<1x64xf32>
      %183 = arith.index_cast %arg38 : i32 to index
      %c0_116 = arith.constant 0 : index
      %184 = vector.load %arg36[%183, %c0_116] : memref<64x64xf32, #tpu.memory_space<vmem>>, vector<1x64xf32>
      %185 = arith.addf %182, %184 : vector<1x64xf32>
      %186 = arith.index_cast %180 : i32 to index
      %c0_117 = arith.constant 0 : index
      %187 = vector.load %arg37[%186, %c0_117] : memref<16x64xf32, #tpu.memory_space<vmem>>, vector<1x64xf32>
      tpu.vector_store %arg37[%186, %c0_117], %185 {strides = array<i32>} : memref<16x64xf32, #tpu.memory_space<vmem>>, vector<1x64xf32>,
    }
    %c64_i32_100 = arith.constant 64 : i32
    %c0_101 = arith.constant 0 : index
    %c0_102 = arith.constant 0 : index
    %140 = vector.load %arg37[%c0_101, %c0_102] : memref<16x64xf32, #tpu.memory_space<vmem>>, vector<16x64xf32>
    %cst_103 = arith.constant dense<0.000000e+00> : vector<16xf32>
    %141 = vector.multi_reduction <add>, %140, %cst_103 [1] : vector<16x64xf32> to vector<16xf32>
    %142 = vector.shape_cast %141 : vector<16xf32> to vector<16x1xf32>
    %cst_104 = arith.constant 6.400000e+01 : f32
    %143 = vector.broadcast %cst_104 : f32 to vector<16x1xf32>
    %144 = arith.divf %142, %143 : vector<16x1xf32>
    %145 = vector.broadcast %144 : vector<16x1xf32> to vector<16x64xf32>
    %146 = arith.subf %140, %145 : vector<16x64xf32>
    %147 = arith.mulf %146, %146 : vector<16x64xf32>
    %cst_105 = arith.constant dense<0.000000e+00> : vector<16xf32>
    %148 = vector.multi_reduction <add>, %147, %cst_105 [1] : vector<16x64xf32> to vector<16xf32>
    %149 = vector.shape_cast %148 : vector<16xf32> to vector<16x1xf32>
    %cst_106 = arith.constant 6.400000e+01 : f32
    %150 = vector.broadcast %cst_106 : f32 to vector<16x1xf32>
    %151 = arith.divf %149, %150 : vector<16x1xf32>
    %152 = vector.broadcast %144 : vector<16x1xf32> to vector<16x64xf32>
    %153 = arith.subf %140, %152 : vector<16x64xf32>
    %cst_107 = arith.constant 9.99999974E-6 : f32
    %154 = vector.broadcast %cst_107 : f32 to vector<16x1xf32>
    %155 = arith.addf %151, %154 : vector<16x1xf32>
    %156 = math.rsqrt %155 : vector<16x1xf32>
    %157 = vector.broadcast %156 : vector<16x1xf32> to vector<16x64xf32>
    %158 = arith.mulf %153, %157 : vector<16x64xf32>
    %159 = vector.broadcast %91 : vector<1x64xf32> to vector<16x64xf32>
    %160 = arith.mulf %158, %159 : vector<16x64xf32>
    %161 = vector.broadcast %92 : vector<1x64xf32> to vector<16x64xf32>
    %162 = arith.addf %160, %161 : vector<16x64xf32>
    %163 = arith.truncf %162 : vector<16x64xf32> to vector<16x64xbf16>
    %cst_108 = arith.constant dense<0.000000e+00> : vector<16x64xf32>
    %164 = tpu.matmul %163, %93, %cst_108 {dimension_numbers = #tpu.dot_dimension_numbers<[1], [0], [0], [1], [0, 0, 1, 1], [], []>} : vector<16x64xbf16>, vector<64x64xbf16>, vector<16x64xf32> -> vector<16x64xf32>
    %165 = arith.truncf %40 : vector<16x64xf32> to vector<16x64xbf16>
    %cst_109 = arith.constant dense<0.000000e+00> : vector<16x64xf32>
    %166 = tpu.matmul %165, %94, %cst_109 {dimension_numbers = #tpu.dot_dimension_numbers<[1], [0], [0], [1], [0, 0, 1, 1], [], []>} : vector<16x64xbf16>, vector<64x64xbf16>, vector<16x64xf32> -> vector<16x64xf32>
    %167 = arith.addf %164, %166 : vector<16x64xf32>
    %168 = vector.broadcast %95 : vector<1x64xf32> to vector<16x64xf32>
    %169 = arith.addf %167, %168 : vector<16x64xf32>
    %cst_110 = arith.constant 0.000000e+00 : f32
    %170 = vector.broadcast %cst_110 : f32 to vector<16x64xf32>
    %171 = arith.maximumf %169, %170 : vector<16x64xf32>
    %172 = arith.truncf %171 : vector<16x64xf32> to vector<16x64xbf16>
    %cst_111 = arith.constant dense<0.000000e+00> : vector<16x64xf32>
    %173 = tpu.matmul %172, %96, %cst_111 {dimension_numbers = #tpu.dot_dimension_numbers<[1], [0], [0], [1], [0, 0, 1, 1], [], []>} : vector<16x64xbf16>, vector<64x64xbf16>, vector<16x64xf32> -> vector<16x64xf32>
    %174 = vector.broadcast %97 : vector<1x64xf32> to vector<16x64xf32>
    %175 = arith.addf %173, %174 : vector<16x64xf32>
    %cst_112 = arith.constant 0.000000e+00 : f32
    %176 = vector.broadcast %cst_112 : f32 to vector<16x64xf32>
    %177 = arith.maximumf %175, %176 : vector<16x64xf32>
    %c0_113 = arith.constant 0 : index
    %c0_114 = arith.constant 0 : index
    %178 = vector.load %arg32[%c0_113, %c0_114] : memref<16x64xf32, #tpu.memory_space<vmem>>, vector<16x64xf32>
    tpu.vector_store %arg32[%c0_113, %c0_114], %177 {strides = array<i32>} : memref<16x64xf32, #tpu.memory_space<vmem>>, vector<16x64xf32>,
    return
  }
  func.func @transform_0(%arg0: i32, %arg1: memref<64xi32, #tpu.memory_space<smem>>, %arg2: memref<64xi32, #tpu.memory_space<smem>>) -> (i32, i32) {
    %c0_i32 = arith.constant 0 : i32
    %c0_i32_0 = arith.constant 0 : i32
    %c0_i32_1 = arith.constant 0 : i32
    return %c0_i32, %c0_i32_0 : i32, i32
  }
  func.func @transform_1(%arg0: i32, %arg1: memref<64xi32, #tpu.memory_space<smem>>, %arg2: memref<64xi32, #tpu.memory_space<smem>>) -> (i32, i32) {
    %c0_i32 = arith.constant 0 : i32
    %c0_i32_0 = arith.constant 0 : i32
    %c0_i32_1 = arith.constant 0 : i32
    return %c0_i32, %c0_i32_0 : i32, i32
  }
  func.func @transform_2(%arg0: i32, %arg1: memref<64xi32, #tpu.memory_space<smem>>, %arg2: memref<64xi32, #tpu.memory_space<smem>>) -> (i32, i32) {
    %c0_i32 = arith.constant 0 : i32
    %c0_i32_0 = arith.constant 0 : i32
    %c0_i32_1 = arith.constant 0 : i32
    return %c0_i32, %c0_i32_0 : i32, i32
  }
  func.func @transform_3(%arg0: i32, %arg1: memref<64xi32, #tpu.memory_space<smem>>, %arg2: memref<64xi32, #tpu.memory_space<smem>>) -> (i32, i32) {
    %c0_i32 = arith.constant 0 : i32
    %c0_i32_0 = arith.constant 0 : i32
    %c0_i32_1 = arith.constant 0 : i32
    return %c0_i32, %c0_i32_0 : i32, i32
  }
  func.func @transform_4(%arg0: i32, %arg1: memref<64xi32, #tpu.memory_space<smem>>, %arg2: memref<64xi32, #tpu.memory_space<smem>>) -> (i32, i32) {
    %c0_i32 = arith.constant 0 : i32
    %c0_i32_0 = arith.constant 0 : i32
    %c0_i32_1 = arith.constant 0 : i32
    return %c0_i32, %c0_i32_0 : i32, i32
  }
  func.func @transform_5(%arg0: i32, %arg1: memref<64xi32, #tpu.memory_space<smem>>, %arg2: memref<64xi32, #tpu.memory_space<smem>>) -> (i32, i32) {
    %c0_i32 = arith.constant 0 : i32
    %c0_i32_0 = arith.constant 0 : i32
    %c0_i32_1 = arith.constant 0 : i32
    return %c0_i32, %c0_i32_0 : i32, i32
  }
  func.func @transform_6(%arg0: i32, %arg1: memref<64xi32, #tpu.memory_space<smem>>, %arg2: memref<64xi32, #tpu.memory_space<smem>>) -> (i32, i32) {
    %c0_i32 = arith.constant 0 : i32
    %c0_i32_0 = arith.constant 0 : i32
    %c0_i32_1 = arith.constant 0 : i32
    return %c0_i32, %c0_i32_0 : i32, i32
  }
  func.func @transform_7(%arg0: i32, %arg1: memref<64xi32, #tpu.memory_space<smem>>, %arg2: memref<64xi32, #tpu.memory_space<smem>>) -> (i32, i32) {
    %c0_i32 = arith.constant 0 : i32
    %c0_i32_0 = arith.constant 0 : i32
    %c0_i32_1 = arith.constant 0 : i32
    return %c0_i32, %c0_i32_0 : i32, i32
  }
  func.func @transform_8(%arg0: i32, %arg1: memref<64xi32, #tpu.memory_space<smem>>, %arg2: memref<64xi32, #tpu.memory_space<smem>>) -> (i32, i32) {
    %c0_i32 = arith.constant 0 : i32
    %c0_i32_0 = arith.constant 0 : i32
    %c0_i32_1 = arith.constant 0 : i32
    return %c0_i32, %c0_i32_0 : i32, i32
  }
  func.func @transform_9(%arg0: i32, %arg1: memref<64xi32, #tpu.memory_space<smem>>, %arg2: memref<64xi32, #tpu.memory_space<smem>>) -> (i32, i32) {
    %c0_i32 = arith.constant 0 : i32
    %c0_i32_0 = arith.constant 0 : i32
    %c0_i32_1 = arith.constant 0 : i32
    return %c0_i32, %c0_i32_0 : i32, i32
  }
  func.func @transform_10(%arg0: i32, %arg1: memref<64xi32, #tpu.memory_space<smem>>, %arg2: memref<64xi32, #tpu.memory_space<smem>>) -> (i32, i32) {
    %c0_i32 = arith.constant 0 : i32
    %c0_i32_0 = arith.constant 0 : i32
    %c0_i32_1 = arith.constant 0 : i32
    return %c0_i32, %c0_i32_0 : i32, i32
  }
  func.func @transform_11(%arg0: i32, %arg1: memref<64xi32, #tpu.memory_space<smem>>, %arg2: memref<64xi32, #tpu.memory_space<smem>>) -> (i32, i32) {
    %c0_i32 = arith.constant 0 : i32
    %c0_i32_0 = arith.constant 0 : i32
    %c0_i32_1 = arith.constant 0 : i32
    return %c0_i32, %c0_i32_0 : i32, i32
  }
  func.func @transform_12(%arg0: i32, %arg1: memref<64xi32, #tpu.memory_space<smem>>, %arg2: memref<64xi32, #tpu.memory_space<smem>>) -> (i32, i32) {
    %c0_i32 = arith.constant 0 : i32
    %c0_i32_0 = arith.constant 0 : i32
    %c0_i32_1 = arith.constant 0 : i32
    return %c0_i32, %c0_i32_0 : i32, i32
  }
  func.func @transform_13(%arg0: i32, %arg1: memref<64xi32, #tpu.memory_space<smem>>, %arg2: memref<64xi32, #tpu.memory_space<smem>>) -> (i32, i32) {
    %c0_i32 = arith.constant 0 : i32
    %c0_i32_0 = arith.constant 0 : i32
    %c0_i32_1 = arith.constant 0 : i32
    return %c0_i32, %c0_i32_0 : i32, i32
  }
  func.func @transform_14(%arg0: i32, %arg1: memref<64xi32, #tpu.memory_space<smem>>, %arg2: memref<64xi32, #tpu.memory_space<smem>>) -> (i32, i32) {
    %c0_i32 = arith.constant 0 : i32
    %c0_i32_0 = arith.constant 0 : i32
    %c0_i32_1 = arith.constant 0 : i32
    return %c0_i32, %c0_i32_0 : i32, i32
  }
  func.func @transform_15(%arg0: i32, %arg1: memref<64xi32, #tpu.memory_space<smem>>, %arg2: memref<64xi32, #tpu.memory_space<smem>>) -> (i32, i32) {
    %c0_i32 = arith.constant 0 : i32
    %c0_i32_0 = arith.constant 0 : i32
    %c0_i32_1 = arith.constant 0 : i32
    return %c0_i32, %c0_i32_0 : i32, i32
  }
  func.func @transform_16(%arg0: i32, %arg1: memref<64xi32, #tpu.memory_space<smem>>, %arg2: memref<64xi32, #tpu.memory_space<smem>>) -> (i32, i32) {
    %c0_i32 = arith.constant 0 : i32
    %c0_i32_0 = arith.constant 0 : i32
    %c0_i32_1 = arith.constant 0 : i32
    return %c0_i32, %c0_i32_0 : i32, i32
  }
  func.func @transform_17(%arg0: i32, %arg1: memref<64xi32, #tpu.memory_space<smem>>, %arg2: memref<64xi32, #tpu.memory_space<smem>>) -> (i32, i32) {
    %c0_i32 = arith.constant 0 : i32
    %c0_i32_0 = arith.constant 0 : i32
    %c0_i32_1 = arith.constant 0 : i32
    return %c0_i32, %c0_i32_0 : i32, i32
  }
  func.func @transform_18(%arg0: i32, %arg1: memref<64xi32, #tpu.memory_space<smem>>, %arg2: memref<64xi32, #tpu.memory_space<smem>>) -> (i32, i32) {
    %c0_i32 = arith.constant 0 : i32
    %c0_i32_0 = arith.constant 0 : i32
    %c0_i32_1 = arith.constant 0 : i32
    return %c0_i32, %c0_i32_0 : i32, i32
  }
  func.func @transform_19(%arg0: i32, %arg1: memref<64xi32, #tpu.memory_space<smem>>, %arg2: memref<64xi32, #tpu.memory_space<smem>>) -> (i32, i32) {
    %c0_i32 = arith.constant 0 : i32
    %c0_i32_0 = arith.constant 0 : i32
    %c0_i32_1 = arith.constant 0 : i32
    return %c0_i32, %c0_i32_0 : i32, i32
  }
  func.func @transform_20(%arg0: i32, %arg1: memref<64xi32, #tpu.memory_space<smem>>, %arg2: memref<64xi32, #tpu.memory_space<smem>>) -> (i32, i32) {
    %c0_i32 = arith.constant 0 : i32
    %c0_i32_0 = arith.constant 0 : i32
    %c0_i32_1 = arith.constant 0 : i32
    return %c0_i32, %c0_i32_0 : i32, i32
  }
  func.func @transform_21(%arg0: i32, %arg1: memref<64xi32, #tpu.memory_space<smem>>, %arg2: memref<64xi32, #tpu.memory_space<smem>>) -> (i32, i32) {
    %c0_i32 = arith.constant 0 : i32
    %c0_i32_0 = arith.constant 0 : i32
    %c0_i32_1 = arith.constant 0 : i32
    return %c0_i32, %c0_i32_0 : i32, i32
  }
  func.func @transform_22(%arg0: i32, %arg1: memref<64xi32, #tpu.memory_space<smem>>, %arg2: memref<64xi32, #tpu.memory_space<smem>>) -> (i32, i32) {
    %c0_i32 = arith.constant 0 : i32
    %c0_i32_0 = arith.constant 0 : i32
    %c0_i32_1 = arith.constant 0 : i32
    return %c0_i32, %c0_i32_0 : i32, i32
  }
  func.func @transform_23(%arg0: i32, %arg1: memref<64xi32, #tpu.memory_space<smem>>, %arg2: memref<64xi32, #tpu.memory_space<smem>>) -> (i32, i32) {
    %c0_i32 = arith.constant 0 : i32
    %c0_i32_0 = arith.constant 0 : i32
    %c0_i32_1 = arith.constant 0 : i32
    return %c0_i32, %c0_i32_0 : i32, i32
  }
  func.func @transform_24(%arg0: i32, %arg1: memref<64xi32, #tpu.memory_space<smem>>, %arg2: memref<64xi32, #tpu.memory_space<smem>>) -> (i32, i32) {
    %c0_i32 = arith.constant 0 : i32
    %c0_i32_0 = arith.constant 0 : i32
    %c0_i32_1 = arith.constant 0 : i32
    return %c0_i32, %c0_i32_0 : i32, i32
  }
  func.func @transform_25(%arg0: i32, %arg1: memref<64xi32, #tpu.memory_space<smem>>, %arg2: memref<64xi32, #tpu.memory_space<smem>>) -> (i32, i32) {
    %c0_i32 = arith.constant 0 : i32
    %c0_i32_0 = arith.constant 0 : i32
    %c0_i32_1 = arith.constant 0 : i32
    return %c0_i32, %c0_i32_0 : i32, i32
  }
  func.func @transform_26(%arg0: i32, %arg1: memref<64xi32, #tpu.memory_space<smem>>, %arg2: memref<64xi32, #tpu.memory_space<smem>>) -> (i32, i32) {
    %c0_i32 = arith.constant 0 : i32
    %c0_i32_0 = arith.constant 0 : i32
    %c0_i32_1 = arith.constant 0 : i32
    return %c0_i32, %c0_i32_0 : i32, i32
  }
  func.func @transform_27(%arg0: i32, %arg1: memref<64xi32, #tpu.memory_space<smem>>, %arg2: memref<64xi32, #tpu.memory_space<smem>>) -> (i32, i32) {
    %c0_i32 = arith.constant 0 : i32
    %c0_i32_0 = arith.constant 0 : i32
    %c0_i32_1 = arith.constant 0 : i32
    return %c0_i32, %c0_i32_0 : i32, i32
  }
  func.func @transform_28(%arg0: i32, %arg1: memref<64xi32, #tpu.memory_space<smem>>, %arg2: memref<64xi32, #tpu.memory_space<smem>>) -> (i32, i32) {
    %c0_i32 = arith.constant 0 : i32
    %c0_i32_0 = arith.constant 0 : i32
    %c0_i32_1 = arith.constant 0 : i32
    return %c0_i32, %c0_i32_0 : i32, i32
  }
  func.func @transform_29(%arg0: i32, %arg1: memref<64xi32, #tpu.memory_space<smem>>, %arg2: memref<64xi32, #tpu.memory_space<smem>>) -> (i32, i32) {
    %c0_i32 = arith.constant 0 : i32
    %c0_i32_0 = arith.constant 0 : i32
    %c0_i32_1 = arith.constant 0 : i32
    return %c0_i32, %c0_i32_0 : i32, i32
  }
  func.func @transform_30(%arg0: i32, %arg1: memref<64xi32, #tpu.memory_space<smem>>, %arg2: memref<64xi32, #tpu.memory_space<smem>>) -> (i32, i32) {
    %c0_i32 = arith.constant 0 : i32
    %c0_i32_0 = arith.constant 0 : i32
    %c0_i32_1 = arith.constant 0 : i32
    return %c0_i32, %c0_i32_0 : i32, i32
  }
}

module attributes {stable_mosaic.version = 11 : i64} {
  func.func @c_to_v_and_head_kernel(%arg0: i32, %arg1: memref<64xi32, #tpu.memory_space<smem>>, %arg2: memref<64xi32, #tpu.memory_space<smem>>, %arg3: memref<16x64xf32, #tpu.memory_space<vmem>>, %arg4: memref<24x64xf32, #tpu.memory_space<vmem>>, %arg5: memref<64x64xbf16, #tpu.memory_space<vmem>>, %arg6: memref<1x64xf32, #tpu.memory_space<vmem>>, %arg7: memref<64x64xbf16, #tpu.memory_space<vmem>>, %arg8: memref<1x64xf32, #tpu.memory_space<vmem>>, %arg9: memref<1x64xf32, #tpu.memory_space<vmem>>, %arg10: memref<1x64xf32, #tpu.memory_space<vmem>>, %arg11: memref<64x64xbf16, #tpu.memory_space<vmem>>, %arg12: memref<1x64xf32, #tpu.memory_space<vmem>>, %arg13: memref<1x64xf32, #tpu.memory_space<vmem>>, %arg14: memref<1x64xf32, #tpu.memory_space<vmem>>, %arg15: memref<64x64xbf16, #tpu.memory_space<vmem>>, %arg16: memref<64x64xbf16, #tpu.memory_space<vmem>>, %arg17: memref<1x64xf32, #tpu.memory_space<vmem>>, %arg18: memref<64x64xbf16, #tpu.memory_space<vmem>>, %arg19: memref<1x64xf32, #tpu.memory_space<vmem>>, %arg20: memref<64x64xbf16, #tpu.memory_space<vmem>>, %arg21: memref<1x64xf32, #tpu.memory_space<vmem>>, %arg22: memref<1x64xf32, #tpu.memory_space<vmem>>, %arg23: memref<24x1xf32, #tpu.memory_space<vmem>>, %arg24: memref<24x64xf32, #tpu.memory_space<vmem>>, %arg25: memref<16x64xf32, #tpu.memory_space<vmem>>, %arg26: memref<64x64xf32, #tpu.memory_space<vmem>>, %arg27: memref<24x64xf32, #tpu.memory_space<vmem>>) attributes {dimension_semantics = [#tpu.dimension_semantics<arbitrary>], iteration_bounds = array<i64: 1>, scalar_prefetch = 2 : i64, scratch_operands = 4 : i64, tpu.core_type = #tpu.core_type<tc>, window_params = [{pipeline_mode = #tpu.pipeline_mode<synchronous>, transform_indices = @transform_0, window_bounds = array<i64: 16, 64>}, {pipeline_mode = #tpu.pipeline_mode<synchronous>, transform_indices = @transform_1, window_bounds = array<i64: 24, 64>}, {pipeline_mode = #tpu.pipeline_mode<synchronous>, transform_indices = @transform_2, window_bounds = array<i64: 64, 64>}, {pipeline_mode = #tpu.pipeline_mode<synchronous>, transform_indices = @transform_3, window_bounds = array<i64: 1, 64>}, {pipeline_mode = #tpu.pipeline_mode<synchronous>, transform_indices = @transform_4, window_bounds = array<i64: 64, 64>}, {pipeline_mode = #tpu.pipeline_mode<synchronous>, transform_indices = @transform_5, window_bounds = array<i64: 1, 64>}, {pipeline_mode = #tpu.pipeline_mode<synchronous>, transform_indices = @transform_6, window_bounds = array<i64: 1, 64>}, {pipeline_mode = #tpu.pipeline_mode<synchronous>, transform_indices = @transform_7, window_bounds = array<i64: 1, 64>}, {pipeline_mode = #tpu.pipeline_mode<synchronous>, transform_indices = @transform_8, window_bounds = array<i64: 64, 64>}, {pipeline_mode = #tpu.pipeline_mode<synchronous>, transform_indices = @transform_9, window_bounds = array<i64: 1, 64>}, {pipeline_mode = #tpu.pipeline_mode<synchronous>, transform_indices = @transform_10, window_bounds = array<i64: 1, 64>}, {pipeline_mode = #tpu.pipeline_mode<synchronous>, transform_indices = @transform_11, window_bounds = array<i64: 1, 64>}, {pipeline_mode = #tpu.pipeline_mode<synchronous>, transform_indices = @transform_12, window_bounds = array<i64: 64, 64>}, {pipeline_mode = #tpu.pipeline_mode<synchronous>, transform_indices = @transform_13, window_bounds = array<i64: 64, 64>}, {pipeline_mode = #tpu.pipeline_mode<synchronous>, transform_indices = @transform_14, window_bounds = array<i64: 1, 64>}, {pipeline_mode = #tpu.pipeline_mode<synchronous>, transform_indices = @transform_15, window_bounds = array<i64: 64, 64>}, {pipeline_mode = #tpu.pipeline_mode<synchronous>, transform_indices = @transform_16, window_bounds = array<i64: 1, 64>}, {pipeline_mode = #tpu.pipeline_mode<synchronous>, transform_indices = @transform_17, window_bounds = array<i64: 64, 64>}, {pipeline_mode = #tpu.pipeline_mode<synchronous>, transform_indices = @transform_18, window_bounds = array<i64: 1, 64>}, {pipeline_mode = #tpu.pipeline_mode<synchronous>, transform_indices = @transform_19, window_bounds = array<i64: 1, 64>}, {pipeline_mode = #tpu.pipeline_mode<synchronous>, transform_indices = @transform_20, window_bounds = array<i64: 24, 1>}]} {
    %c0 = arith.constant 0 : index
    %c0_0 = arith.constant 0 : index
    %0 = vector.load %arg3[%c0, %c0_0] : memref<16x64xf32, #tpu.memory_space<vmem>>, vector<16x64xf32>
    %c0_1 = arith.constant 0 : index
    %c0_2 = arith.constant 0 : index
    %1 = vector.load %arg4[%c0_1, %c0_2] : memref<24x64xf32, #tpu.memory_space<vmem>>, vector<24x64xf32>
    %c0_3 = arith.constant 0 : index
    %c0_4 = arith.constant 0 : index
    %2 = vector.load %arg5[%c0_3, %c0_4] : memref<64x64xbf16, #tpu.memory_space<vmem>>, vector<64x64xbf16>
    %c0_5 = arith.constant 0 : index
    %c0_6 = arith.constant 0 : index
    %3 = vector.load %arg6[%c0_5, %c0_6] : memref<1x64xf32, #tpu.memory_space<vmem>>, vector<1x64xf32>
    %c0_7 = arith.constant 0 : index
    %c0_8 = arith.constant 0 : index
    %4 = vector.load %arg7[%c0_7, %c0_8] : memref<64x64xbf16, #tpu.memory_space<vmem>>, vector<64x64xbf16>
    %c0_9 = arith.constant 0 : index
    %c0_10 = arith.constant 0 : index
    %5 = vector.load %arg8[%c0_9, %c0_10] : memref<1x64xf32, #tpu.memory_space<vmem>>, vector<1x64xf32>
    %c0_11 = arith.constant 0 : index
    %c0_12 = arith.constant 0 : index
    %6 = vector.load %arg9[%c0_11, %c0_12] : memref<1x64xf32, #tpu.memory_space<vmem>>, vector<1x64xf32>
    %c0_13 = arith.constant 0 : index
    %c0_14 = arith.constant 0 : index
    %7 = vector.load %arg10[%c0_13, %c0_14] : memref<1x64xf32, #tpu.memory_space<vmem>>, vector<1x64xf32>
    %c0_15 = arith.constant 0 : index
    %c0_16 = arith.constant 0 : index
    %8 = vector.load %arg11[%c0_15, %c0_16] : memref<64x64xbf16, #tpu.memory_space<vmem>>, vector<64x64xbf16>
    %c0_17 = arith.constant 0 : index
    %c0_18 = arith.constant 0 : index
    %9 = vector.load %arg12[%c0_17, %c0_18] : memref<1x64xf32, #tpu.memory_space<vmem>>, vector<1x64xf32>
    %c0_19 = arith.constant 0 : index
    %c0_20 = arith.constant 0 : index
    %10 = vector.load %arg13[%c0_19, %c0_20] : memref<1x64xf32, #tpu.memory_space<vmem>>, vector<1x64xf32>
    %c0_21 = arith.constant 0 : index
    %c0_22 = arith.constant 0 : index
    %11 = vector.load %arg14[%c0_21, %c0_22] : memref<1x64xf32, #tpu.memory_space<vmem>>, vector<1x64xf32>
    %c0_23 = arith.constant 0 : index
    %c0_24 = arith.constant 0 : index
    %12 = vector.load %arg15[%c0_23, %c0_24] : memref<64x64xbf16, #tpu.memory_space<vmem>>, vector<64x64xbf16>
    %c0_25 = arith.constant 0 : index
    %c0_26 = arith.constant 0 : index
    %13 = vector.load %arg16[%c0_25, %c0_26] : memref<64x64xbf16, #tpu.memory_space<vmem>>, vector<64x64xbf16>
    %c0_27 = arith.constant 0 : index
    %c0_28 = arith.constant 0 : index
    %14 = vector.load %arg17[%c0_27, %c0_28] : memref<1x64xf32, #tpu.memory_space<vmem>>, vector<1x64xf32>
    %c0_29 = arith.constant 0 : index
    %c0_30 = arith.constant 0 : index
    %15 = vector.load %arg18[%c0_29, %c0_30] : memref<64x64xbf16, #tpu.memory_space<vmem>>, vector<64x64xbf16>
    %c0_31 = arith.constant 0 : index
    %c0_32 = arith.constant 0 : index
    %16 = vector.load %arg19[%c0_31, %c0_32] : memref<1x64xf32, #tpu.memory_space<vmem>>, vector<1x64xf32>
    %17 = arith.truncf %1 : vector<24x64xf32> to vector<24x64xbf16>
    %cst = arith.constant dense<0.000000e+00> : vector<24x64xf32>
    %18 = tpu.matmul %17, %2, %cst {dimension_numbers = #tpu.dot_dimension_numbers<[1], [0], [0], [1], [0, 0, 1, 1], [], []>} : vector<24x64xbf16>, vector<64x64xbf16>, vector<24x64xf32> -> vector<24x64xf32>
    %19 = vector.broadcast %3 : vector<1x64xf32> to vector<24x64xf32>
    %20 = arith.addf %18, %19 : vector<24x64xf32>
    %c0_33 = arith.constant 0 : index
    %c0_34 = arith.constant 0 : index
    %21 = vector.load %arg24[%c0_33, %c0_34] : memref<24x64xf32, #tpu.memory_space<vmem>>, vector<24x64xf32>
    tpu.vector_store %arg24[%c0_33, %c0_34], %20 {strides = array<i32>} : memref<24x64xf32, #tpu.memory_space<vmem>>, vector<24x64xf32>,
    %22 = arith.truncf %0 : vector<16x64xf32> to vector<16x64xbf16>
    %cst_35 = arith.constant dense<0.000000e+00> : vector<16x64xf32>
    %23 = tpu.matmul %22, %4, %cst_35 {dimension_numbers = #tpu.dot_dimension_numbers<[1], [0], [0], [1], [0, 0, 1, 1], [], []>} : vector<16x64xbf16>, vector<64x64xbf16>, vector<16x64xf32> -> vector<16x64xf32>
    %c0_36 = arith.constant 0 : index
    %c0_37 = arith.constant 0 : index
    %24 = vector.load %arg25[%c0_36, %c0_37] : memref<16x64xf32, #tpu.memory_space<vmem>>, vector<16x64xf32>
    tpu.vector_store %arg25[%c0_36, %c0_37], %23 {strides = array<i32>} : memref<16x64xf32, #tpu.memory_space<vmem>>, vector<16x64xf32>,
    %c0_i32 = arith.constant 0 : i32
    %c64_i32 = arith.constant 64 : i32
    %25 = arith.addi %c0_i32, %c64_i32 : i32
    %c1_i32 = arith.constant 1 : i32
    scf.for %arg28 = %c0_i32 to %25 step %c1_i32  : i32 {
      %111 = arith.index_cast %arg28 : i32 to index
      %112 = memref.load %arg2[%111] : memref<64xi32, #tpu.memory_space<smem>>
      %113 = arith.index_cast %arg28 : i32 to index
      %114 = memref.load %arg1[%113] : memref<64xi32, #tpu.memory_space<smem>>
      %115 = arith.index_cast %112 : i32 to index
      %c0_80 = arith.constant 0 : index
      %116 = vector.load %arg24[%115, %c0_80] : memref<24x64xf32, #tpu.memory_space<vmem>>, vector<1x64xf32>
      %117 = arith.index_cast %114 : i32 to index
      %c0_81 = arith.constant 0 : index
      %118 = vector.load %arg25[%117, %c0_81] : memref<16x64xf32, #tpu.memory_space<vmem>>, vector<1x64xf32>
      %119 = arith.addf %116, %118 : vector<1x64xf32>
      %120 = arith.addf %119, %5 : vector<1x64xf32>
      %121 = arith.index_cast %arg28 : i32 to index
      %c0_82 = arith.constant 0 : index
      %122 = vector.load %arg26[%121, %c0_82] : memref<64x64xf32, #tpu.memory_space<vmem>>, vector<1x64xf32>
      tpu.vector_store %arg26[%121, %c0_82], %120 {strides = array<i32>} : memref<64x64xf32, #tpu.memory_space<vmem>>, vector<1x64xf32>,
    }
    %c64_i32_38 = arith.constant 64 : i32
    %c0_39 = arith.constant 0 : index
    %c0_40 = arith.constant 0 : index
    %26 = vector.load %arg26[%c0_39, %c0_40] : memref<64x64xf32, #tpu.memory_space<vmem>>, vector<64x64xf32>
    %cst_41 = arith.constant dense<0.000000e+00> : vector<64xf32>
    %27 = vector.multi_reduction <add>, %26, %cst_41 [1] : vector<64x64xf32> to vector<64xf32>
    %28 = vector.shape_cast %27 : vector<64xf32> to vector<64x1xf32>
    %cst_42 = arith.constant 6.400000e+01 : f32
    %29 = vector.broadcast %cst_42 : f32 to vector<64x1xf32>
    %30 = arith.divf %28, %29 : vector<64x1xf32>
    %31 = vector.broadcast %30 : vector<64x1xf32> to vector<64x64xf32>
    %32 = arith.subf %26, %31 : vector<64x64xf32>
    %33 = arith.mulf %32, %32 : vector<64x64xf32>
    %cst_43 = arith.constant dense<0.000000e+00> : vector<64xf32>
    %34 = vector.multi_reduction <add>, %33, %cst_43 [1] : vector<64x64xf32> to vector<64xf32>
    %35 = vector.shape_cast %34 : vector<64xf32> to vector<64x1xf32>
    %cst_44 = arith.constant 6.400000e+01 : f32
    %36 = vector.broadcast %cst_44 : f32 to vector<64x1xf32>
    %37 = arith.divf %35, %36 : vector<64x1xf32>
    %38 = vector.broadcast %30 : vector<64x1xf32> to vector<64x64xf32>
    %39 = arith.subf %26, %38 : vector<64x64xf32>
    %cst_45 = arith.constant 9.99999974E-6 : f32
    %40 = vector.broadcast %cst_45 : f32 to vector<64x1xf32>
    %41 = arith.addf %37, %40 : vector<64x1xf32>
    %42 = math.rsqrt %41 : vector<64x1xf32>
    %43 = vector.broadcast %42 : vector<64x1xf32> to vector<64x64xf32>
    %44 = arith.mulf %39, %43 : vector<64x64xf32>
    %45 = vector.broadcast %6 : vector<1x64xf32> to vector<64x64xf32>
    %46 = arith.mulf %44, %45 : vector<64x64xf32>
    %47 = vector.broadcast %7 : vector<1x64xf32> to vector<64x64xf32>
    %48 = arith.addf %46, %47 : vector<64x64xf32>
    %cst_46 = arith.constant 0.000000e+00 : f32
    %49 = vector.broadcast %cst_46 : f32 to vector<64x64xf32>
    %50 = arith.maximumf %48, %49 : vector<64x64xf32>
    %51 = arith.truncf %50 : vector<64x64xf32> to vector<64x64xbf16>
    %cst_47 = arith.constant dense<0.000000e+00> : vector<64x64xf32>
    %52 = tpu.matmul %51, %8, %cst_47 {dimension_numbers = #tpu.dot_dimension_numbers<[1], [0], [0], [1], [0, 0, 1, 1], [], []>} : vector<64x64xbf16>, vector<64x64xbf16>, vector<64x64xf32> -> vector<64x64xf32>
    %53 = vector.broadcast %9 : vector<1x64xf32> to vector<64x64xf32>
    %54 = arith.addf %52, %53 : vector<64x64xf32>
    %c0_48 = arith.constant 0 : index
    %c0_49 = arith.constant 0 : index
    %55 = vector.load %arg26[%c0_48, %c0_49] : memref<64x64xf32, #tpu.memory_space<vmem>>, vector<64x64xf32>
    tpu.vector_store %arg26[%c0_48, %c0_49], %54 {strides = array<i32>} : memref<64x64xf32, #tpu.memory_space<vmem>>, vector<64x64xf32>,
    %cst_50 = arith.constant 0.000000e+00 : f32
    %56 = vector.broadcast %cst_50 : f32 to vector<24x64xf32>
    %c0_51 = arith.constant 0 : index
    %c0_52 = arith.constant 0 : index
    %57 = vector.load %arg27[%c0_51, %c0_52] : memref<24x64xf32, #tpu.memory_space<vmem>>, vector<24x64xf32>
    tpu.vector_store %arg27[%c0_51, %c0_52], %56 {strides = array<i32>} : memref<24x64xf32, #tpu.memory_space<vmem>>, vector<24x64xf32>,
    %c0_i32_53 = arith.constant 0 : i32
    %c64_i32_54 = arith.constant 64 : i32
    %58 = arith.addi %c0_i32_53, %c64_i32_54 : i32
    %c1_i32_55 = arith.constant 1 : i32
    scf.for %arg28 = %c0_i32_53 to %58 step %c1_i32_55  : i32 {
      %111 = arith.index_cast %arg28 : i32 to index
      %112 = memref.load %arg2[%111] : memref<64xi32, #tpu.memory_space<smem>>
      %113 = arith.index_cast %112 : i32 to index
      %c0_80 = arith.constant 0 : index
      %114 = vector.load %arg27[%113, %c0_80] : memref<24x64xf32, #tpu.memory_space<vmem>>, vector<1x64xf32>
      %115 = arith.index_cast %arg28 : i32 to index
      %c0_81 = arith.constant 0 : index
      %116 = vector.load %arg26[%115, %c0_81] : memref<64x64xf32, #tpu.memory_space<vmem>>, vector<1x64xf32>
      %117 = arith.addf %114, %116 : vector<1x64xf32>
      %118 = arith.index_cast %112 : i32 to index
      %c0_82 = arith.constant 0 : index
      %119 = vector.load %arg27[%118, %c0_82] : memref<24x64xf32, #tpu.memory_space<vmem>>, vector<1x64xf32>
      tpu.vector_store %arg27[%118, %c0_82], %117 {strides = array<i32>} : memref<24x64xf32, #tpu.memory_space<vmem>>, vector<1x64xf32>,
    }
    %c64_i32_56 = arith.constant 64 : i32
    %c0_57 = arith.constant 0 : index
    %c0_58 = arith.constant 0 : index
    %59 = vector.load %arg27[%c0_57, %c0_58] : memref<24x64xf32, #tpu.memory_space<vmem>>, vector<24x64xf32>
    %cst_59 = arith.constant dense<0.000000e+00> : vector<24xf32>
    %60 = vector.multi_reduction <add>, %59, %cst_59 [1] : vector<24x64xf32> to vector<24xf32>
    %61 = vector.shape_cast %60 : vector<24xf32> to vector<24x1xf32>
    %cst_60 = arith.constant 6.400000e+01 : f32
    %62 = vector.broadcast %cst_60 : f32 to vector<24x1xf32>
    %63 = arith.divf %61, %62 : vector<24x1xf32>
    %64 = vector.broadcast %63 : vector<24x1xf32> to vector<24x64xf32>
    %65 = arith.subf %59, %64 : vector<24x64xf32>
    %66 = arith.mulf %65, %65 : vector<24x64xf32>
    %cst_61 = arith.constant dense<0.000000e+00> : vector<24xf32>
    %67 = vector.multi_reduction <add>, %66, %cst_61 [1] : vector<24x64xf32> to vector<24xf32>
    %68 = vector.shape_cast %67 : vector<24xf32> to vector<24x1xf32>
    %cst_62 = arith.constant 6.400000e+01 : f32
    %69 = vector.broadcast %cst_62 : f32 to vector<24x1xf32>
    %70 = arith.divf %68, %69 : vector<24x1xf32>
    %71 = vector.broadcast %63 : vector<24x1xf32> to vector<24x64xf32>
    %72 = arith.subf %59, %71 : vector<24x64xf32>
    %cst_63 = arith.constant 9.99999974E-6 : f32
    %73 = vector.broadcast %cst_63 : f32 to vector<24x1xf32>
    %74 = arith.addf %70, %73 : vector<24x1xf32>
    %75 = math.rsqrt %74 : vector<24x1xf32>
    %76 = vector.broadcast %75 : vector<24x1xf32> to vector<24x64xf32>
    %77 = arith.mulf %72, %76 : vector<24x64xf32>
    %78 = vector.broadcast %10 : vector<1x64xf32> to vector<24x64xf32>
    %79 = arith.mulf %77, %78 : vector<24x64xf32>
    %80 = vector.broadcast %11 : vector<1x64xf32> to vector<24x64xf32>
    %81 = arith.addf %79, %80 : vector<24x64xf32>
    %82 = arith.truncf %81 : vector<24x64xf32> to vector<24x64xbf16>
    %cst_64 = arith.constant dense<0.000000e+00> : vector<24x64xf32>
    %83 = tpu.matmul %82, %12, %cst_64 {dimension_numbers = #tpu.dot_dimension_numbers<[1], [0], [0], [1], [0, 0, 1, 1], [], []>} : vector<24x64xbf16>, vector<64x64xbf16>, vector<24x64xf32> -> vector<24x64xf32>
    %84 = arith.truncf %1 : vector<24x64xf32> to vector<24x64xbf16>
    %cst_65 = arith.constant dense<0.000000e+00> : vector<24x64xf32>
    %85 = tpu.matmul %84, %13, %cst_65 {dimension_numbers = #tpu.dot_dimension_numbers<[1], [0], [0], [1], [0, 0, 1, 1], [], []>} : vector<24x64xbf16>, vector<64x64xbf16>, vector<24x64xf32> -> vector<24x64xf32>
    %86 = arith.addf %83, %85 : vector<24x64xf32>
    %87 = vector.broadcast %14 : vector<1x64xf32> to vector<24x64xf32>
    %88 = arith.addf %86, %87 : vector<24x64xf32>
    %cst_66 = arith.constant 0.000000e+00 : f32
    %89 = vector.broadcast %cst_66 : f32 to vector<24x64xf32>
    %90 = arith.maximumf %88, %89 : vector<24x64xf32>
    %91 = arith.truncf %90 : vector<24x64xf32> to vector<24x64xbf16>
    %cst_67 = arith.constant dense<0.000000e+00> : vector<24x64xf32>
    %92 = tpu.matmul %91, %15, %cst_67 {dimension_numbers = #tpu.dot_dimension_numbers<[1], [0], [0], [1], [0, 0, 1, 1], [], []>} : vector<24x64xbf16>, vector<64x64xbf16>, vector<24x64xf32> -> vector<24x64xf32>
    %93 = vector.broadcast %16 : vector<1x64xf32> to vector<24x64xf32>
    %94 = arith.addf %92, %93 : vector<24x64xf32>
    %cst_68 = arith.constant 0.000000e+00 : f32
    %95 = vector.broadcast %cst_68 : f32 to vector<24x64xf32>
    %96 = arith.maximumf %94, %95 : vector<24x64xf32>
    %c0_69 = arith.constant 0 : index
    %c0_70 = arith.constant 0 : index
    %97 = vector.load %arg20[%c0_69, %c0_70] : memref<64x64xbf16, #tpu.memory_space<vmem>>, vector<64x64xbf16>
    %98 = arith.truncf %96 : vector<24x64xf32> to vector<24x64xbf16>
    %cst_71 = arith.constant dense<0.000000e+00> : vector<24x64xf32>
    %99 = tpu.matmul %98, %97, %cst_71 {dimension_numbers = #tpu.dot_dimension_numbers<[1], [0], [0], [1], [0, 0, 1, 1], [], []>} : vector<24x64xbf16>, vector<64x64xbf16>, vector<24x64xf32> -> vector<24x64xf32>
    %c0_72 = arith.constant 0 : index
    %c0_73 = arith.constant 0 : index
    %100 = vector.load %arg21[%c0_72, %c0_73] : memref<1x64xf32, #tpu.memory_space<vmem>>, vector<1x64xf32>
    %101 = vector.broadcast %100 : vector<1x64xf32> to vector<24x64xf32>
    %102 = arith.addf %99, %101 : vector<24x64xf32>
    %cst_74 = arith.constant 0.000000e+00 : f32
    %103 = vector.broadcast %cst_74 : f32 to vector<24x64xf32>
    %104 = arith.maximumf %102, %103 : vector<24x64xf32>
    %c0_75 = arith.constant 0 : index
    %c0_76 = arith.constant 0 : index
    %105 = vector.load %arg22[%c0_75, %c0_76] : memref<1x64xf32, #tpu.memory_space<vmem>>, vector<1x64xf32>
    %106 = vector.broadcast %105 : vector<1x64xf32> to vector<24x64xf32>
    %107 = arith.mulf %104, %106 : vector<24x64xf32>
    %cst_77 = arith.constant dense<0.000000e+00> : vector<24xf32>
    %108 = vector.multi_reduction <add>, %107, %cst_77 [1] : vector<24x64xf32> to vector<24xf32>
    %109 = vector.shape_cast %108 : vector<24xf32> to vector<24x1xf32>
    %c0_78 = arith.constant 0 : index
    %c0_79 = arith.constant 0 : index
    %110 = vector.load %arg23[%c0_78, %c0_79] : memref<24x1xf32, #tpu.memory_space<vmem>>, vector<24x1xf32>
    tpu.vector_store %arg23[%c0_78, %c0_79], %109 {strides = array<i32>} : memref<24x1xf32, #tpu.memory_space<vmem>>, vector<24x1xf32>,
    return
  }
  func.func @transform_0(%arg0: i32, %arg1: memref<64xi32, #tpu.memory_space<smem>>, %arg2: memref<64xi32, #tpu.memory_space<smem>>) -> (i32, i32) {
    %c0_i32 = arith.constant 0 : i32
    %c0_i32_0 = arith.constant 0 : i32
    %c0_i32_1 = arith.constant 0 : i32
    return %c0_i32, %c0_i32_0 : i32, i32
  }
  func.func @transform_1(%arg0: i32, %arg1: memref<64xi32, #tpu.memory_space<smem>>, %arg2: memref<64xi32, #tpu.memory_space<smem>>) -> (i32, i32) {
    %c0_i32 = arith.constant 0 : i32
    %c0_i32_0 = arith.constant 0 : i32
    %c0_i32_1 = arith.constant 0 : i32
    return %c0_i32, %c0_i32_0 : i32, i32
  }
  func.func @transform_2(%arg0: i32, %arg1: memref<64xi32, #tpu.memory_space<smem>>, %arg2: memref<64xi32, #tpu.memory_space<smem>>) -> (i32, i32) {
    %c0_i32 = arith.constant 0 : i32
    %c0_i32_0 = arith.constant 0 : i32
    %c0_i32_1 = arith.constant 0 : i32
    return %c0_i32, %c0_i32_0 : i32, i32
  }
  func.func @transform_3(%arg0: i32, %arg1: memref<64xi32, #tpu.memory_space<smem>>, %arg2: memref<64xi32, #tpu.memory_space<smem>>) -> (i32, i32) {
    %c0_i32 = arith.constant 0 : i32
    %c0_i32_0 = arith.constant 0 : i32
    %c0_i32_1 = arith.constant 0 : i32
    return %c0_i32, %c0_i32_0 : i32, i32
  }
  func.func @transform_4(%arg0: i32, %arg1: memref<64xi32, #tpu.memory_space<smem>>, %arg2: memref<64xi32, #tpu.memory_space<smem>>) -> (i32, i32) {
    %c0_i32 = arith.constant 0 : i32
    %c0_i32_0 = arith.constant 0 : i32
    %c0_i32_1 = arith.constant 0 : i32
    return %c0_i32, %c0_i32_0 : i32, i32
  }
  func.func @transform_5(%arg0: i32, %arg1: memref<64xi32, #tpu.memory_space<smem>>, %arg2: memref<64xi32, #tpu.memory_space<smem>>) -> (i32, i32) {
    %c0_i32 = arith.constant 0 : i32
    %c0_i32_0 = arith.constant 0 : i32
    %c0_i32_1 = arith.constant 0 : i32
    return %c0_i32, %c0_i32_0 : i32, i32
  }
  func.func @transform_6(%arg0: i32, %arg1: memref<64xi32, #tpu.memory_space<smem>>, %arg2: memref<64xi32, #tpu.memory_space<smem>>) -> (i32, i32) {
    %c0_i32 = arith.constant 0 : i32
    %c0_i32_0 = arith.constant 0 : i32
    %c0_i32_1 = arith.constant 0 : i32
    return %c0_i32, %c0_i32_0 : i32, i32
  }
  func.func @transform_7(%arg0: i32, %arg1: memref<64xi32, #tpu.memory_space<smem>>, %arg2: memref<64xi32, #tpu.memory_space<smem>>) -> (i32, i32) {
    %c0_i32 = arith.constant 0 : i32
    %c0_i32_0 = arith.constant 0 : i32
    %c0_i32_1 = arith.constant 0 : i32
    return %c0_i32, %c0_i32_0 : i32, i32
  }
  func.func @transform_8(%arg0: i32, %arg1: memref<64xi32, #tpu.memory_space<smem>>, %arg2: memref<64xi32, #tpu.memory_space<smem>>) -> (i32, i32) {
    %c0_i32 = arith.constant 0 : i32
    %c0_i32_0 = arith.constant 0 : i32
    %c0_i32_1 = arith.constant 0 : i32
    return %c0_i32, %c0_i32_0 : i32, i32
  }
  func.func @transform_9(%arg0: i32, %arg1: memref<64xi32, #tpu.memory_space<smem>>, %arg2: memref<64xi32, #tpu.memory_space<smem>>) -> (i32, i32) {
    %c0_i32 = arith.constant 0 : i32
    %c0_i32_0 = arith.constant 0 : i32
    %c0_i32_1 = arith.constant 0 : i32
    return %c0_i32, %c0_i32_0 : i32, i32
  }
  func.func @transform_10(%arg0: i32, %arg1: memref<64xi32, #tpu.memory_space<smem>>, %arg2: memref<64xi32, #tpu.memory_space<smem>>) -> (i32, i32) {
    %c0_i32 = arith.constant 0 : i32
    %c0_i32_0 = arith.constant 0 : i32
    %c0_i32_1 = arith.constant 0 : i32
    return %c0_i32, %c0_i32_0 : i32, i32
  }
  func.func @transform_11(%arg0: i32, %arg1: memref<64xi32, #tpu.memory_space<smem>>, %arg2: memref<64xi32, #tpu.memory_space<smem>>) -> (i32, i32) {
    %c0_i32 = arith.constant 0 : i32
    %c0_i32_0 = arith.constant 0 : i32
    %c0_i32_1 = arith.constant 0 : i32
    return %c0_i32, %c0_i32_0 : i32, i32
  }
  func.func @transform_12(%arg0: i32, %arg1: memref<64xi32, #tpu.memory_space<smem>>, %arg2: memref<64xi32, #tpu.memory_space<smem>>) -> (i32, i32) {
    %c0_i32 = arith.constant 0 : i32
    %c0_i32_0 = arith.constant 0 : i32
    %c0_i32_1 = arith.constant 0 : i32
    return %c0_i32, %c0_i32_0 : i32, i32
  }
  func.func @transform_13(%arg0: i32, %arg1: memref<64xi32, #tpu.memory_space<smem>>, %arg2: memref<64xi32, #tpu.memory_space<smem>>) -> (i32, i32) {
    %c0_i32 = arith.constant 0 : i32
    %c0_i32_0 = arith.constant 0 : i32
    %c0_i32_1 = arith.constant 0 : i32
    return %c0_i32, %c0_i32_0 : i32, i32
  }
  func.func @transform_14(%arg0: i32, %arg1: memref<64xi32, #tpu.memory_space<smem>>, %arg2: memref<64xi32, #tpu.memory_space<smem>>) -> (i32, i32) {
    %c0_i32 = arith.constant 0 : i32
    %c0_i32_0 = arith.constant 0 : i32
    %c0_i32_1 = arith.constant 0 : i32
    return %c0_i32, %c0_i32_0 : i32, i32
  }
  func.func @transform_15(%arg0: i32, %arg1: memref<64xi32, #tpu.memory_space<smem>>, %arg2: memref<64xi32, #tpu.memory_space<smem>>) -> (i32, i32) {
    %c0_i32 = arith.constant 0 : i32
    %c0_i32_0 = arith.constant 0 : i32
    %c0_i32_1 = arith.constant 0 : i32
    return %c0_i32, %c0_i32_0 : i32, i32
  }
  func.func @transform_16(%arg0: i32, %arg1: memref<64xi32, #tpu.memory_space<smem>>, %arg2: memref<64xi32, #tpu.memory_space<smem>>) -> (i32, i32) {
    %c0_i32 = arith.constant 0 : i32
    %c0_i32_0 = arith.constant 0 : i32
    %c0_i32_1 = arith.constant 0 : i32
    return %c0_i32, %c0_i32_0 : i32, i32
  }
  func.func @transform_17(%arg0: i32, %arg1: memref<64xi32, #tpu.memory_space<smem>>, %arg2: memref<64xi32, #tpu.memory_space<smem>>) -> (i32, i32) {
    %c0_i32 = arith.constant 0 : i32
    %c0_i32_0 = arith.constant 0 : i32
    %c0_i32_1 = arith.constant 0 : i32
    return %c0_i32, %c0_i32_0 : i32, i32
  }
  func.func @transform_18(%arg0: i32, %arg1: memref<64xi32, #tpu.memory_space<smem>>, %arg2: memref<64xi32, #tpu.memory_space<smem>>) -> (i32, i32) {
    %c0_i32 = arith.constant 0 : i32
    %c0_i32_0 = arith.constant 0 : i32
    %c0_i32_1 = arith.constant 0 : i32
    return %c0_i32, %c0_i32_0 : i32, i32
  }
  func.func @transform_19(%arg0: i32, %arg1: memref<64xi32, #tpu.memory_space<smem>>, %arg2: memref<64xi32, #tpu.memory_space<smem>>) -> (i32, i32) {
    %c0_i32 = arith.constant 0 : i32
    %c0_i32_0 = arith.constant 0 : i32
    %c0_i32_1 = arith.constant 0 : i32
    return %c0_i32, %c0_i32_0 : i32, i32
  }
  func.func @transform_20(%arg0: i32, %arg1: memref<64xi32, #tpu.memory_space<smem>>, %arg2: memref<64xi32, #tpu.memory_space<smem>>) -> (i32, i32) {
    %c0_i32 = arith.constant 0 : i32
    %c0_i32_0 = arith.constant 0 : i32
    %c0_i32_1 = arith.constant 0 : i32
    return %c0_i32, %c0_i32_0 : i32, i32
  }
}

</mosaic_0001>

<bundles_post_ra>
// kernel: gnn_policy_forward.3
= control target key start
LH: loop header
LB: loop body
LE: loop exit
PB: predicated region body
PF: predicated region fallthrough
CT: control target
= control target key end

     0   :  { %s1898_s0 = inlined_call_operand.vmem [shape: s32[64], index: 0, kind: input, shape index: {}]   ;;  %s1899_s2 = inlined_call_operand.vmem [shape: f32[16,64], index: 2, kind: input, shape index: {}]   ;;  %s1900_s3 = inlined_call_operand.vmem [shape: f32[24,64], index: 3, kind: input, shape index: {}]   ;;  %s1901_s4 = inlined_call_operand.vmem [shape: bf16[64,64], index: 4, kind: input, shape index: {}]   ;;  %s1902_s5 = inlined_call_operand.vmem [shape: f32[1,64], index: 5, kind: input, shape index: {}]   ;;  %s1903_s6 = inlined_call_operand.vmem [shape: bf16[64,64], index: 6, kind: input, shape index: {}]   ;;  %s1904_s7 = inlined_call_operand.vmem [shape: f32[1,64], index: 7, kind: input, shape index: {}]   ;;  %s1905_s8 = inlined_call_operand.vmem [shape: f32[1,64], index: 8, kind: input, shape index: {}]   ;;  %s1906_s9 = inlined_call_operand.vmem [shape: f32[1,64], index: 9, kind: input, shape index: {}]   ;;  %s1907_s10 = inlined_call_operand.vmem [shape: bf16[64,64], index: 10, kind: input, shape index: {}]   ;;  %s1908_s11 = inlined_call_operand.vmem [shape: f32[1,64], index: 11, kind: input, shape index: {}]   ;;  %s1909_s12 = inlined_call_operand.vmem [shape: f32[1,64], index: 12, kind: input, shape index: {}]   ;;  %s1910_s13 = inlined_call_operand.vmem [shape: f32[1,64], index: 13, kind: input, shape index: {}]   ;;  %s1911_s14 = inlined_call_operand.vmem [shape: bf16[64,64], index: 14, kind: input, shape index: {}]   ;;  %s1912_s15 = inlined_call_operand.vmem [shape: bf16[64,64], index: 15, kind: input, shape index: {}]   ;;  %s1913_s16 = inlined_call_operand.vmem [shape: f32[1,64], index: 16, kind: input, shape index: {}]   ;;  %s1914_s17 = inlined_call_operand.vmem [shape: bf16[64,64], index: 17, kind: input, shape index: {}]   ;;  %s1915_s18 = inlined_call_operand.vmem [shape: f32[1,64], index: 18, kind: input, shape index: {}]   ;;  %s1916_s19 = inlined_call_operand.vmem [shape: bf16[64,64], index: 19, kind: input, shape index: {}]   ;;  %s1917_s20 = inlined_call_operand.vmem [shape: f32[1,64], index: 20, kind: input, shape index: {}]   ;;  %s1918_s21 = inlined_call_operand.vmem [shape: f32[1,64], index: 21, kind: input, shape index: {}]   ;;  %s1919_s22 = inlined_call_operand.vmem [shape: f32[24,1], index: 22, kind: output, shape index: {}]   ;;  %s1920_s1 = inlined_call_operand.vmem [shape: s32[64], index: 1, kind: input, shape index: {}]  }
   0x1   :  { %1925 = sst [smem:[#allocation10_spill]] %s1898_s0  ;;  %s31_s0 = sshll.u32 %s1920_s1, 4  ;;  %s32_s0 = int_to_ptr.vmem [resolvable:$true] %s31_s0 }
   0x2   :  { %1926 = sst [smem:[#allocation11_spill]] %s1899_s2  ;;  %s1933_s29 = sld [smem:[#allocation10_spill]] }
   0x3   :  { %1927 = sst [smem:[#allocation12_spill]] %s1900_s3 }
   0x4   :  { %1928 = sst [smem:[#allocation13_spill]] %s1901_s4 }
   0x5   :  { %1929 = sst [smem:[#allocation14_spill]] %s1902_s5 }
   0x6   :  { %1930 = sst [smem:[#allocation15_spill]] %s1903_s6 }
   0x7   :  { %1931 = sst [smem:[#allocation16_spill]] %s1904_s7 }
   0x8   :  { %1932 = sst [smem:[#allocation17_spill]] %s1908_s11  ;;  %s27_s11 = sshll.u32 %s1933_s29, 4  ;;  %s28_s11 = int_to_ptr.vmem [resolvable:$true] %s27_s11 }
   0x9   :  { %s1294_s23 = scalar_lea.vmem %s28_s11, 16  ;;  %p1299_p1 = scmp.lt.s32.totalorder %s28_s11, %s28_s11 }
   0xa   :  { %p1295_p0 = scmp.ne.s32.totalorder %s28_s11, %s1294_s23  ;;  %p1300_p2 = scmp.lt.s32.totalorder %s1294_s23, %s1294_s23 }
   0xc   :  { %p1301_p3 = por %p1300_p2, %p1299_p1 }
   0xe   :  { %p1302_p4 = pnand %p1301_p3, %p1295_p0 }
  0x10   :  { %1305 = shalt.err (!%p1302_p4)  }
  0x11   :  { %s1336_s2 = smov [#allocation7]   ;;  %s1306_s6 = scalar_lea.vmem %s32_s0, 16 }
  0x12   :  { %30 = dma.vmem_to_smem %s28_s11, 16, %s1336_s2, [#allocation6] }
  0x13   :  { %p1307_p5 = scmp.ne.s32.totalorder %s32_s0, %s1306_s6  ;;  %p1311_p6 = scmp.lt.s32.totalorder %s32_s0, %s32_s0 }
  0x14   :  { %p1312_p7 = scmp.lt.s32.totalorder %s1306_s6, %s1306_s6 }
  0x16   :  { %p1313_p8 = por %p1312_p7, %p1311_p6 }
  0x18   :  { %p1314_p9 = pnand %p1313_p8, %p1307_p5 }
  0x1a   :  { %1317 = shalt.err (!%p1314_p9)  }
  0x1b   :  { %s1337_s24 = smov [#allocation8]  }
  0x1c   :  { %34 = dma.vmem_to_smem %s32_s0, 16, %s1337_s24, [#allocation6] }
  0x1d   :  { %1326 = dma.done.wait [#allocation6], 32 }
  0x1e   :  { %1327 = vsyncadd [#allocation6], 4294967264 }
  0x1f   :  { %36 = sfence }
  0x20   :  { %s1934_s25 = sld [smem:[#allocation16_spill]]  ;;  %v1469_v1 = vld [vmem:[%s1905_s8] ss:$0 sm:$0xff]  ;;  %v1484_v4 = vld [vmem:[%s1907_s10 + $0x4] sm:$0xf]  ;;  %v1338_v39 = vmov 0.0  }
  0x21   :  { %v1474_v2 = vld [vmem:[%s1906_s9] ss:$0 sm:$0xff]  ;;  %v1489_v5 = vld [vmem:[%s1907_s10 + $0x8] sm:$0xf]  ;;  %v1494_v6 = vld [vmem:[%s1907_s10 + $0xc] sm:$0xf]  ;;  %1164 = vmatprep.subr.bf16.mxu1 %v1338_v39 }
  0x22   :  { %v1479_v3 = vld [vmem:[%s1907_s10] sm:$0xf]  ;;  %v1499_v7 = vld [vmem:[%s1907_s10 + $0x10] sm:$0xf]  ;;  %v1504_v8 = vld [vmem:[%s1907_s10 + $0x14] sm:$0xf] }
  0x23   :  { %v1509_v9 = vld [vmem:[%s1907_s10 + $0x18] sm:$0xf]  ;;  %v1514_v10 = vld [vmem:[%s1907_s10 + $0x1c] sm:$0xf]  ;;  %v1519_v11 = vld [vmem:[%s1909_s12] ss:$0 sm:$0xff] }
  0x24   :  { %v1524_v12 = vld [vmem:[%s1910_s13] ss:$0 sm:$0xff]  ;;  %v1534_v14 = vld [vmem:[%s1911_s14 + $0x4] sm:$0xf]  ;;  %v1539_v15 = vld [vmem:[%s1911_s14 + $0x8] sm:$0xf] }
  0x25   :  { %v1529_v13 = vld [vmem:[%s1911_s14] sm:$0xf]  ;;  %v1544_v16 = vld [vmem:[%s1911_s14 + $0xc] sm:$0xf]  ;;  %v1549_v17 = vld [vmem:[%s1911_s14 + $0x10] sm:$0xf] }
  0x26   :  { %v1464_v0 = vld [vmem:[%s1934_s25] sm:$0x1]  ;;  %v1554_v18 = vld [vmem:[%s1911_s14 + $0x14] sm:$0xf]  ;;  %v1559_v19 = vld [vmem:[%s1911_s14 + $0x18] sm:$0xf] }
  0x27   :  { %v1564_v20 = vld [vmem:[%s1911_s14 + $0x1c] sm:$0xf]  ;;  %v1569_v21 = vld [vmem:[%s1912_s15] sm:$0xf]  ;;  %v1574_v22 = vld [vmem:[%s1912_s15 + $0x4] sm:$0xf] }
  0x28   :  { %v1579_v23 = vld [vmem:[%s1912_s15 + $0x8] sm:$0xf]  ;;  %v1584_v24 = vld [vmem:[%s1912_s15 + $0xc] sm:$0xf]  ;;  %v1589_v25 = vld [vmem:[%s1912_s15 + $0x10] sm:$0xf] }
  0x29   :  { %v1594_v26 = vld [vmem:[%s1912_s15 + $0x14] sm:$0xf]  ;;  %v1599_v27 = vld [vmem:[%s1912_s15 + $0x18] sm:$0xf]  ;;  %v1604_v28 = vld [vmem:[%s1912_s15 + $0x1c] sm:$0xf] }
  0x2a   :  { %v1609_v29 = vld [vmem:[%s1913_s16] ss:$0 sm:$0xff]  ;;  %v1619_v31 = vld [vmem:[%s1914_s17 + $0x4] sm:$0xf]  ;;  %v1624_v32 = vld [vmem:[%s1914_s17 + $0x8] sm:$0xf] }
  0x2b   :  { %v1614_v30 = vld [vmem:[%s1914_s17] sm:$0xf]  ;;  %v1629_v33 = vld [vmem:[%s1914_s17 + $0xc] sm:$0xf]  ;;  %v1634_v34 = vld [vmem:[%s1914_s17 + $0x10] sm:$0xf] }
  0x2c   :  { %v1639_v35 = vld [vmem:[%s1914_s17 + $0x14] sm:$0xf]  ;;  %v1644_v36 = vld [vmem:[%s1914_s17 + $0x18] sm:$0xf]  ;;  %v1649_v37 = vld [vmem:[%s1914_s17 + $0x1c] sm:$0xf] }
  0x2d   :  { %s1935_s10 = sld [smem:[#allocation13_spill]]  ;;  %s1936_s8 = sld [smem:[#allocation15_spill]]  ;;  %vm1339_vm0 = vmmov 0   ;;  %vm172_vm1 = vcmask 523264  }
  0x2e   :  { %1172 = vmatprep.mubr.msk.bf16.mxu1 %vm1339_vm0, %v1338_v39  ;;  %s1937_s15 = sld [smem:[#allocation12_spill]]  ;;  %s1938_s5 = sld [smem:[#allocation11_spill]] }
  0x2f   :  { %s1939_s13 = sld [smem:[#allocation14_spill]]  ;;  %s1328_s23 = smov 0  }
  0x33   :  { %v1260_v38 = vld [vmem:[%s1935_s10] sm:$0xff]   ;;  %v1262_v41 = vld [vmem:[%s1935_s10 + $0x8] sm:$0xff]   ;;  %v1264_v43 = vld [vmem:[%s1935_s10 + $0x10] sm:$0xff]  }
  0x34   :  { %v1261_v40 = vld [vmem:[%s1936_s8] sm:$0xff]   ;;  %1152 = vmatprep.subr.bf16.mxu0 %v1260_v38  ;;  %v1263_v42 = vld [vmem:[%s1936_s8 + $0x8] sm:$0xff]   ;;  %v1265_v44 = vld [vmem:[%s1936_s8 + $0x10] sm:$0xff]  }
  0x35   :  { %1153 = vmatpush3.bf16.msra.mxu0 %v1260_v38  ;;  %1165 = vmatpush3.bf16.msra.mxu1 %v1261_v40  ;;  %v80_v45 = vld [vmem:[%s1937_s15] sm:$0xff]  ;;  %v1266_v46 = vld [vmem:[%s1935_s10 + $0x18] sm:$0xff]   ;;  %v81_v47 = vld [vmem:[%s1937_s15 + $0x8] sm:$0xff] }
  0x36   :  { %1154 = vmatprep.subr.bf16.mxu0 %v1262_v41  ;;  %1166 = vmatprep.subr.bf16.mxu1 %v1338_v39  ;;  %v1682_v48 = vpack.c.bf16 %v81_v47, %v80_v45  ;;  %v1267_v49 = vld [vmem:[%s1936_s8 + $0x18] sm:$0xff]   ;;  %v82_v50 = vld [vmem:[%s1937_s15 + $0x10] sm:$0xff]  ;;  %v78_v51 = vld [vmem:[%s1938_s5] sm:$0xff] }
  0x37   :  { %v79_v52 = vld [vmem:[%s1938_s5 + $0x8] sm:$0xff]  ;;  %v1699_v53 = vpack.c.bf16 %v82_v50, %v82_v50  ;;  %v1056_v55 = vld [vmem:[%s1939_s13] ss:$0 sm:$0xff] }
  0x38   :  { %1160 = vmatprep.mubr.msk.bf16.mxu0 %vm172_vm1, %v1682_v48  ;;  %v230_v54 = vpack.c.bf16 %v79_v52, %v78_v51 }
  0x39   :  { %1155 = vmatpush3.bf16.msra.mxu0 %v1262_v41  ;;  %1167 = vmatpush3.bf16.msra.mxu1 %v1263_v42 }
  0x3a   :  { %1156 = vmatprep.subr.bf16.mxu0 %v1264_v43  ;;  %1168 = vmatprep.subr.bf16.mxu1 %v1338_v39 }
  0x3d   :  { %1157 = vmatpush3.bf16.msra.mxu0 %v1264_v43  ;;  %1169 = vmatpush3.bf16.msra.mxu1 %v1265_v44 }
  0x3e   :  { %1158 = vmatprep.subr.bf16.mxu0 %v1266_v46  ;;  %1170 = vmatprep.subr.bf16.mxu1 %v1338_v39 }
  0x41   :  { %1159 = vmatpush3.bf16.msra.mxu0 %v1266_v46  ;;  %1171 = vmatpush3.bf16.msra.mxu1 %v1267_v49 }
  0x44   :  { %1161 = vmatmul.mubr.msk.bf16.vlgmr.msra.gmra.mrb[0].mxu0 %vm172_vm1, %v1699_v53  ;;  %1173 = vmatmul.mubr.msk.bf16.vlgmr.msra.gmra.mrb[0].mxu1 %vm172_vm1, %v230_v54 }
 0x117   :  { %v1162_v56 = vpop.f32.mrb[0].mxu0  ;;  %v292_v57 = vpop.f32.mrb[0].mxu1 }
 0x118   :  { %v222_v58 = vadd.f32 %v1162_v56, %v1056_v55  ;;  %299 = vst.msk [vmem:[#allocation3] sm:$0xff] %vm172_vm1, %v292_v57  ;;  %v213_v59 = vpop.f32.mrb[1].mxu0  ;;  %v1174_v60 = vpop.f32.mrb[1].mxu1 }
 0x119   :  { %v214_v61 = vadd.f32 %v1056_v55, %v213_v59  ;;  %v1163_v62 = vpop.f32.mrb[2].mxu0  ;;  %v295_v63 = vpop.f32.mrb[2].mxu1 }
 0x11a   :  { %229 = vst.msk [vmem:[#allocation2 + $0x10] sm:$0xff] %vm172_vm1, %v222_v58  ;;  %300 = vst.msk [vmem:[#allocation3 + $0x8] sm:$0xff] %vm172_vm1, %v295_v63  ;;  %v216_v38 = vpop.f32.mrb[3].mxu0  ;;  %v1175_v40 = vpop.f32.mrb[3].mxu1 }
 0x11b   :  { %227 = vst.msk [vmem:[#allocation2] sm:$0xff] %vm172_vm1, %v214_v61  ;;  %v217_v41 = vadd.f32 %v1056_v55, %v216_v38 }
 0x11d   :  { %228 = vst.msk [vmem:[#allocation2 + $0x8] sm:$0xff] %vm172_vm1, %v217_v41 }
 0x11e LB: > { %s307_s17 = sld [smem:[#allocation8 + %s1330_s23]]  ;;  %vm316_vm2 = vcmask 516096   ;;  %s315_s24 = scalar_lea.vmem [#allocation4], %s1330_s23  ;;  %s1330_s23 = sphi %s1328_s23, %s306_s23  }
 0x11f   : > { %s308_s9 = sld [smem:[#allocation7 + %s1330_s23]]  ;;  %s306_s23 = sadd.s32 1, %s1330_s23  }
 0x120   : > { %p303_p10 = scmp.ge.s32.totalorder %s306_s23, 64  }
 0x121   :  { %586 = vst.msk [vmem:[#allocation5] sm:$0xff] (%p303_p10), %vm172_vm1, %v1338_v39  ;;  %587 = vst.msk [vmem:[#allocation5 + $0x8] sm:$0xff] (%p303_p10), %vm172_vm1, %v1338_v39  ;;  %s1940_s25 = sld [smem:[#allocation17_spill]] (%p303_p10)  ;;  %s1332_s15 = smov (%p303_p10), 0  }
 0x122   :  { %588 = vst.msk [vmem:[#allocation5 + $0x10] sm:$0xff] (%p303_p10), %vm172_vm1, %v1338_v39 }
 0x124   : > { %s309_s2 = scalar_lea.vmem [#allocation2], %s307_s17 }
 0x125   : > { %v310_v42 = vld [vmem:[%s309_s2] sm:$0x1]  ;;  %s311_s6 = scalar_lea.vmem [#allocation3], %s308_s9  ;;  %305 = sbr.rel (!%p303_p10) target bundleno = 286 (0x11e), region = 119 }
 0x126   : > { %v312_v43 = vld [vmem:[%s311_s6] sm:$0x1] }
 0x127   : > { %v313_v44 = vadd.f32 %v312_v43, %v310_v42 }
 0x129   : > { %v314_v45 = vadd.f32 %v313_v44, %v1464_v0 }
 0x12b   : > { %317 = vst.msk [vmem:[%s315_s24] sm:$0x1] %vm316_vm2, %v314_v45 }
 0x132   :  { %v318_v46 = vld [vmem:[#allocation4] sm:$0xff]  ;;  %v320_v47 = vld [vmem:[#allocation4 + $0x10] sm:$0xff]  ;;  %v319_v49 = vld [vmem:[#allocation4 + $0x8] sm:$0xff] }
 0x133   :  { %v326_v50 = vsel %vm172_vm1, %v318_v46, 0.0  ;;  %v332_v51 = vsel %vm172_vm1, %v320_v47, 0.0  ;;  %v321_v52 = vld [vmem:[#allocation4 + $0x18] sm:$0xff]  ;;  %v329_v0 = vsel %vm172_vm1, %v319_v49, 0.0  ;;  %v322_v55 = vld [vmem:[#allocation4 + $0x20] sm:$0xff]  ;;  %v323_v56 = vld [vmem:[#allocation4 + $0x28] sm:$0xff] }
 0x134   :  { %327 = vadd.xlane.f32.xlu0 %v326_v50  ;;  %333 = vadd.xlane.f32.xlu1 %v332_v51  ;;  %v335_v54 = vsel %vm172_vm1, %v321_v52, 0.0  ;;  %v338_v57 = vsel %vm172_vm1, %v322_v55, 0.0  ;;  %v341_v58 = vsel %vm172_vm1, %v323_v56, 0.0  ;;  %v324_v39 = vld [vmem:[#allocation4 + $0x30] sm:$0xff]  ;;  %v325_v59 = vld [vmem:[#allocation4 + $0x38] sm:$0xff] }
 0x135   :  { %v344_v60 = vsel %vm172_vm1, %v324_v39, 0.0  ;;  %v347_v61 = vsel %vm172_vm1, %v325_v59, 0.0 }
 0x138   :  { %330 = vadd.xlane.f32.xlu0 %v329_v0  ;;  %336 = vadd.xlane.f32.xlu1 %v335_v54 }
 0x13c   :  { %339 = vadd.xlane.f32.xlu0 %v338_v57  ;;  %342 = vadd.xlane.f32.xlu1 %v341_v58 }
 0x140   :  { %345 = vadd.xlane.f32.xlu0 %v344_v60  ;;  %348 = vadd.xlane.f32.xlu1 %v347_v61 }
 0x1c1   :  { %v328_v62 = vpop.xlane.xlu0 %327  ;;  %v334_v63 = vpop.xlane.xlu1 %333 }
 0x1c2   :  { %v351_v38 = vmul.f32 0.015625, %v328_v62  ;;  %v353_v40 = vmul.f32 0.015625, %v334_v63 }
 0x1c4   :  { %v1728_v41 = vsub.f32 %v318_v46, %v351_v38  ;;  %v1730_v42 = vsub.f32 %v320_v47, %v353_v40 }
 0x1c5   :  { %v331_v43 = vpop.xlane.xlu0 %330  ;;  %v337_v44 = vpop.xlane.xlu1 %336 }
 0x1c6   :  { %v352_v45 = vmul.f32 0.015625, %v331_v43  ;;  %v354_v50 = vmul.f32 0.015625, %v337_v44  ;;  %v367_v51 = vmul.f32 %v1728_v41, %v1728_v41  ;;  %v369_v0 = vmul.f32 %v1730_v42, %v1730_v42 }
 0x1c8   :  { %v1736_v54 = vsub.f32 %v319_v49, %v352_v45  ;;  %v1738_v57 = vsub.f32 %v321_v52, %v354_v50  ;;  %v375_v58 = vsel %vm172_vm1, %v367_v51, 0.0  ;;  %v381_v60 = vsel %vm172_vm1, %v369_v0, 0.0 }
 0x1c9   :  { %376 = vadd.xlane.f32.xlu0 %v375_v58  ;;  %v340_v46 = vpop.xlane.xlu0 %339  ;;  %v343_v47 = vpop.xlane.xlu1 %342 }
 0x1ca   :  { %v355_v61 = vmul.f32 0.015625, %v340_v46  ;;  %v356_v62 = vmul.f32 0.015625, %v343_v47  ;;  %v368_v63 = vmul.f32 %v1736_v54, %v1736_v54  ;;  %v370_v38 = vmul.f32 %v1738_v57, %v1738_v57 }
 0x1cc   :  { %v1746_v40 = vsub.f32 %v322_v55, %v355_v61  ;;  %v1748_v49 = vsub.f32 %v323_v56, %v356_v62  ;;  %v378_v52 = vsel %vm172_vm1, %v368_v63, 0.0  ;;  %v384_v45 = vsel %vm172_vm1, %v370_v38, 0.0 }
 0x1cd   :  { %382 = vadd.xlane.f32.xlu0 %v381_v60  ;;  %379 = vadd.xlane.f32.xlu1 %v378_v52  ;;  %v346_v43 = vpop.xlane.xlu0 %345  ;;  %v349_v44 = vpop.xlane.xlu1 %348  ;;  %v1072_v63 = vcombine.low %v1489_v5, %v1494_v6  ;;  %v1073_v38 = vcombine.low %v1499_v7, %v1504_v8  ;;  %v1074_v52 = vcombine.low %v1509_v9, %v1514_v10 }
 0x1ce   :  { %v357_v50 = vmul.f32 0.015625, %v346_v43  ;;  %v358_v51 = vmul.f32 0.015625, %v349_v44  ;;  %v371_v0 = vmul.f32 %v1746_v40, %v1746_v40  ;;  %v372_v58 = vmul.f32 %v1748_v49, %v1748_v49 }
 0x1d0   :  { %v1756_v55 = vsub.f32 %v324_v39, %v357_v50  ;;  %v1758_v56 = vsub.f32 %v325_v59, %v358_v51  ;;  %v387_v46 = vsel %vm172_vm1, %v371_v0, 0.0  ;;  %v390_v47 = vsel %vm172_vm1, %v372_v58, 0.0 }
 0x1d1   :  { %385 = vadd.xlane.f32.xlu1 %v384_v45  ;;  %388 = vadd.xlane.f32.xlu0 %v387_v46  ;;  %v1071_v59 = vcombine.low %v1479_v3, %v1484_v4 }
 0x1d2   :  { %v373_v60 = vmul.f32 %v1756_v55, %v1756_v55  ;;  %v374_v61 = vmul.f32 %v1758_v56, %v1758_v56 }
 0x1d3   :  { %1176 = vmatprep.subr.bf16.mxu0 %v1071_v59 }
 0x1d4   :  { %v393_v62 = vsel %vm172_vm1, %v373_v60, 0.0  ;;  %v396_v39 = vsel %vm172_vm1, %v374_v61, 0.0  ;;  %1177 = vmatpush3.bf16.msra.mxu0 %v1071_v59 }
 0x1d5   :  { %391 = vadd.xlane.f32.xlu1 %v390_v47  ;;  %394 = vadd.xlane.f32.xlu0 %v393_v62 }
 0x1d6   :  { %1178 = vmatprep.subr.bf16.mxu0 %v1072_v63 }
 0x1d8   :  { %1179 = vmatpush3.bf16.msra.mxu0 %v1072_v63 }
 0x1d9   :  { %397 = vadd.xlane.f32.xlu1 %v396_v39  ;;  %1180 = vmatprep.subr.bf16.mxu0 %v1073_v38 }
 0x1dc   :  { %1181 = vmatpush3.bf16.msra.mxu0 %v1073_v38 }
 0x1dd   :  { %1182 = vmatprep.subr.bf16.mxu0 %v1074_v52 }
 0x1e0   :  { %1183 = vmatpush3.bf16.msra.mxu0 %v1074_v52 }
 0x256   :  { %v377_v43 = vpop.xlane.xlu0 %376 }
 0x257   :  { %v399_v44 = vmul.f32 0.015625, %v377_v43 }
 0x259   :  { %v407_v3 = vadd.f32 1e-05, %v399_v44 }
 0x25a   :  { %v380_v4 = vpop.xlane.xlu1 %379  ;;  %v383_v45 = vpop.xlane.xlu0 %382 }
 0x25b   :  { %1268 = vrsqrt.f32 %v407_v3  ;;  %v400_v50 = vmul.f32 0.015625, %v380_v4  ;;  %v401_v5 = vmul.f32 0.015625, %v383_v45 }
 0x25d   :  { %v408_v6 = vadd.f32 1e-05, %v400_v50  ;;  %v409_v51 = vadd.f32 1e-05, %v401_v5 }
 0x25e   :  { %v386_v7 = vpop.xlane.xlu1 %385  ;;  %v389_v8 = vpop.xlane.xlu0 %388 }
 0x25f   :  { %1270 = vrsqrt.f32 %v408_v6  ;;  %v402_v0 = vmul.f32 0.015625, %v386_v7  ;;  %v403_v58 = vmul.f32 0.015625, %v389_v8 }
 0x260   :  { %1272 = vrsqrt.f32 %v409_v51 }
 0x261   :  { %v410_v9 = vadd.f32 1e-05, %v402_v0  ;;  %v411_v10 = vadd.f32 1e-05, %v403_v58 }
 0x262   :  { %v392_v46 = vpop.xlane.xlu1 %391  ;;  %v395_v47 = vpop.xlane.xlu0 %394 }
 0x263   :  { %1274 = vrsqrt.f32 %v410_v9  ;;  %v404_v60 = vmul.f32 0.015625, %v392_v46  ;;  %v405_v61 = vmul.f32 0.015625, %v395_v47 }
 0x264   :  { %1276 = vrsqrt.f32 %v411_v10 }
 0x265   :  { %v1269_v62 = vpop.eup %1268  ;;  %v412_v39 = vadd.f32 1e-05, %v404_v60  ;;  %v413_v59 = vadd.f32 1e-05, %v405_v61 }
 0x266   :  { %v398_v63 = vpop.xlane.xlu1 %397  ;;  %v423_v38 = vmul.f32 %v1269_v62, %v1728_v41 }
 0x267   :  { %1278 = vrsqrt.f32 %v412_v39  ;;  %v406_v52 = vmul.f32 0.015625, %v398_v63 }
 0x268   :  { %1280 = vrsqrt.f32 %v413_v59  ;;  %v437_v43 = vmul.f32 %v1469_v1, %v423_v38 }
 0x269   :  { %v1271_v44 = vpop.eup %1270  ;;  %v414_v3 = vadd.f32 1e-05, %v406_v52 }
 0x26a   :  { %v1273_v4 = vpop.eup %1272  ;;  %v424_v45 = vmul.f32 %v1271_v44, %v1736_v54  ;;  %v451_v6 = vadd.f32 %v1474_v2, %v437_v43 }
 0x26b   :  { %1282 = vrsqrt.f32 %v414_v3  ;;  %v425_v50 = vmul.f32 %v1273_v4, %v1730_v42 }
 0x26c   :  { %v438_v5 = vmul.f32 %v1469_v1, %v424_v45  ;;  %v459_v9 = vmax.f32 %v451_v6, 0.0 }
 0x26d   :  { %v1275_v51 = vpop.eup %1274  ;;  %v439_v41 = vmul.f32 %v1469_v1, %v425_v50 }
 0x26e   :  { %v1277_v7 = vpop.eup %1276  ;;  %v452_v8 = vadd.f32 %v1474_v2, %v438_v5  ;;  %v426_v0 = vmul.f32 %v1275_v51, %v1738_v57 }
 0x26f   :  { %v427_v58 = vmul.f32 %v1277_v7, %v1746_v40  ;;  %v453_v42 = vadd.f32 %v1474_v2, %v439_v41 }
 0x270   :  { %v460_v10 = vmax.f32 %v452_v8, 0.0  ;;  %v440_v54 = vmul.f32 %v1469_v1, %v426_v0 }
 0x271   :  { %v1279_v46 = vpop.eup %1278  ;;  %v441_v47 = vmul.f32 %v1469_v1, %v427_v58  ;;  %v461_v57 = vmax.f32 %v453_v42, 0.0 }
 0x272   :  { %v1281_v60 = vpop.eup %1280  ;;  %v467_v61 = vpack.c.bf16 %v460_v10, %v459_v9  ;;  %v454_v62 = vadd.f32 %v1474_v2, %v440_v54  ;;  %v428_v39 = vmul.f32 %v1279_v46, %v1748_v49 }
 0x273   :  { %v429_v59 = vmul.f32 %v1281_v60, %v1756_v55  ;;  %v455_v38 = vadd.f32 %v1474_v2, %v441_v47 }
 0x274   :  { %1184 = vmatprep.mubr.msk.bf16.mxu0 %vm172_vm1, %v467_v61  ;;  %v462_v40 = vmax.f32 %v454_v62, 0.0  ;;  %v442_v63 = vmul.f32 %v1469_v1, %v428_v39 }
 0x275   :  { %v1283_v52 = vpop.eup %1282  ;;  %v443_v43 = vmul.f32 %v1469_v1, %v429_v59  ;;  %v463_v49 = vmax.f32 %v455_v38, 0.0 }
 0x276   :  { %v468_v44 = vpack.c.bf16 %v462_v40, %v461_v57  ;;  %v456_v3 = vadd.f32 %v1474_v2, %v442_v63  ;;  %v430_v4 = vmul.f32 %v1283_v52, %v1758_v56  ;;  %v1070_v56 = vld [vmem:[%s1940_s25] ss:$0 sm:$0xff] }
 0x277   :  { %v457_v50 = vadd.f32 %v1474_v2, %v443_v43 }
 0x278   :  { %1185 = vmatmul.mubr.msk.bf16.vlgmr.msra.gmra.mrb[4].mxu0 %vm172_vm1, %v468_v44  ;;  %v464_v55 = vmax.f32 %v456_v3, 0.0  ;;  %v444_v45 = vmul.f32 %v1469_v1, %v430_v4 }
 0x279   :  { %v465_v51 = vmax.f32 %v457_v50, 0.0 }
 0x27a   :  { %v469_v5 = vpack.c.bf16 %v464_v55, %v463_v49  ;;  %v458_v6 = vadd.f32 %v1474_v2, %v444_v45 }
 0x27c   :  { %1188 = vmatprep.mubr.msk.bf16.mxu0 %vm172_vm1, %v469_v5  ;;  %v466_v41 = vmax.f32 %v458_v6, 0.0 }
 0x27e   :  { %v470_v7 = vpack.c.bf16 %v466_v41, %v465_v51 }
 0x280   :  { %1189 = vmatmul.mubr.msk.bf16.gmra.mrb[8].mxu0 %vm172_vm1, %v470_v7 }
 0x34b   :  { %v1186_v8 = vpop.f32.mrb[4].mxu0 }
 0x34c   :  { %v556_v0 = vadd.f32 %v1186_v8, %v1070_v56  ;;  %v547_v58 = vpop.f32.mrb[5].mxu0 }
 0x34d   :  { %v548_v1 = vadd.f32 %v1070_v56, %v547_v58  ;;  %v1187_v9 = vpop.f32.mrb[6].mxu0 }
 0x34e   :  { %580 = vst.msk [vmem:[#allocation4 + $0x10] sm:$0xff] %vm172_vm1, %v556_v0  ;;  %v559_v10 = vadd.f32 %v1187_v9, %v1070_v56  ;;  %v550_v2 = vpop.f32.mrb[7].mxu0 }
 0x34f   :  { %578 = vst.msk [vmem:[#allocation4] sm:$0xff] %vm172_vm1, %v548_v1  ;;  %v551_v54 = vadd.f32 %v1070_v56, %v550_v2 }
 0x350   :  { %581 = vst.msk [vmem:[#allocation4 + $0x18] sm:$0xff] %vm172_vm1, %v559_v10 }
 0x351   :  { %579 = vst.msk [vmem:[#allocation4 + $0x8] sm:$0xff] %vm172_vm1, %v551_v54 }
 0x353   :  { %v1190_v42 = vpop.f32.mrb[8].mxu0 }
 0x354   :  { %v572_v46 = vadd.f32 %v1190_v42, %v1070_v56  ;;  %v563_v47 = vpop.f32.mrb[9].mxu0 }
 0x355   :  { %v564_v60 = vadd.f32 %v1070_v56, %v563_v47  ;;  %v1191_v61 = vpop.f32.mrb[10].mxu0 }
 0x356   :  { %584 = vst.msk [vmem:[#allocation4 + $0x30] sm:$0xff] %vm172_vm1, %v572_v46  ;;  %v575_v62 = vadd.f32 %v1191_v61, %v1070_v56  ;;  %v566_v39 = vpop.f32.mrb[11].mxu0 }
 0x357   :  { %582 = vst.msk [vmem:[#allocation4 + $0x20] sm:$0xff] %vm172_vm1, %v564_v60  ;;  %v567_v59 = vadd.f32 %v1070_v56, %v566_v39 }
 0x358   :  { %585 = vst.msk [vmem:[#allocation4 + $0x38] sm:$0xff] %vm172_vm1, %v575_v62 }
 0x359   :  { %583 = vst.msk [vmem:[#allocation4 + $0x28] sm:$0xff] %vm172_vm1, %v567_v59 }
 0x35a LB: > { %s595_s26 = sld [smem:[#allocation8 + %s1334_s15]]  ;;  %s598_s16 = scalar_lea.vmem [#allocation4], %s1334_s15  ;;  %s1334_s15 = sphi %s1332_s15, %s594_s15  }
 0x35b   : > { %s594_s15 = sadd.s32 1, %s1334_s15  }
 0x35c   : > { %p591_p11 = scmp.ge.s32.totalorder %s594_s15, 64  }
 0x35d   :  { %1200 = vmatprep.mubr.msk.bf16.mxu1 (%p591_p11), %vm172_vm1, %v1682_v48  ;;  %v1081_v9 = vcombine.low (%p591_p11), %v1569_v21, %v1574_v22  ;;  %v1087_v10 = vcombine.low (%p591_p11), %v1529_v13, %v1534_v14  ;;  %v1082_v2 = vcombine.low (%p591_p11), %v1579_v23, %v1584_v24  ;;  %v1088_v54 = vcombine.low (%p591_p11), %v1539_v15, %v1544_v16 }
 0x35e   :  { %593 = sbr.rel (!%p591_p11) target bundleno = 858 (0x35a), region = 130  ;;  %v1083_v42 = vcombine.low (%p591_p11), %v1589_v25, %v1594_v26  ;;  %v1089_v21 = vcombine.low (%p591_p11), %v1549_v17, %v1554_v18  ;;  %v1084_v13 = vcombine.low (%p591_p11), %v1599_v27, %v1604_v28  ;;  %v1090_v14 = vcombine.low (%p591_p11), %v1559_v19, %v1564_v20 }
 0x35f   :  { %1192 = vmatprep.subr.bf16.mxu1 (%p591_p11), %v1081_v9  ;;  %1204 = vmatprep.subr.bf16.mxu0 (%p591_p11), %v1087_v10  ;;  %v1095_v15 = vcombine.low (%p591_p11), %v1614_v30, %v1619_v31  ;;  %vm1033_vm3 = vcmask (%p591_p11), 7168  }
 0x360   : > { %v599_v57 = vld [vmem:[%s598_s16] sm:$0x1]  ;;  %s596_s3 = scalar_lea.vmem [#allocation5], %s595_s26  ;;  %1193 = vmatpush3.bf16.msra.mxu1 (%p591_p11), %v1081_v9  ;;  %1205 = vmatpush3.bf16.msra.mxu0 (%p591_p11), %v1087_v10 }
 0x361   : > { %v597_v40 = vld [vmem:[%s596_s3] sm:$0x1]  ;;  %1194 = vmatprep.subr.bf16.mxu1 (%p591_p11), %v1082_v2  ;;  %1206 = vmatprep.subr.bf16.mxu0 (%p591_p11), %v1088_v54 }
 0x362   : > { %v600_v63 = vadd.f32 %v599_v57, %v597_v40 }
 0x364   : > { %602 = vst.msk [vmem:[%s596_s3] sm:$0x1] %vm316_vm2, %v600_v63  ;;  %1195 = vmatpush3.bf16.msra.mxu1 (%p591_p11), %v1082_v2  ;;  %1207 = vmatpush3.bf16.msra.mxu0 (%p591_p11), %v1088_v54 }
 0x365   :  { %1196 = vmatprep.subr.bf16.mxu1 %v1083_v42  ;;  %1208 = vmatprep.subr.bf16.mxu0 %v1089_v21 }
 0x368   :  { %1197 = vmatpush3.bf16.msra.mxu1 %v1083_v42  ;;  %1209 = vmatpush3.bf16.msra.mxu0 %v1089_v21 }
 0x369   :  { %1198 = vmatprep.subr.bf16.mxu1 %v1084_v13  ;;  %1210 = vmatprep.subr.bf16.mxu0 %v1090_v14 }
 0x36b   :  { %v603_v38 = vld [vmem:[#allocation5] sm:$0xff]  ;;  %v605_v52 = vld [vmem:[#allocation5 + $0x10] sm:$0xff]  ;;  %v604_v43 = vld [vmem:[#allocation5 + $0x8] sm:$0xff] }
 0x36c   :  { %v606_v44 = vsel %vm172_vm1, %v603_v38, 0.0  ;;  %v612_v3 = vsel %vm172_vm1, %v605_v52, 0.0  ;;  %v609_v4 = vsel %vm172_vm1, %v604_v43, 0.0  ;;  %1199 = vmatpush3.bf16.msra.mxu1 %v1084_v13  ;;  %1211 = vmatpush3.bf16.msra.mxu0 %v1090_v14  ;;  %v1101_v14 = vld [vmem:[%s1917_s20] ss:$0 sm:$0xff] }
 0x36d   :  { %607 = vadd.xlane.f32.xlu0 %v606_v44  ;;  %613 = vadd.xlane.f32.xlu1 %v612_v3  ;;  %v1284_v44 = vld [vmem:[%s1916_s19] sm:$0xff]  }
 0x36e   :  { %1216 = vmatprep.subr.bf16.mxu1 %v1095_v15  ;;  %1228 = vmatprep.subr.bf16.mxu0 %v1284_v44 }
 0x36f   :  { %1201 = vmatmul.mubr.msk.bf16.vlgmr.msra.gmra.mrb[4].mxu1 %vm172_vm1, %v1699_v53 }
 0x370   :  { %1217 = vmatpush3.bf16.msra.mxu1 %v1095_v15 }
 0x371   :  { %610 = vadd.xlane.f32.xlu0 %v609_v4 }
 0x3fa   :  { %v608_v49 = vpop.xlane.xlu0 %607  ;;  %v614_v55 = vpop.xlane.xlu1 %613 }
 0x3fb   :  { %v615_v45 = vmul.f32 0.015625, %v608_v49  ;;  %v617_v50 = vmul.f32 0.015625, %v614_v55 }
 0x3fd   :  { %v618_v5 = vsub.f32 %v603_v38, %v615_v45  ;;  %v620_v6 = vsub.f32 %v605_v52, %v617_v50  ;;  %v1096_v52 = vcombine.low %v1624_v32, %v1629_v33  ;;  %v1285_v32 = vld [vmem:[%s1916_s19 + $0x8] sm:$0xff]  }
 0x3fe   :  { %v611_v51 = vpop.xlane.xlu0 %610 }
 0x3ff   :  { %v616_v41 = vmul.f32 0.015625, %v611_v51  ;;  %v621_v7 = vmul.f32 %v618_v5, %v618_v5  ;;  %v623_v56 = vmul.f32 %v620_v6, %v620_v6  ;;  %1218 = vmatprep.subr.bf16.mxu1 %v1096_v52 }
 0x400   :  { %1219 = vmatpush3.bf16.msra.mxu1 %v1096_v52 }
 0x401   :  { %v619_v48 = vsub.f32 %v604_v43, %v616_v41  ;;  %v624_v8 = vsel %vm172_vm1, %v621_v7, 0.0  ;;  %v630_v0 = vsel %vm172_vm1, %v623_v56, 0.0  ;;  %v1286_v7 = vld [vmem:[%s1916_s19 + $0x10] sm:$0xff]   ;;  %v1287_v56 = vld [vmem:[%s1916_s19 + $0x18] sm:$0xff]  }
 0x402   :  { %625 = vadd.xlane.f32.xlu1 %v624_v8 }
 0x403   :  { %v622_v58 = vmul.f32 %v619_v48, %v619_v48 }
 0x405   :  { %v627_v1 = vsel %vm172_vm1, %v622_v58, 0.0 }
 0x406   :  { %631 = vadd.xlane.f32.xlu1 %v630_v0  ;;  %628 = vadd.xlane.f32.xlu0 %v627_v1 }
 0x442   :  { %v1202_v40 = vpop.f32.mrb[4].mxu1 }
 0x443   :  { %v723_v63 = vpop.f32.mrb[5].mxu1 }
 0x444   :  { %v1203_v38 = vpop.f32.mrb[6].mxu1 }
 0x445   :  { %v726_v43 = vpop.f32.mrb[7].mxu1 }
 0x48f   :  { %v626_v16 = vpop.xlane.xlu1 %625 }
 0x490   :  { %v633_v17 = vmul.f32 0.015625, %v626_v16 }
 0x492   :  { %v636_v18 = vadd.f32 1e-05, %v633_v17 }
 0x493   :  { %v632_v22 = vpop.xlane.xlu1 %631  ;;  %v629_v23 = vpop.xlane.xlu0 %628 }
 0x494   :  { %1288 = vrsqrt.f32 %v636_v18  ;;  %v635_v19 = vmul.f32 0.015625, %v632_v22  ;;  %v634_v20 = vmul.f32 0.015625, %v629_v23 }
 0x496   :  { %v638_v24 = vadd.f32 1e-05, %v635_v19  ;;  %v637_v25 = vadd.f32 1e-05, %v634_v20  ;;  %v1108_v19 = vld [vmem:[%s1918_s21] ss:$0 sm:$0xff] }
 0x498   :  { %1290 = vrsqrt.f32 %v638_v24 }
 0x499   :  { %1292 = vrsqrt.f32 %v637_v25 }
 0x49e   :  { %v1289_v26 = vpop.eup %1288 }
 0x49f   :  { %v642_v27 = vmul.f32 %v1289_v26, %v618_v5 }
 0x4a1   :  { %v651_v31 = vmul.f32 %v1519_v11, %v642_v27 }
 0x4a2   :  { %v1291_v28 = vpop.eup %1290 }
 0x4a3   :  { %v1293_v53 = vpop.eup %1292  ;;  %v644_v46 = vmul.f32 %v1291_v28, %v620_v6  ;;  %v660_v62 = vadd.f32 %v1524_v12, %v651_v31 }
 0x4a4   :  { %v643_v30 = vmul.f32 %v1293_v53, %v619_v48 }
 0x4a5   :  { %v653_v47 = vmul.f32 %v1519_v11, %v644_v46 }
 0x4a6   :  { %v652_v60 = vmul.f32 %v1519_v11, %v643_v30  ;;  %v1097_v11 = vcombine.low %v1634_v34, %v1639_v35 }
 0x4a7   :  { %v662_v61 = vadd.f32 %v1524_v12, %v653_v47 }
 0x4a8   :  { %v661_v39 = vadd.f32 %v1524_v12, %v652_v60  ;;  %1220 = vmatprep.subr.bf16.mxu1 %v1097_v11  ;;  %v1098_v12 = vcombine.low %v1644_v36, %v1649_v37 }
 0x4a9   :  { %v664_v59 = vpack.c.bf16 %v662_v61, %v662_v61  ;;  %1221 = vmatpush3.bf16.msra.mxu1 %v1097_v11 }
 0x4aa   :  { %v663_v57 = vpack.c.bf16 %v661_v39, %v660_v62  ;;  %1222 = vmatprep.subr.bf16.mxu1 %v1098_v12 }
 0x4ac   :  { %1212 = vmatprep.mubr.msk.bf16.mxu0 %vm172_vm1, %v663_v57 }
 0x4ad   :  { %1213 = vmatmul.mubr.msk.bf16.vlgmr.msra.gmra.mrb[12].mxu0 %vm172_vm1, %v664_v59  ;;  %1223 = vmatpush3.bf16.msra.mxu1 %v1098_v12 }
 0x4ae   :  { %1229 = vmatpush3.bf16.msra.mxu0 %v1284_v44 }
 0x4af   :  { %1230 = vmatprep.subr.bf16.mxu0 %v1285_v32 }
 0x4b2   :  { %1231 = vmatpush3.bf16.msra.mxu0 %v1285_v32 }
 0x4b3   :  { %1232 = vmatprep.subr.bf16.mxu0 %v1286_v7 }
 0x4b6   :  { %1233 = vmatpush3.bf16.msra.mxu0 %v1286_v7 }
 0x4b7   :  { %1234 = vmatprep.subr.bf16.mxu0 %v1287_v56 }
 0x4ba   :  { %1235 = vmatpush3.bf16.msra.mxu0 %v1287_v56 }
 0x580   :  { %v1214_v33 = vpop.f32.mrb[12].mxu0 }
 0x581   :  { %v810_v34 = vadd.f32 %v1214_v33, %v1202_v40  ;;  %v801_v35 = vpop.f32.mrb[13].mxu0 }
 0x582   :  { %v802_v3 = vadd.f32 %v801_v35, %v723_v63  ;;  %v1215_v4 = vpop.f32.mrb[14].mxu0 }
 0x583   :  { %v823_v36 = vadd.f32 %v1609_v29, %v810_v34  ;;  %v804_v37 = vpop.f32.mrb[15].mxu0 }
 0x584   :  { %v821_v49 = vadd.f32 %v1609_v29, %v802_v3  ;;  %v805_v55 = vadd.f32 %v804_v37, %v726_v43 }
 0x585   :  { %v826_v50 = vmax.f32 %v823_v36, 0.0 }
 0x586   :  { %v822_v45 = vadd.f32 %v1609_v29, %v805_v55  ;;  %v824_v5 = vmax.f32 %v821_v49, 0.0  ;;  %v1094_v29 = vld [vmem:[%s1915_s18] ss:$0 sm:$0xff] }
 0x587   :  { %v828_v41 = vpack.c.bf16 %v826_v50, %v826_v50 }
 0x588   :  { %v825_v6 = vmax.f32 %v822_v45, 0.0 }
 0x58a   :  { %v827_v51 = vpack.c.bf16 %v825_v6, %v824_v5 }
 0x58c   :  { %1224 = vmatprep.mubr.msk.bf16.mxu1 %vm172_vm1, %v827_v51 }
 0x58d   :  { %1225 = vmatmul.mubr.msk.bf16.vlgmr.msra.gmra.mrb[8].mxu1 %vm172_vm1, %v828_v41 }
 0x660   :  { %v1226_v48 = vpop.f32.mrb[8].mxu1 }
 0x661   :  { %v908_v8 = vadd.f32 %v1226_v48, %v1094_v29  ;;  %v899_v0 = vpop.f32.mrb[9].mxu1 }
 0x662   :  { %v900_v58 = vadd.f32 %v1094_v29, %v899_v0  ;;  %v1227_v1 = vpop.f32.mrb[10].mxu1 }
 0x663   :  { %v902_v9 = vpop.f32.mrb[11].mxu1  ;;  %v915_v2 = vmax.f32 %v908_v8, 0.0 }
 0x664   :  { %v903_v10 = vadd.f32 %v1094_v29, %v902_v9  ;;  %v913_v54 = vmax.f32 %v900_v58, 0.0 }
 0x665   :  { %v925_v13 = vpack.c.bf16 %v915_v2, %v915_v2 }
 0x666   :  { %v914_v42 = vmax.f32 %v903_v10, 0.0 }
 0x668   :  { %v924_v21 = vpack.c.bf16 %v914_v42, %v913_v54 }
 0x66a   :  { %1236 = vmatprep.mubr.msk.bf16.mxu0 %vm172_vm1, %v924_v21 }
 0x66b   :  { %1237 = vmatmul.mubr.msk.bf16.vlgmr.msra.gmra.mrb[16].mxu0 %vm172_vm1, %v925_v13 }
 0x73e   :  { %v1238_v15 = vpop.f32.mrb[16].mxu0 }
 0x73f   :  { %v1006_v16 = vadd.f32 %v1238_v15, %v1101_v14  ;;  %v997_v17 = vpop.f32.mrb[17].mxu0 }
 0x740   :  { %v998_v18 = vadd.f32 %v1101_v14, %v997_v17  ;;  %v1239_v22 = vpop.f32.mrb[18].mxu0 }
 0x741   :  { %v1000_v23 = vpop.f32.mrb[19].mxu0  ;;  %v1013_v20 = vmax.f32 %v1006_v16, 0.0 }
 0x742   :  { %v1011_v24 = vmax.f32 %v998_v18, 0.0  ;;  %v1001_v25 = vadd.f32 %v1101_v14, %v1000_v23 }
 0x743   :  { %v1023_v46 = vmul.f32 %v1108_v19, %v1013_v20 }
 0x744   :  { %v1012_v26 = vmax.f32 %v1001_v25, 0.0  ;;  %v1021_v27 = vmul.f32 %v1108_v19, %v1011_v24 }
 0x745   :  { %v1030_v31 = vsel %vm172_vm1, %v1023_v46, 0.0 }
 0x746   :  { %v1024_v28 = vsel %vm172_vm1, %v1021_v27, 0.0  ;;  %v1022_v53 = vmul.f32 %v1108_v19, %v1012_v26 }
 0x747   :  { %1025 = vadd.xlane.f32.xlu0 %v1024_v28 }
 0x748   :  { %v1027_v30 = vsel %vm172_vm1, %v1022_v53, 0.0 }
 0x749   :  { %1028 = vadd.xlane.f32.xlu1 %v1027_v30 }
 0x74b   :  { %1031 = vadd.xlane.f32.xlu0 %v1030_v31 }
 0x7d4   :  { %v1026_v47 = vpop.xlane.xlu0 %1025 }
 0x7d5   :  { %1034 = vst.msk [vmem:[%s1919_s22] sm:$0xff] %vm1033_vm3, %v1026_v47 }
 0x7d6   :  { %v1029_v60 = vpop.xlane.xlu1 %1028 }
 0x7d7   :  { %1035 = vst.msk [vmem:[%s1919_s22 + $0x8] sm:$0xff] %vm1033_vm3, %v1029_v60 }
 0x7d8   :  { %v1032_v61 = vpop.xlane.xlu0 %1031 }
 0x7d9   :  { %1036 = vst.msk [vmem:[%s1919_s22 + $0x10] sm:$0xff] %vm1033_vm3, %v1032_v61 }

// kernel: gnn_policy_forward.2
= control target key start
LH: loop header
LB: loop body
LE: loop exit
PB: predicated region body
PF: predicated region fallthrough
CT: control target
= control target key end

     0   :  { %s1800_s6 = smov 2   ;;  %s1801_s10 = smov 3   ;;  %s2391_s0 = inlined_call_operand.smem [shape: u32[33], index: -1, kind: input, shape index: {}] }
   0x1   :  { %s1845_s5 = sld [smem:[%s2391_s0]]   ;;  %s1802_s14 = smov 4  }
   0x2   :  { %s1850_s9 = sld [smem:[%s2391_s0 + %s1800_s6]]   ;;  %s1803_s18 = smov 5  }
   0x3   :  { %s1855_s13 = sld [smem:[%s2391_s0 + %s1801_s10]]   ;;  %s1804_s22 = smov 6  }
   0x4   :  { %s1860_s17 = sld [smem:[%s2391_s0 + %s1802_s14]]   ;;  %s1805_s26 = smov 7  }
   0x5   :  { %s1865_s21 = sld [smem:[%s2391_s0 + %s1803_s18]]   ;;  %s1806_s30 = smov 8  }
   0x6   :  { %s1870_s25 = sld [smem:[%s2391_s0 + %s1804_s22]]   ;;  %s1807_s4 = smov 9  }
   0x7   :  { %s1875_s29 = sld [smem:[%s2391_s0 + %s1805_s26]]   ;;  %s1808_s10 = smov 10  }
   0x8   :  { %s1880_s3 = sld [smem:[%s2391_s0 + %s1806_s30]]   ;;  %s1809_s15 = smov 11  }
   0x9   :  { %s1885_s8 = sld [smem:[%s2391_s0 + %s1807_s4]]   ;;  %s1810_s20 = smov 12  }
   0xa   :  { %s1890_s14 = sld [smem:[%s2391_s0 + %s1808_s10]]   ;;  %s1811_s26 = smov 13  }
   0xb   :  { %s1895_s19 = sld [smem:[%s2391_s0 + %s1809_s15]]   ;;  %s1812_s1 = smov 14  }
   0xc   :  { %s1900_s24 = sld [smem:[%s2391_s0 + %s1810_s20]]   ;;  %s1813_s7 = smov 15  }
   0xd   :  { %2397 = sst [smem:[#allocation10_spill]] %s1875_s29  ;;  %s1814_s15 = smov 16  }
   0xe   :  { %s1905_s30 = sld [smem:[%s2391_s0 + %s1811_s26]]   ;;  %s1815_s22 = smov 17  }
   0xf   :  { %2398 = sst [smem:[#allocation11_spill]] %s1885_s8  ;;  %s1816_s28 = smov 18  }
  0x10   :  { %s1910_s6 = sld [smem:[%s2391_s0 + %s1812_s1]]  }
  0x11   :  { %s1915_s12 = sld [smem:[%s2391_s0 + %s1813_s7]]   ;;  %s1817_s7 = smov 19  }
  0x12   :  { %s1920_s20 = sld [smem:[%s2391_s0 + %s1814_s15]]   ;;  %s1818_s15 = smov 20  }
  0x13   :  { %s1925_s27 = sld [smem:[%s2391_s0 + %s1815_s22]]   ;;  %s1819_s22 = smov 21  }
  0x14   :  { %2399 = sst [smem:[#allocation12_spill]] %s1905_s30 }
  0x15   :  { %s1930_s4 = sld [smem:[%s2391_s0 + %s1816_s28]]   ;;  %s1820_s28 = smov 22  }
  0x16   :  { %s1935_s8 = sld [smem:[%s2391_s0 + %s1817_s7]]   ;;  %s1821_s7 = smov 23  }
  0x17   :  { %2400 = sst [smem:[#allocation13_spill]] %s1915_s12 }
  0x18   :  { %2401 = sst [smem:[#allocation14_spill]] %s1920_s20 }
  0x19   :  { %2402 = sst [smem:[#allocation15_spill]] %s1925_s27 }
  0x1a   :  { %s1940_s12 = sld [smem:[%s2391_s0 + %s1818_s15]]   ;;  %s1822_s15 = smov 24  }
  0x1b   :  { %2403 = sst [smem:[#allocation16_spill]] %s1930_s4  ;;  %s1828_s4 = smov 30  }
  0x1c   :  { %s1945_s27 = sld [smem:[%s2391_s0 + %s1819_s22]]   ;;  %s1823_s22 = smov 25  }
  0x1d   :  { %s1950_s20 = sld [smem:[%s2391_s0 + %s1820_s28]]   ;;  %s1824_s28 = smov 26  }
  0x1e   :  { %s1955_s29 = sld [smem:[%s2391_s0 + %s1821_s7]]   ;;  %s1825_s7 = smov 27  }
  0x1f   :  { %s1960_s30 = sld [smem:[%s2391_s0 + %s1822_s15]]   ;;  %s1826_s15 = smov 28  }
  0x20   :  { %s1965_s1 = sld [smem:[%s2391_s0 + %s1823_s22]]   ;;  %s1827_s22 = smov 29  }
  0x21   :  { %s1970_s10 = sld [smem:[%s2391_s0 + %s1824_s28]]  }
  0x22   :  { %s1975_s16 = sld [smem:[%s2391_s0 + %s1825_s7]]  }
  0x23   :  { %2404 = sst [smem:[#allocation17_spill]] %s1950_s20 }
  0x24   :  { %2405 = sst [smem:[#allocation18_spill]] %s1955_s29  ;;  %s1829_s29 = smov 31  }
  0x25   :  { %2406 = sst [smem:[#allocation19_spill]] %s1960_s30  ;;  %s1830_s30 = smov 32  }
  0x26   :  { %2407 = sst [smem:[#allocation20_spill]] %s1965_s1  ;;  %s71_s1 = sshll.u32 %s1845_s5, 4  ;;  %s72_s1 = int_to_ptr.vmem [resolvable:$true] %s71_s1 }
  0x27   :  { %2408 = sst [smem:[#allocation21_spill]] %s1970_s10  ;;  %p1763_p1 = scmp.lt.s32.totalorder %s72_s1, %s72_s1 }
  0x28   :  { %2409 = sst [smem:[#allocation22_spill]] %s1975_s16 }
  0x29   :  { %s1980_s23 = sld [smem:[%s2391_s0 + %s1826_s15]]  }
  0x2a   :  { %s1985_s20 = sld [smem:[%s2391_s0 + %s1827_s22]]   ;;  %s1758_s22 = scalar_lea.vmem %s72_s1, 16 }
  0x2b   :  { %s1990_s10 = sld [smem:[%s2391_s0 + %s1828_s4]]   ;;  %p1759_p0 = scmp.ne.s32.totalorder %s72_s1, %s1758_s22 }
  0x2c   :  { %s1995_s16 = sld [smem:[%s2391_s0 + %s1829_s29]]   ;;  %p1764_p2 = scmp.lt.s32.totalorder %s1758_s22, %s1758_s22 }
  0x2e   :  { %p1765_p3 = por %p1764_p2, %p1763_p1 }
  0x2f   :  { %2410 = sst [smem:[#allocation23_spill]] %s1980_s23 }
  0x30   :  { %s2000_s23 = sld [smem:[%s2391_s0 + %s1830_s30]]   ;;  %p1766_p4 = pnand %p1765_p3, %p1759_p0 }
  0x32   :  { %1769 = shalt.err (!%p1766_p4)  }
  0x33   :  { %s1831_s26 = smov [#allocation7]   ;;  %s1832_s4 = smov 1  }
  0x34   :  { %74 = dma.vmem_to_smem %s72_s1, 16, %s1831_s26, [#allocation6] }
  0x35   :  { %s1394_s29 = sld [smem:[%s2391_s0 + %s1832_s4]]  }
  0x3b   :  { %s75_s7 = sshll.u32 %s1394_s29, 4  ;;  %s76_s7 = int_to_ptr.vmem [resolvable:$true] %s75_s7 }
  0x3c   :  { %s1770_s11 = scalar_lea.vmem %s76_s7, 16  ;;  %p1775_p6 = scmp.lt.s32.totalorder %s76_s7, %s76_s7 }
  0x3d   :  { %p1771_p5 = scmp.ne.s32.totalorder %s76_s7, %s1770_s11  ;;  %p1776_p7 = scmp.lt.s32.totalorder %s1770_s11, %s1770_s11 }
  0x3f   :  { %p1777_p8 = por %p1776_p7, %p1775_p6 }
  0x41   :  { %p1778_p9 = pnand %p1777_p8, %p1771_p5 }
  0x43   :  { %1781 = shalt.err (!%p1778_p9)  }
  0x44   :  { %s1833_s5 = smov [#allocation8]  }
  0x45   :  { %78 = dma.vmem_to_smem %s76_s7, 16, %s1833_s5, [#allocation6] }
  0x46   :  { %1790 = dma.done.wait [#allocation6], 32 }
  0x47   :  { %1791 = vsyncadd [#allocation6], 4294967264 }
  0x48   :  { %80 = sfence }
  0x49   :  { %v337_v0 = vld [vmem:[%s1855_s13] sm:$0xff]  ;;  %vm355_vm0 = vcmask 154624   ;;  %v339_v1 = vld [vmem:[%s1855_s13 + $0x10] sm:$0xff]  ;;  %v338_v2 = vld [vmem:[%s1855_s13 + $0x8] sm:$0xff]  ;;  %vm155_vm1 = vcmask 39936   ;;  %vm437_vm2 = vcmask 1040384  }
  0x4a   :  { %v356_v3 = vsel %vm355_vm0, %v337_v0, 0.0  ;;  %v362_v4 = vsel %vm355_vm0, %v339_v1, 0.0  ;;  %v359_v5 = vsel %vm355_vm0, %v338_v2, 0.0  ;;  %v141_v6 = vld [vmem:[%s1850_s9 + $0x8] sm:$0xff]  ;;  %v140_v7 = vld [vmem:[%s1850_s9] sm:$0xff]  ;;  %vm209_vm3 = vcmask 1041408  }
  0x4b   :  { %357 = vadd.xlane.f32.xlu0 %v356_v3  ;;  %363 = vadd.xlane.f32.xlu1 %v362_v4  ;;  %v159_v8 = vsel %vm155_vm1, %v141_v6, 0.0  ;;  %v156_v9 = vsel %vm155_vm1, %v140_v7, 0.0  ;;  %v1710_v35 = vld [vmem:[%s1900_s24] sm:$0xff]   ;;  %v1711_v36 = vld [vmem:[%s1900_s24 + $0x8] ss:$0 sps:$4 sm:$0x33]  }
  0x4c   :  { %1561 = vmatprep.subr.bf16.mxu0 %v1710_v35  ;;  %v1834_v37 = vmov 65535   ;;  %v1835_v41 = vmov 0.0   ;;  %vm210_vm4 = vcmask 1042432   ;;  %v144_v43 = vld [vmem:[%s1870_s25] sm:$0x7]  ;;  %vm1836_vm5 = vmmov 0  }
  0x4d   :  { %v438_v38 = vsel %vm437_vm2, 4294967295, %v1834_v37  ;;  %1562 = vmatpush3.bf16.msra.mxu0 %v1710_v35  ;;  %1543 = vmatprep.subr.bf16.mxu1 %v1835_v41  ;;  %v211_v42 = vsel %vm209_vm3, 4294967295, %v1834_v37  ;;  %v1712_v46 = vld [vmem:[%s1910_s6] sm:$0xff]   ;;  %s2411_s0 = sld [smem:[#allocation17_spill]]  ;;  %s2412_s9 = sld [smem:[#allocation19_spill]]  ;;  %vm290_vm6 = vcmask 523264  }
  0x4e   :  { %v439_v39 = vsel %vm209_vm3, %v438_v38, 0  ;;  %v212_v44 = vsel %vm210_vm4, %v211_v42, 0  ;;  %1545 = vmatprep.mubr.msk.bf16.mxu1 %vm1836_vm5, %v1835_v41  ;;  %s2413_s13 = sld [smem:[#allocation20_spill]]  ;;  %s2416_s25 = sld [smem:[#allocation23_spill]] }
  0x4f   :  { %360 = vadd.xlane.f32.xlu0 %v359_v5  ;;  %157 = vadd.xlane.f32.xlu1 %v156_v9  ;;  %v441_v40 = vand.u32 %v1711_v36, %v439_v39  ;;  %v214_v45 = vand.u32 %v212_v44, %v144_v43  ;;  %v1437_v5 = vld [vmem:[%s1895_s19] ss:$0 sm:$0xff]  ;;  %s2420_s19 = sld [smem:[#allocation14_spill]]  ;;  %s2421_s24 = sld [smem:[#allocation13_spill]] }
  0x51   :  { %1563 = vmatprep.subr.bf16.mxu0 %v441_v40  ;;  %1544 = vmatpush3.bf16.msra.mxu1 %v214_v45 }
  0x52   :  { %1564 = vmatpush3.bf16.msra.mxu0 %v441_v40  ;;  %1549 = vmatprep.subr.bf16.mxu1 %v1835_v41 }
  0x53   :  { %160 = vadd.xlane.f32.xlu0 %v159_v8  ;;  %1569 = vmatprep.subr.bf16.mxu0 %v1712_v46  ;;  %v2084_v35 = vld [vmem:[%s2411_s0] sm:$0xf]  ;;  %v2087_v36 = vld [vmem:[%s2411_s0 + $0x4] sm:$0xf]  ;;  %v2090_v37 = vld [vmem:[%s2411_s0 + $0x8] sm:$0xf] }
  0x54   :  { %v2093_v38 = vld [vmem:[%s2411_s0 + $0xc] sm:$0xf]  ;;  %v2096_v39 = vld [vmem:[%s2411_s0 + $0x10] sm:$0xf]  ;;  %v2099_v40 = vld [vmem:[%s2411_s0 + $0x14] sm:$0xf] }
  0x55   :  { %v2102_v42 = vld [vmem:[%s2411_s0 + $0x18] sm:$0xf]  ;;  %v2105_v43 = vld [vmem:[%s2411_s0 + $0x1c] sm:$0xf]  ;;  %v2108_v44 = vld [vmem:[%s2412_s9] ss:$0 sm:$0xff] }
  0x56   :  { %v2111_v45 = vld [vmem:[%s2413_s13] ss:$0 sm:$0xff] }
  0xd8   :  { %v358_v10 = vpop.xlane.xlu0 %357  ;;  %v364_v11 = vpop.xlane.xlu1 %363 }
  0xd9   :  { %v366_v12 = vmul.f32 0.05263158, %v358_v10  ;;  %v368_v13 = vmul.f32 0.05263158, %v364_v11  ;;  %v1426_v10 = vld [vmem:[%s1860_s17] ss:$0 sm:$0xff] }
  0xda   :  { %s2414_s17 = sld [smem:[#allocation21_spill]] }
  0xdb   :  { %v2016_v14 = vsub.f32 %v337_v0, %v366_v12  ;;  %v2018_v15 = vsub.f32 %v339_v1, %v368_v13  ;;  %v1436_v0 = vld [vmem:[%s1890_s14] ss:$0 sm:$0xff]  ;;  %s2419_s14 = sld [smem:[#allocation10_spill]] }
  0xdc   :  { %v361_v16 = vpop.xlane.xlu0 %360  ;;  %v158_v17 = vpop.xlane.xlu1 %157 }
  0xdd   :  { %v367_v18 = vmul.f32 0.05263158, %v361_v16  ;;  %v372_v19 = vmul.f32 %v2016_v14, %v2016_v14  ;;  %v163_v20 = vmul.f32 0.2, %v158_v17  ;;  %v374_v21 = vmul.f32 %v2018_v15, %v2018_v15 }
  0xdf   :  { %v2024_v22 = vsub.f32 %v338_v2, %v367_v18  ;;  %v375_v23 = vsel %vm355_vm0, %v372_v19, 0.0  ;;  %v2027_v24 = vsub.f32 %v140_v7, %v163_v20  ;;  %v381_v28 = vsel %vm355_vm0, %v374_v21, 0.0  ;;  %v1427_v18 = vld [vmem:[%s1865_s21] ss:$0 sm:$0xff]  ;;  %s2415_s21 = sld [smem:[#allocation22_spill]] }
  0xe0   :  { %v161_v25 = vpop.xlane.xlu0 %160  ;;  %376 = vadd.xlane.f32.xlu1 %v375_v23 }
  0xe1   :  { %v164_v26 = vmul.f32 0.2, %v161_v25  ;;  %v373_v27 = vmul.f32 %v2024_v22, %v2024_v22  ;;  %v167_v29 = vmul.f32 %v2027_v24, %v2027_v24  ;;  %v1713_v25 = vld [vmem:[%s1880_s3] sm:$0xff]  }
  0xe3   :  { %v2034_v30 = vsub.f32 %v141_v6, %v164_v26  ;;  %v378_v31 = vsel %vm355_vm0, %v373_v27, 0.0  ;;  %v169_v33 = vsel %vm155_vm1, %v167_v29, 0.0  ;;  %v1715_v27 = vld [vmem:[%s1880_s3 + $0x8] sm:$0xff]   ;;  %v1717_v29 = vld [vmem:[%s1880_s3 + $0x10] sm:$0xff]  }
  0xe4   :  { %379 = vadd.xlane.f32.xlu0 %v378_v31  ;;  %382 = vadd.xlane.f32.xlu1 %v381_v28  ;;  %v1716_v28 = vld [vmem:[%s1910_s6 + $0x10] sm:$0xff]   ;;  %v1719_v31 = vld [vmem:[%s1880_s3 + $0x18] sm:$0xff]   ;;  %s2417_s3 = sld [smem:[#allocation16_spill]] }
  0xe5   :  { %v168_v32 = vmul.f32 %v2034_v30, %v2034_v30 }
  0xe7   :  { %v172_v34 = vsel %vm155_vm1, %v168_v32, 0.0  ;;  %v2075_v32 = vld [vmem:[%s1935_s8] sm:$0x1]  ;;  %s2418_s8 = sld [smem:[#allocation12_spill]] }
  0xe8   :  { %173 = vadd.xlane.f32.xlu1 %v172_v34  ;;  %170 = vadd.xlane.f32.xlu0 %v169_v33  ;;  %v2078_v33 = vld [vmem:[%s1940_s12] ss:$0 sm:$0xff]  ;;  %s2423_s12 = sld [smem:[#allocation15_spill]] }
  0xe9   :  { %v2081_v34 = vld [vmem:[%s1945_s27] ss:$0 sm:$0xff] }
 0x16d   :  { %v377_v47 = vpop.xlane.xlu1 %376 }
 0x16e   :  { %v384_v48 = vmul.f32 0.05263158, %v377_v47  ;;  %v2117_v47 = vld [vmem:[%s2414_s17 + $0x4] sm:$0xf] }
 0x170   :  { %v387_v49 = vadd.f32 1e-05, %v384_v48  ;;  %v2120_v48 = vld [vmem:[%s2414_s17 + $0x8] sm:$0xf] }
 0x171   :  { %v380_v50 = vpop.xlane.xlu0 %379  ;;  %v383_v51 = vpop.xlane.xlu1 %382 }
 0x172   :  { %1728 = vrsqrt.f32 %v387_v49  ;;  %v385_v52 = vmul.f32 0.05263158, %v380_v50  ;;  %v386_v53 = vmul.f32 0.05263158, %v383_v51  ;;  %v2123_v49 = vld [vmem:[%s2414_s17 + $0xc] sm:$0xf] }
 0x173   :  { %v2126_v50 = vld [vmem:[%s2414_s17 + $0x10] sm:$0xf]  ;;  %v2129_v51 = vld [vmem:[%s2414_s17 + $0x14] sm:$0xf] }
 0x174   :  { %v388_v54 = vadd.f32 1e-05, %v385_v52  ;;  %v389_v55 = vadd.f32 1e-05, %v386_v53  ;;  %v2132_v52 = vld [vmem:[%s2414_s17 + $0x18] sm:$0xf] }
 0x175   :  { %v171_v56 = vpop.xlane.xlu0 %170  ;;  %v174_v57 = vpop.xlane.xlu1 %173  ;;  %v2135_v53 = vld [vmem:[%s2414_s17 + $0x1c] sm:$0xf] }
 0x176   :  { %1730 = vrsqrt.f32 %v388_v54  ;;  %v175_v58 = vmul.f32 0.2, %v171_v56  ;;  %v176_v59 = vmul.f32 0.2, %v174_v57  ;;  %v2138_v54 = vld [vmem:[%s2415_s21] sm:$0xf] }
 0x177   :  { %1732 = vrsqrt.f32 %v389_v55  ;;  %v2141_v55 = vld [vmem:[%s2415_s21 + $0x4] sm:$0xf]  ;;  %v2144_v56 = vld [vmem:[%s2415_s21 + $0x8] sm:$0xf]  ;;  %v2147_v57 = vld [vmem:[%s2415_s21 + $0xc] sm:$0xf] }
 0x178   :  { %v177_v60 = vadd.f32 1e-05, %v175_v58  ;;  %v178_v61 = vadd.f32 1e-05, %v176_v59  ;;  %v2150_v58 = vld [vmem:[%s2415_s21 + $0x10] sm:$0xf] }
 0x179   :  { %v2153_v59 = vld [vmem:[%s2415_s21 + $0x14] sm:$0xf] }
 0x17a   :  { %1734 = vrsqrt.f32 %v177_v60  ;;  %v2156_v60 = vld [vmem:[%s2415_s21 + $0x18] sm:$0xf] }
 0x17b   :  { %1736 = vrsqrt.f32 %v178_v61  ;;  %v2159_v61 = vld [vmem:[%s2415_s21 + $0x1c] sm:$0xf] }
 0x17c   :  { %v1729_v62 = vpop.eup %1728 }
 0x17d   :  { %v393_v63 = vmul.f32 %v1729_v62, %v2016_v14  ;;  %v2162_v62 = vld [vmem:[%s2416_s25] ss:$0 sm:$0xff] }
 0x17f   :  { %v402_v4 = vmul.f32 %v1436_v0, %v393_v63  ;;  %v2165_v63 = vld [vmem:[%s1985_s20] sm:$0xf] }
 0x180   :  { %v1731_v1 = vpop.eup %1730 }
 0x181   :  { %v1733_v2 = vpop.eup %1732  ;;  %v394_v3 = vmul.f32 %v1731_v1, %v2024_v22  ;;  %v411_v13 = vadd.f32 %v1437_v5, %v402_v4  ;;  %v1714_v22 = vld [vmem:[%s1910_s6 + $0x8] sm:$0xff]   ;;  %v2180_v4 = vld [vmem:[%s1985_s20 + $0x14] sm:$0xf] }
 0x182   :  { %v395_v6 = vmul.f32 %v1733_v2, %v2018_v15  ;;  %v2171_v1 = vld [vmem:[%s1985_s20 + $0x8] sm:$0xf]  ;;  %v2174_v2 = vld [vmem:[%s1985_s20 + $0xc] sm:$0xf] }
 0x183   :  { %v403_v7 = vmul.f32 %v1436_v0, %v394_v3  ;;  %v2177_v3 = vld [vmem:[%s1985_s20 + $0x10] sm:$0xf] }
 0x184   :  { %v1735_v8 = vpop.eup %1734  ;;  %v404_v9 = vmul.f32 %v1436_v0, %v395_v6  ;;  %v2168_v0 = vld [vmem:[%s1985_s20 + $0x4] sm:$0xf]  ;;  %v2186_v6 = vld [vmem:[%s1985_s20 + $0x1c] sm:$0xf] }
 0x185   :  { %v1737_v11 = vpop.eup %1736  ;;  %v181_v12 = vmul.f32 %v1735_v8, %v2027_v24  ;;  %v412_v14 = vadd.f32 %v1437_v5, %v403_v7  ;;  %v2189_v7 = vld [vmem:[%s1990_s10] ss:$0 sm:$0xff] }
 0x186   :  { %v182_v16 = vmul.f32 %v1737_v11, %v2034_v30  ;;  %v413_v17 = vadd.f32 %v1437_v5, %v404_v9  ;;  %v1718_v30 = vld [vmem:[%s1910_s6 + $0x18] sm:$0xff]   ;;  %v1721_v8 = vld [vmem:[%s2417_s3] sm:$0xff]   ;;  %s2422_s6 = sld [smem:[#allocation11_spill]] }
 0x187   :  { %v414_v19 = vpack.c.bf16 %v412_v14, %v411_v13  ;;  %v189_v20 = vmul.f32 %v1426_v10, %v181_v12  ;;  %v2183_v5 = vld [vmem:[%s1985_s20 + $0x18] sm:$0xf]  ;;  %v1438_v9 = vld [vmem:[%s2418_s8] ss:$0 sm:$0xff]  ;;  %s1792_s20 = smov 0  }
 0x188   :  { %v415_v21 = vpack.c.bf16 %v413_v17, %v413_v17  ;;  %v190_v15 = vmul.f32 %v1426_v10, %v182_v16  ;;  %v1428_v16 = vld [vmem:[%s2419_s14] ss:$0 sm:$0xff] }
 0x189   :  { %1565 = vmatprep.mubr.msk.bf16.mxu0 %vm355_vm0, %v414_v19  ;;  %v197_v23 = vadd.f32 %v1427_v18, %v189_v20 }
 0x18a   :  { %1566 = vmatmul.mubr.msk.bf16.vlgmr.msra.gmra.mrb[0].mxu0 %vm355_vm0, %v415_v21  ;;  %v198_v24 = vadd.f32 %v1427_v18, %v190_v15 }
 0x18b   :  { %1570 = vmatpush3.bf16.msra.mxu0 %v1712_v46  ;;  %v2114_v46 = vld [vmem:[%s2414_s17] sm:$0xf] }
 0x18c   :  { %v199_v26 = vpack.c.bf16 %v198_v24, %v197_v23  ;;  %1571 = vmatprep.subr.bf16.mxu0 %v1714_v22 }
 0x18e   :  { %1546 = vmatmul.mubr.msk.bf16.vlgmr.msra.gmra.mrb[0].mxu1 %vm155_vm1, %v199_v26 }
 0x18f   :  { %1550 = vmatpush3.bf16.msra.mxu1 %v1713_v25  ;;  %1572 = vmatpush3.bf16.msra.mxu0 %v1714_v22 }
 0x190   :  { %1551 = vmatprep.subr.bf16.mxu1 %v1835_v41  ;;  %1557 = vmatprep.mubr.msk.bf16.mxu1 %vm1836_vm5, %v1835_v41 }
 0x191   :  { %1573 = vmatprep.subr.bf16.mxu0 %v1716_v28 }
 0x193   :  { %1552 = vmatpush3.bf16.msra.mxu1 %v1715_v27  ;;  %1574 = vmatpush3.bf16.msra.mxu0 %v1716_v28 }
 0x194   :  { %1553 = vmatprep.subr.bf16.mxu1 %v1835_v41  ;;  %1575 = vmatprep.subr.bf16.mxu0 %v1718_v30 }
 0x197   :  { %1554 = vmatpush3.bf16.msra.mxu1 %v1717_v29  ;;  %1576 = vmatpush3.bf16.msra.mxu0 %v1718_v30 }
 0x198   :  { %1555 = vmatprep.subr.bf16.mxu1 %v1835_v41  ;;  %1593 = vmatprep.subr.bf16.mxu0 %v1721_v8 }
 0x19b   :  { %1556 = vmatpush3.bf16.msra.mxu1 %v1719_v31  ;;  %v1723_v31 = vld [vmem:[%s2417_s3 + $0x8] sm:$0xff]  }
 0x19c   :  { %1581 = vmatprep.subr.bf16.mxu1 %v1835_v41 }
 0x25d   :  { %v1567_v10 = vpop.f32.mrb[0].mxu0 }
 0x25e   :  { %v486_v11 = vadd.f32 %v1567_v10, %v1438_v9  ;;  %v477_v12 = vpop.f32.mrb[1].mxu0 }
 0x25f   :  { %v478_v13 = vadd.f32 %v1438_v9, %v477_v12  ;;  %v1568_v14 = vpop.f32.mrb[2].mxu0  ;;  %v1724_v12 = vld [vmem:[%s2420_s19 + $0x10] sm:$0xff]  }
 0x260   :  { %v480_v17 = vpop.f32.mrb[3].mxu0  ;;  %v493_v20 = vmax.f32 %v486_v11, 0.0  ;;  %v1722_v11 = vld [vmem:[%s2420_s19 + $0x8] sm:$0xff]   ;;  %v1727_v14 = vld [vmem:[%s2417_s3 + $0x18] sm:$0xff]  }
 0x261   :  { %v250_v18 = vpop.f32.mrb[0].mxu1  ;;  %v481_v19 = vadd.f32 %v1438_v9, %v480_v17  ;;  %v491_v22 = vmax.f32 %v478_v13, 0.0  ;;  %v1720_v9 = vld [vmem:[%s2420_s19] sm:$0xff]   ;;  %v1726_v13 = vld [vmem:[%s2420_s19 + $0x18] sm:$0xff]  }
 0x262   :  { %v251_v21 = vadd.f32 %v1428_v16, %v250_v18  ;;  %v1547_v15 = vpop.f32.mrb[1].mxu1  ;;  %v495_v28 = vpack.c.bf16 %v493_v20, %v493_v20  ;;  %v1430_v18 = vld [vmem:[%s2422_s6] ss:$0 sm:$0xff] }
 0x263   :  { %v492_v23 = vmax.f32 %v481_v19, 0.0  ;;  %v253_v24 = vpop.f32.mrb[2].mxu1 }
 0x264   :  { %v254_v25 = vadd.f32 %v1428_v16, %v253_v24  ;;  %v1548_v26 = vpop.f32.mrb[3].mxu1  ;;  %v257_v29 = vmax.f32 %v251_v21, 0.0  ;;  %v1443_v16 = vld [vmem:[%s2421_s24] ss:$0 sm:$0xff] }
 0x265   :  { %v494_v27 = vpack.c.bf16 %v492_v23, %v491_v22 }
 0x266   :  { %v258_v30 = vmax.f32 %v254_v25, 0.0 }
 0x267   :  { %1577 = vmatprep.mubr.msk.bf16.mxu0 %vm290_vm6, %v494_v27 }
 0x268   :  { %v259_v10 = vpack.c.bf16 %v258_v30, %v257_v29  ;;  %1578 = vmatmul.mubr.msk.bf16.vlgmr.msra.gmra.mrb[4].mxu0 %vm290_vm6, %v495_v28 }
 0x269   :  { %1594 = vmatpush3.bf16.msra.mxu0 %v1721_v8  ;;  %v1725_v8 = vld [vmem:[%s2417_s3 + $0x10] sm:$0xff]  }
 0x26a   :  { %1558 = vmatmul.mubr.msk.bf16.vlgmr.msra.gmra.mrb[4].mxu1 %vm290_vm6, %v259_v10  ;;  %1595 = vmatprep.subr.bf16.mxu0 %v1723_v31 }
 0x26b   :  { %1582 = vmatpush3.bf16.msra.mxu1 %v1720_v9  ;;  %1589 = vmatprep.mubr.msk.bf16.mxu1 %vm1836_vm5, %v1835_v41 }
 0x26c   :  { %1583 = vmatprep.subr.bf16.mxu1 %v1835_v41 }
 0x26d   :  { %1596 = vmatpush3.bf16.msra.mxu0 %v1723_v31 }
 0x26e   :  { %1597 = vmatprep.subr.bf16.mxu0 %v1725_v8 }
 0x26f   :  { %1584 = vmatpush3.bf16.msra.mxu1 %v1722_v11 }
 0x270   :  { %1585 = vmatprep.subr.bf16.mxu1 %v1835_v41 }
 0x271   :  { %1598 = vmatpush3.bf16.msra.mxu0 %v1725_v8 }
 0x272   :  { %1599 = vmatprep.subr.bf16.mxu0 %v1727_v14 }
 0x273   :  { %1586 = vmatpush3.bf16.msra.mxu1 %v1724_v12 }
 0x274   :  { %1587 = vmatprep.subr.bf16.mxu1 %v1835_v41 }
 0x275   :  { %1600 = vmatpush3.bf16.msra.mxu0 %v1727_v14  ;;  %v1450_v14 = vld [vmem:[%s2423_s12] ss:$0 sm:$0xff] }
 0x277   :  { %1588 = vmatpush3.bf16.msra.mxu1 %v1726_v13 }
 0x33b   :  { %v1579_v17 = vpop.f32.mrb[4].mxu0 }
 0x33c   :  { %v575_v19 = vadd.f32 %v1579_v17, %v1443_v16  ;;  %v566_v20 = vpop.f32.mrb[5].mxu0 }
 0x33d   :  { %v328_v21 = vpop.f32.mrb[4].mxu1  ;;  %v567_v15 = vadd.f32 %v1443_v16, %v566_v20  ;;  %v1580_v22 = vpop.f32.mrb[6].mxu0 }
 0x33e   :  { %v582_v23 = vmax.f32 %v575_v19, 0.0  ;;  %v329_v24 = vadd.f32 %v1430_v18, %v328_v21  ;;  %v1559_v25 = vpop.f32.mrb[5].mxu1  ;;  %v569_v26 = vpop.f32.mrb[7].mxu0 }
 0x33f   :  { %v580_v27 = vmax.f32 %v567_v15, 0.0  ;;  %v331_v28 = vpop.f32.mrb[6].mxu1  ;;  %v570_v29 = vadd.f32 %v1443_v16, %v569_v26 }
 0x340   :  { %585 = vst.msk [vmem:[%s2000_s23 + $0x10] sm:$0xff] %vm290_vm6, %v582_v23  ;;  %v332_v30 = vadd.f32 %v1430_v18, %v331_v28  ;;  %v1560_v31 = vpop.f32.mrb[7].mxu1  ;;  %v335_v10 = vmax.f32 %v329_v24, 0.0  ;;  %v721_v8 = vpack.c.bf16 %v582_v23, %v582_v23 }
 0x341   :  { %583 = vst.msk [vmem:[%s2000_s23] sm:$0xff] %vm290_vm6, %v580_v27  ;;  %v581_v9 = vmax.f32 %v570_v29, 0.0 }
 0x342   :  { %v336_v11 = vmax.f32 %v332_v30, 0.0 }
 0x343   :  { %584 = vst.msk [vmem:[%s2000_s23 + $0x8] sm:$0xff] %vm290_vm6, %v581_v9  ;;  %v720_v12 = vpack.c.bf16 %v581_v9, %v580_v27 }
 0x344   :  { %v2217_v13 = vpack.c.bf16 %v336_v11, %v335_v10 }
 0x345   :  { %1601 = vmatprep.mubr.msk.bf16.mxu0 %vm290_vm6, %v720_v12 }
 0x346   :  { %1590 = vmatmul.mubr.msk.bf16.vlgmr.msra.gmra.mrb[8].mxu1 %vm290_vm6, %v2217_v13  ;;  %1602 = vmatmul.mubr.msk.bf16.vlgmr.msra.gmra.mrb[8].mxu0 %vm290_vm6, %v721_v8 }
 0x419   :  { %v711_v16 = vpop.f32.mrb[8].mxu1  ;;  %v1603_v17 = vpop.f32.mrb[8].mxu0 }
 0x41a   :  { %v712_v18 = vadd.f32 %v1450_v14, %v711_v16  ;;  %v1591_v19 = vpop.f32.mrb[9].mxu1  ;;  %802 = vst.msk [vmem:[#allocation3 + $0x10] sm:$0xff] %vm290_vm6, %v1603_v17  ;;  %v786_v20 = vpop.f32.mrb[9].mxu0 }
 0x41b   :  { %v714_v21 = vpop.f32.mrb[10].mxu1  ;;  %800 = vst.msk [vmem:[#allocation3] sm:$0xff] %vm290_vm6, %v786_v20  ;;  %v1604_v15 = vpop.f32.mrb[10].mxu0 }
 0x41c   :  { %718 = vst.msk [vmem:[#allocation2] sm:$0xff] %vm290_vm6, %v712_v18  ;;  %v715_v22 = vadd.f32 %v1450_v14, %v714_v21  ;;  %v1592_v23 = vpop.f32.mrb[11].mxu1  ;;  %v789_v24 = vpop.f32.mrb[11].mxu0 }
 0x41d   :  { %801 = vst.msk [vmem:[#allocation3 + $0x8] sm:$0xff] %vm290_vm6, %v789_v24 }
 0x41e   :  { %719 = vst.msk [vmem:[#allocation2 + $0x8] sm:$0xff] %vm290_vm6, %v715_v22 }
 0x41f LB: > { %s809_s27 = sld [smem:[#allocation7 + %s1794_s20]]  ;;  %vm818_vm7 = vcmask 516096   ;;  %s817_s15 = scalar_lea.vmem [#allocation4], %s1794_s20  ;;  %s1794_s20 = sphi %s1792_s20, %s808_s20  }
 0x420   : > { %s810_s10 = sld [smem:[#allocation8 + %s1794_s20]]  ;;  %s808_s20 = sadd.s32 1, %s1794_s20  }
 0x421   : > { %p805_p10 = scmp.ge.s32.totalorder %s808_s20, 64  }
 0x422   :  { %1088 = vst.msk [vmem:[#allocation5] sm:$0xff] (%p805_p10), %vm290_vm6, %v1835_v41  ;;  %1089 = vst.msk [vmem:[#allocation5 + $0x8] sm:$0xff] (%p805_p10), %vm290_vm6, %v1835_v41  ;;  %s2424_s18 = sld [smem:[#allocation18_spill]] (%p805_p10)  ;;  %s1796_s1 = smov (%p805_p10), 0  }
 0x425   : > { %s811_s23 = scalar_lea.vmem [#allocation2], %s809_s27 }
 0x426   : > { %v812_v25 = vld [vmem:[%s811_s23] sm:$0x1]  ;;  %s813_s30 = scalar_lea.vmem [#allocation3], %s810_s10  ;;  %807 = sbr.rel (!%p805_p10) target bundleno = 1055 (0x41f), region = 195 }
 0x427   : > { %v814_v26 = vld [vmem:[%s813_s30] sm:$0x1] }
 0x428   : > { %v815_v27 = vadd.f32 %v814_v26, %v812_v25 }
 0x42a   : > { %v816_v28 = vadd.f32 %v815_v27, %v2075_v32 }
 0x42c   : > { %819 = vst.msk [vmem:[%s817_s15] sm:$0x1] %vm818_vm7, %v816_v28 }
 0x433   :  { %v820_v29 = vld [vmem:[#allocation4] sm:$0xff]  ;;  %v822_v30 = vld [vmem:[#allocation4 + $0x10] sm:$0xff]  ;;  %v821_v31 = vld [vmem:[#allocation4 + $0x8] sm:$0xff] }
 0x434   :  { %v828_v9 = vsel %vm290_vm6, %v820_v29, 0.0  ;;  %v834_v10 = vsel %vm290_vm6, %v822_v30, 0.0  ;;  %v823_v11 = vld [vmem:[#allocation4 + $0x18] sm:$0xff]  ;;  %v831_v12 = vsel %vm290_vm6, %v821_v31, 0.0  ;;  %v824_v32 = vld [vmem:[#allocation4 + $0x20] sm:$0xff]  ;;  %v825_v14 = vld [vmem:[#allocation4 + $0x28] sm:$0xff] }
 0x435   :  { %829 = vadd.xlane.f32.xlu0 %v828_v9  ;;  %835 = vadd.xlane.f32.xlu1 %v834_v10  ;;  %v837_v8 = vsel %vm290_vm6, %v823_v11, 0.0  ;;  %v840_v16 = vsel %vm290_vm6, %v824_v32, 0.0  ;;  %v843_v17 = vsel %vm290_vm6, %v825_v14, 0.0  ;;  %v826_v18 = vld [vmem:[#allocation4 + $0x30] sm:$0xff]  ;;  %v827_v19 = vld [vmem:[#allocation4 + $0x38] sm:$0xff] }
 0x436   :  { %v846_v20 = vsel %vm290_vm6, %v826_v18, 0.0  ;;  %v849_v21 = vsel %vm290_vm6, %v827_v19, 0.0 }
 0x439   :  { %832 = vadd.xlane.f32.xlu0 %v831_v12  ;;  %838 = vadd.xlane.f32.xlu1 %v837_v8 }
 0x43d   :  { %841 = vadd.xlane.f32.xlu0 %v840_v16  ;;  %844 = vadd.xlane.f32.xlu1 %v843_v17 }
 0x441   :  { %847 = vadd.xlane.f32.xlu0 %v846_v20  ;;  %850 = vadd.xlane.f32.xlu1 %v849_v21 }
 0x4c2   :  { %v830_v15 = vpop.xlane.xlu0 %829  ;;  %v836_v22 = vpop.xlane.xlu1 %835 }
 0x4c3   :  { %v853_v23 = vmul.f32 0.015625, %v830_v15  ;;  %v855_v24 = vmul.f32 0.015625, %v836_v22 }
 0x4c5   :  { %v2243_v25 = vsub.f32 %v820_v29, %v853_v23  ;;  %v2245_v26 = vsub.f32 %v822_v30, %v855_v24 }
 0x4c6   :  { %v833_v27 = vpop.xlane.xlu0 %832  ;;  %v839_v28 = vpop.xlane.xlu1 %838 }
 0x4c7   :  { %v854_v9 = vmul.f32 0.015625, %v833_v27  ;;  %v856_v10 = vmul.f32 0.015625, %v839_v28  ;;  %v869_v12 = vmul.f32 %v2243_v25, %v2243_v25  ;;  %v871_v8 = vmul.f32 %v2245_v26, %v2245_v26 }
 0x4c9   :  { %v2251_v16 = vsub.f32 %v821_v31, %v854_v9  ;;  %v2253_v17 = vsub.f32 %v823_v11, %v856_v10  ;;  %v877_v20 = vsel %vm290_vm6, %v869_v12, 0.0  ;;  %v883_v21 = vsel %vm290_vm6, %v871_v8, 0.0 }
 0x4ca   :  { %878 = vadd.xlane.f32.xlu0 %v877_v20  ;;  %v842_v29 = vpop.xlane.xlu0 %841  ;;  %v845_v30 = vpop.xlane.xlu1 %844 }
 0x4cb   :  { %v857_v15 = vmul.f32 0.015625, %v842_v29  ;;  %v858_v22 = vmul.f32 0.015625, %v845_v30  ;;  %v870_v23 = vmul.f32 %v2251_v16, %v2251_v16  ;;  %v872_v24 = vmul.f32 %v2253_v17, %v2253_v17 }
 0x4cd   :  { %v2261_v27 = vsub.f32 %v824_v32, %v857_v15  ;;  %v2263_v31 = vsub.f32 %v825_v14, %v858_v22  ;;  %v880_v11 = vsel %vm290_vm6, %v870_v23, 0.0  ;;  %v886_v10 = vsel %vm290_vm6, %v872_v24, 0.0 }
 0x4ce   :  { %884 = vadd.xlane.f32.xlu0 %v883_v21  ;;  %881 = vadd.xlane.f32.xlu1 %v880_v11  ;;  %v848_v28 = vpop.xlane.xlu0 %847  ;;  %v851_v9 = vpop.xlane.xlu1 %850  ;;  %v1466_v24 = vcombine.low %v2090_v37, %v2093_v38  ;;  %v1467_v11 = vcombine.low %v2096_v39, %v2099_v40 }
 0x4cf   :  { %v859_v12 = vmul.f32 0.015625, %v848_v28  ;;  %v860_v8 = vmul.f32 0.015625, %v851_v9  ;;  %v873_v20 = vmul.f32 %v2261_v27, %v2261_v27  ;;  %v874_v29 = vmul.f32 %v2263_v31, %v2263_v31 }
 0x4d0   :  { %v1468_v28 = vcombine.low %v2102_v42, %v2105_v43 }
 0x4d1   :  { %v2271_v32 = vsub.f32 %v826_v18, %v859_v12  ;;  %v2273_v14 = vsub.f32 %v827_v19, %v860_v8  ;;  %v889_v30 = vsel %vm290_vm6, %v873_v20, 0.0  ;;  %v892_v21 = vsel %vm290_vm6, %v874_v29, 0.0 }
 0x4d2   :  { %887 = vadd.xlane.f32.xlu1 %v886_v10  ;;  %890 = vadd.xlane.f32.xlu0 %v889_v30  ;;  %v1465_v19 = vcombine.low %v2084_v35, %v2087_v36 }
 0x4d3   :  { %v875_v15 = vmul.f32 %v2271_v32, %v2271_v32  ;;  %v876_v22 = vmul.f32 %v2273_v14, %v2273_v14 }
 0x4d4   :  { %1605 = vmatprep.subr.bf16.mxu1 %v1465_v19 }
 0x4d5   :  { %v895_v23 = vsel %vm290_vm6, %v875_v15, 0.0  ;;  %v898_v18 = vsel %vm290_vm6, %v876_v22, 0.0  ;;  %1606 = vmatpush3.bf16.msra.mxu1 %v1465_v19 }
 0x4d6   :  { %893 = vadd.xlane.f32.xlu1 %v892_v21  ;;  %896 = vadd.xlane.f32.xlu0 %v895_v23 }
 0x4d7   :  { %1607 = vmatprep.subr.bf16.mxu1 %v1466_v24 }
 0x4d9   :  { %1608 = vmatpush3.bf16.msra.mxu1 %v1466_v24 }
 0x4da   :  { %899 = vadd.xlane.f32.xlu1 %v898_v18  ;;  %1609 = vmatprep.subr.bf16.mxu1 %v1467_v11 }
 0x4dd   :  { %1610 = vmatpush3.bf16.msra.mxu1 %v1467_v11 }
 0x4de   :  { %1611 = vmatprep.subr.bf16.mxu1 %v1468_v28 }
 0x4e1   :  { %1612 = vmatpush3.bf16.msra.mxu1 %v1468_v28 }
 0x557   :  { %v879_v9 = vpop.xlane.xlu0 %878 }
 0x558   :  { %v901_v10 = vmul.f32 0.015625, %v879_v9 }
 0x55a   :  { %v909_v35 = vadd.f32 1e-05, %v901_v10 }
 0x55b   :  { %v882_v36 = vpop.xlane.xlu1 %881  ;;  %v885_v12 = vpop.xlane.xlu0 %884 }
 0x55c   :  { %1738 = vrsqrt.f32 %v909_v35  ;;  %v902_v8 = vmul.f32 0.015625, %v882_v36  ;;  %v903_v37 = vmul.f32 0.015625, %v885_v12 }
 0x55e   :  { %v910_v38 = vadd.f32 1e-05, %v902_v8  ;;  %v911_v20 = vadd.f32 1e-05, %v903_v37 }
 0x55f   :  { %v888_v39 = vpop.xlane.xlu1 %887  ;;  %v891_v40 = vpop.xlane.xlu0 %890 }
 0x560   :  { %1740 = vrsqrt.f32 %v910_v38  ;;  %v904_v29 = vmul.f32 0.015625, %v888_v39  ;;  %v905_v30 = vmul.f32 0.015625, %v891_v40 }
 0x561   :  { %1742 = vrsqrt.f32 %v911_v20 }
 0x562   :  { %v912_v42 = vadd.f32 1e-05, %v904_v29  ;;  %v913_v43 = vadd.f32 1e-05, %v905_v30 }
 0x563   :  { %v894_v21 = vpop.xlane.xlu1 %893  ;;  %v897_v15 = vpop.xlane.xlu0 %896 }
 0x564   :  { %1744 = vrsqrt.f32 %v912_v42  ;;  %v906_v22 = vmul.f32 0.015625, %v894_v21  ;;  %v907_v23 = vmul.f32 0.015625, %v897_v15 }
 0x565   :  { %1746 = vrsqrt.f32 %v913_v43 }
 0x566   :  { %v1739_v18 = vpop.eup %1738  ;;  %v914_v19 = vadd.f32 1e-05, %v906_v22  ;;  %v915_v24 = vadd.f32 1e-05, %v907_v23 }
 0x567   :  { %v900_v11 = vpop.xlane.xlu1 %899  ;;  %v925_v28 = vmul.f32 %v1739_v18, %v2243_v25 }
 0x568   :  { %1748 = vrsqrt.f32 %v914_v19  ;;  %v908_v9 = vmul.f32 0.015625, %v900_v11 }
 0x569   :  { %1750 = vrsqrt.f32 %v915_v24  ;;  %v939_v10 = vmul.f32 %v2078_v33, %v925_v28 }
 0x56a   :  { %v1741_v35 = vpop.eup %1740  ;;  %v916_v36 = vadd.f32 1e-05, %v908_v9 }
 0x56b   :  { %v1743_v12 = vpop.eup %1742  ;;  %v926_v8 = vmul.f32 %v1741_v35, %v2251_v16  ;;  %v953_v20 = vadd.f32 %v2081_v34, %v939_v10 }
 0x56c   :  { %1752 = vrsqrt.f32 %v916_v36  ;;  %v927_v37 = vmul.f32 %v1743_v12, %v2245_v26 }
 0x56d   :  { %v940_v38 = vmul.f32 %v2078_v33, %v926_v8  ;;  %v961_v43 = vmax.f32 %v953_v20, 0.0 }
 0x56e   :  { %v1745_v39 = vpop.eup %1744  ;;  %v941_v25 = vmul.f32 %v2078_v33, %v927_v37 }
 0x56f   :  { %v1747_v40 = vpop.eup %1746  ;;  %v954_v29 = vadd.f32 %v2081_v34, %v940_v38  ;;  %v928_v30 = vmul.f32 %v1745_v39, %v2253_v17 }
 0x570   :  { %v929_v42 = vmul.f32 %v1747_v40, %v2261_v27  ;;  %v955_v26 = vadd.f32 %v2081_v34, %v941_v25 }
 0x571   :  { %v962_v21 = vmax.f32 %v954_v29, 0.0  ;;  %v942_v16 = vmul.f32 %v2078_v33, %v928_v30  ;;  %v1464_v30 = vld [vmem:[%s2424_s18] ss:$0 sm:$0xff] }
 0x572   :  { %v1749_v15 = vpop.eup %1748  ;;  %v943_v22 = vmul.f32 %v2078_v33, %v929_v42  ;;  %v963_v17 = vmax.f32 %v955_v26, 0.0 }
 0x573   :  { %v1751_v23 = vpop.eup %1750  ;;  %v969_v18 = vpack.c.bf16 %v962_v21, %v961_v43  ;;  %v956_v19 = vadd.f32 %v2081_v34, %v942_v16  ;;  %v930_v24 = vmul.f32 %v1749_v15, %v2263_v31 }
 0x574   :  { %v931_v11 = vmul.f32 %v1751_v23, %v2271_v32  ;;  %v957_v9 = vadd.f32 %v2081_v34, %v943_v22 }
 0x575   :  { %1613 = vmatprep.mubr.msk.bf16.mxu1 %vm290_vm6, %v969_v18  ;;  %v964_v27 = vmax.f32 %v956_v19, 0.0  ;;  %v944_v28 = vmul.f32 %v2078_v33, %v930_v24 }
 0x576   :  { %v1753_v10 = vpop.eup %1752  ;;  %v945_v35 = vmul.f32 %v2078_v33, %v931_v11  ;;  %v965_v31 = vmax.f32 %v957_v9, 0.0 }
 0x577   :  { %v970_v36 = vpack.c.bf16 %v964_v27, %v963_v17  ;;  %v958_v12 = vadd.f32 %v2081_v34, %v944_v28  ;;  %v932_v8 = vmul.f32 %v1753_v10, %v2273_v14 }
 0x578   :  { %v959_v38 = vadd.f32 %v2081_v34, %v945_v35 }
 0x579   :  { %1614 = vmatmul.mubr.msk.bf16.vlgmr.msra.gmra.mrb[12].mxu1 %vm290_vm6, %v970_v36  ;;  %v966_v32 = vmax.f32 %v958_v12, 0.0  ;;  %v946_v37 = vmul.f32 %v2078_v33, %v932_v8 }
 0x57a   :  { %v967_v25 = vmax.f32 %v959_v38, 0.0 }
 0x57b   :  { %v971_v20 = vpack.c.bf16 %v966_v32, %v965_v31  ;;  %v960_v39 = vadd.f32 %v2081_v34, %v946_v37 }
 0x57d   :  { %1617 = vmatprep.mubr.msk.bf16.mxu1 %vm290_vm6, %v971_v20  ;;  %v968_v40 = vmax.f32 %v960_v39, 0.0 }
 0x57f   :  { %v972_v29 = vpack.c.bf16 %v968_v40, %v967_v25 }
 0x581   :  { %1618 = vmatmul.mubr.msk.bf16.gmra.mrb[16].mxu1 %vm290_vm6, %v972_v29 }
 0x64c   :  { %v1615_v14 = vpop.f32.mrb[12].mxu1 }
 0x64d   :  { %v1058_v42 = vadd.f32 %v1615_v14, %v1464_v30  ;;  %v1049_v43 = vpop.f32.mrb[13].mxu1 }
 0x64e   :  { %v1050_v21 = vadd.f32 %v1464_v30, %v1049_v43  ;;  %v1616_v16 = vpop.f32.mrb[14].mxu1 }
 0x64f   :  { %1082 = vst.msk [vmem:[#allocation4 + $0x10] sm:$0xff] %vm290_vm6, %v1058_v42  ;;  %v1061_v33 = vadd.f32 %v1616_v16, %v1464_v30  ;;  %v1052_v26 = vpop.f32.mrb[15].mxu1 }
 0x650   :  { %1080 = vst.msk [vmem:[#allocation4] sm:$0xff] %vm290_vm6, %v1050_v21  ;;  %v1053_v34 = vadd.f32 %v1464_v30, %v1052_v26 }
 0x651   :  { %1083 = vst.msk [vmem:[#allocation4 + $0x18] sm:$0xff] %vm290_vm6, %v1061_v33 }
 0x652   :  { %1081 = vst.msk [vmem:[#allocation4 + $0x8] sm:$0xff] %vm290_vm6, %v1053_v34 }
 0x654   :  { %v1619_v15 = vpop.f32.mrb[16].mxu1 }
 0x655   :  { %v1074_v22 = vadd.f32 %v1619_v15, %v1464_v30  ;;  %v1065_v23 = vpop.f32.mrb[17].mxu1 }
 0x656   :  { %v1066_v18 = vadd.f32 %v1464_v30, %v1065_v23  ;;  %v1620_v19 = vpop.f32.mrb[18].mxu1 }
 0x657   :  { %1086 = vst.msk [vmem:[#allocation4 + $0x30] sm:$0xff] %vm290_vm6, %v1074_v22  ;;  %v1077_v24 = vadd.f32 %v1620_v19, %v1464_v30  ;;  %v1068_v11 = vpop.f32.mrb[19].mxu1 }
 0x658   :  { %1084 = vst.msk [vmem:[#allocation4 + $0x20] sm:$0xff] %vm290_vm6, %v1066_v18  ;;  %v1069_v17 = vadd.f32 %v1464_v30, %v1068_v11 }
 0x659   :  { %1087 = vst.msk [vmem:[#allocation4 + $0x38] sm:$0xff] %vm290_vm6, %v1077_v24 }
 0x65a   :  { %1085 = vst.msk [vmem:[#allocation4 + $0x28] sm:$0xff] %vm290_vm6, %v1069_v17 }
 0x65b LB: > { %s1096_s22 = sld [smem:[#allocation7 + %s1798_s1]]  ;;  %s1099_s26 = scalar_lea.vmem [#allocation4], %s1798_s1  ;;  %s1798_s1 = sphi %s1796_s1, %s1095_s1  }
 0x65c   : > { %s1095_s1 = sadd.s32 1, %s1798_s1  }
 0x65d   : > { %p1092_p11 = scmp.ge.s32.totalorder %s1095_s1, 64  }
 0x65e   :  { %1621 = vmatprep.subr.bf16.mxu0 (%p1092_p11), %v1835_v41  ;;  %1633 = vmatprep.subr.bf16.mxu1 (%p1092_p11), %v1835_v41  ;;  %v1475_v30 = vcombine.low (%p1092_p11), %v2138_v54, %v2141_v55  ;;  %v1480_v14 = vcombine.low (%p1092_p11), %v2114_v46, %v2117_v47  ;;  %v1476_v42 = vcombine.low (%p1092_p11), %v2144_v56, %v2147_v57 }
 0x65f   :  { %1094 = sbr.rel (!%p1092_p11) target bundleno = 1627 (0x65b), region = 206  ;;  %1629 = vmatprep.mubr.msk.bf16.mxu0 (%p1092_p11), %vm1836_vm5, %v1835_v41  ;;  %1641 = vmatprep.mubr.msk.bf16.mxu1 (%p1092_p11), %vm1836_vm5, %v1835_v41  ;;  %v1481_v43 = vcombine.low (%p1092_p11), %v2120_v48, %v2123_v49  ;;  %v1477_v21 = vcombine.low (%p1092_p11), %v2150_v58, %v2153_v59  ;;  %v1482_v46 = vcombine.low (%p1092_p11), %v2126_v50, %v2129_v51 }
 0x660   :  { %1622 = vmatpush3.bf16.msra.mxu0 (%p1092_p11), %v1475_v30  ;;  %1634 = vmatpush3.bf16.msra.mxu1 (%p1092_p11), %v1480_v14  ;;  %v1478_v47 = vcombine.low (%p1092_p11), %v2156_v60, %v2159_v61  ;;  %v1483_v48 = vcombine.low (%p1092_p11), %v2132_v52, %v2135_v53  ;;  %v1487_v49 = vcombine.low (%p1092_p11), %v2165_v63, %v2168_v0 }
 0x661   : > { %v1100_v27 = vld [vmem:[%s1099_s26] sm:$0x1]  ;;  %s1097_s4 = scalar_lea.vmem [#allocation5], %s1096_s22  ;;  %1623 = vmatprep.subr.bf16.mxu0 (%p1092_p11), %v1835_v41  ;;  %1635 = vmatprep.subr.bf16.mxu1 (%p1092_p11), %v1835_v41  ;;  %v1488_v26 = vcombine.low (%p1092_p11), %v2171_v1, %v2174_v2 }
 0x662   : > { %v1098_v28 = vld [vmem:[%s1097_s4] sm:$0x1] }
 0x663   : > { %v1101_v9 = vadd.f32 %v1100_v27, %v1098_v28 }
 0x664   :  { %1624 = vmatpush3.bf16.msra.mxu0 (%p1092_p11), %v1476_v42  ;;  %1636 = vmatpush3.bf16.msra.mxu1 (%p1092_p11), %v1481_v43 }
 0x665   : > { %1103 = vst.msk [vmem:[%s1097_s4] sm:$0x1] %vm818_vm7, %v1101_v9  ;;  %1625 = vmatprep.subr.bf16.mxu0 (%p1092_p11), %v1835_v41  ;;  %1637 = vmatprep.subr.bf16.mxu1 (%p1092_p11), %v1835_v41 }
 0x668   :  { %1626 = vmatpush3.bf16.msra.mxu0 %v1477_v21  ;;  %1638 = vmatpush3.bf16.msra.mxu1 %v1482_v46 }
 0x669   :  { %1627 = vmatprep.subr.bf16.mxu0 %v1835_v41  ;;  %1639 = vmatprep.subr.bf16.mxu1 %v1835_v41 }
 0x66c   :  { %v1104_v10 = vld [vmem:[#allocation5] sm:$0xff]  ;;  %v1105_v35 = vld [vmem:[#allocation5 + $0x8] sm:$0xff]  ;;  %1628 = vmatpush3.bf16.msra.mxu0 %v1478_v47  ;;  %1640 = vmatpush3.bf16.msra.mxu1 %v1483_v48 }
 0x66d   :  { %v1106_v36 = vsel %vm290_vm6, %v1104_v10, 0.0  ;;  %v1109_v12 = vsel %vm290_vm6, %v1105_v35, 0.0  ;;  %1645 = vmatprep.subr.bf16.mxu0 %v1835_v41 }
 0x66e   :  { %1107 = vadd.xlane.f32.xlu0 %v1106_v36 }
 0x66f   :  { %1630 = vmatmul.mubr.msk.bf16.vlgmr.msra.gmra.mrb[12].mxu0 %vm290_vm6, %v2217_v13 }
 0x670   :  { %1653 = vmatprep.mubr.msk.bf16.mxu0 %vm1836_vm5, %v1835_v41  ;;  %1646 = vmatpush3.bf16.msra.mxu0 %v1487_v49 }
 0x671   :  { %1647 = vmatprep.subr.bf16.mxu0 %v1835_v41 }
 0x672   :  { %1110 = vadd.xlane.f32.xlu0 %v1109_v12 }
 0x674   :  { %1648 = vmatpush3.bf16.msra.mxu0 %v1488_v26 }
 0x675   :  { %1649 = vmatprep.subr.bf16.mxu0 %v1835_v41 }
 0x6fb   :  { %v1108_v8 = vpop.xlane.xlu0 %1107 }
 0x6fc   :  { %v1112_v31 = vmul.f32 0.015625, %v1108_v8 }
 0x6fe   :  { %v1114_v32 = vsub.f32 %v1104_v10, %v1112_v31 }
 0x6ff   :  { %v1111_v37 = vpop.xlane.xlu0 %1110 }
 0x700   :  { %v1113_v38 = vmul.f32 0.015625, %v1111_v37  ;;  %v1116_v20 = vmul.f32 %v1114_v32, %v1114_v32 }
 0x702   :  { %v1115_v39 = vsub.f32 %v1105_v35, %v1113_v38  ;;  %v1118_v25 = vsel %vm290_vm6, %v1116_v20, 0.0 }
 0x703   :  { %1119 = vadd.xlane.f32.xlu1 %v1118_v25 }
 0x704   :  { %v1117_v40 = vmul.f32 %v1115_v39, %v1115_v39 }
 0x706   :  { %v1121_v29 = vsel %vm290_vm6, %v1117_v40, 0.0 }
 0x707   :  { %1122 = vadd.xlane.f32.xlu1 %v1121_v29 }
 0x742   :  { %v1207_v16 = vpop.f32.mrb[12].mxu0 }
 0x743   :  { %v1631_v33 = vpop.f32.mrb[13].mxu0 }
 0x744   :  { %v1210_v34 = vpop.f32.mrb[14].mxu0 }
 0x745   :  { %v1632_v15 = vpop.f32.mrb[15].mxu0 }
 0x790   :  { %v1120_v50 = vpop.xlane.xlu1 %1119 }
 0x791   :  { %v1124_v51 = vmul.f32 0.015625, %v1120_v50 }
 0x793   :  { %v1126_v52 = vadd.f32 1e-05, %v1124_v51 }
 0x794   :  { %v1123_v53 = vpop.xlane.xlu1 %1122 }
 0x795   :  { %1754 = vrsqrt.f32 %v1126_v52  ;;  %v1125_v54 = vmul.f32 0.015625, %v1123_v53 }
 0x797   :  { %v1127_v55 = vadd.f32 1e-05, %v1125_v54 }
 0x799   :  { %1756 = vrsqrt.f32 %v1127_v55 }
 0x79f   :  { %v1755_v56 = vpop.eup %1754 }
 0x7a0   :  { %v1130_v57 = vmul.f32 %v1755_v56, %v1114_v32 }
 0x7a2   :  { %v1138_v60 = vmul.f32 %v2108_v44, %v1130_v57 }
 0x7a3   :  { %v1757_v58 = vpop.eup %1756 }
 0x7a4   :  { %v1131_v59 = vmul.f32 %v1757_v58, %v1115_v39  ;;  %v1146_v63 = vadd.f32 %v2111_v45, %v1138_v60 }
 0x7a6   :  { %v1139_v61 = vmul.f32 %v2108_v44, %v1131_v59  ;;  %v1489_v44 = vcombine.low %v2177_v3, %v2180_v4 }
 0x7a8   :  { %v1147_v0 = vadd.f32 %v2111_v45, %v1139_v61  ;;  %1650 = vmatpush3.bf16.msra.mxu0 %v1489_v44  ;;  %v1490_v45 = vcombine.low %v2183_v5, %v2186_v6 }
 0x7a9   :  { %1651 = vmatprep.subr.bf16.mxu0 %v1835_v41 }
 0x7aa   :  { %v1148_v13 = vpack.c.bf16 %v1147_v0, %v1146_v63 }
 0x7ac   :  { %1642 = vmatmul.mubr.msk.bf16.vlgmr.msra.gmra.mrb[20].mxu1 %vm290_vm6, %v1148_v13  ;;  %1652 = vmatpush3.bf16.msra.mxu0 %v1490_v45 }
 0x87f   :  { %v1275_v22 = vpop.f32.mrb[20].mxu1 }
 0x880   :  { %v1276_v23 = vadd.f32 %v1275_v22, %v1207_v16  ;;  %v1643_v18 = vpop.f32.mrb[21].mxu1 }
 0x881   :  { %v1278_v19 = vpop.f32.mrb[22].mxu1 }
 0x882   :  { %v1288_v1 = vadd.f32 %v2162_v62, %v1276_v23  ;;  %v1279_v2 = vadd.f32 %v1278_v19, %v1210_v34  ;;  %v1644_v24 = vpop.f32.mrb[23].mxu1 }
 0x884   :  { %v1289_v11 = vadd.f32 %v2162_v62, %v1279_v2  ;;  %v1290_v3 = vmax.f32 %v1288_v1, 0.0 }
 0x886   :  { %v1291_v4 = vmax.f32 %v1289_v11, 0.0 }
 0x888   :  { %v1292_v17 = vpack.c.bf16 %v1291_v4, %v1290_v3 }
 0x88a   :  { %1654 = vmatmul.mubr.msk.bf16.vlgmr.msra.gmra.mrb[16].mxu0 %vm290_vm6, %v1292_v17 }
 0x95d   :  { %v1360_v41 = vpop.f32.mrb[16].mxu0 }
 0x95e   :  { %v1361_v5 = vadd.f32 %v2189_v7, %v1360_v41  ;;  %v1655_v6 = vpop.f32.mrb[17].mxu0 }
 0x95f   :  { %v1363_v27 = vpop.f32.mrb[18].mxu0 }
 0x960   :  { %v1367_v28 = vmax.f32 %v1361_v5, 0.0  ;;  %v1364_v9 = vadd.f32 %v2189_v7, %v1363_v27  ;;  %v1656_v10 = vpop.f32.mrb[19].mxu0 }
 0x962   :  { %1369 = vst.msk [vmem:[%s1995_s16] sm:$0xff] %vm290_vm6, %v1367_v28  ;;  %v1368_v35 = vmax.f32 %v1364_v9, 0.0 }
 0x964   :  { %1370 = vst.msk [vmem:[%s1995_s16 + $0x8] sm:$0xff] %vm290_vm6, %v1368_v35 }

</bundles_post_ra>
